<compile_context>
chip_gen: v7x
topology: tpu7x:2x2x1
jax: 0.10.0
libtpu: 0.0.40
codegen_flags: <defaults>
</compile_context>

<pallas_src>
import math

import jax
import jax.numpy as jnp
from jax.experimental import pallas as pl
from jax.experimental.pallas import tpu as pltpu

HIDDEN = 40
TN_CAP = 8192  # max batch lanes per grid step (multiple of 128)


def _cdiv(a, b):
    return -(-a // b)


def _round_up(a, m):
    return _cdiv(a, m) * m


def _tile_plan(n, tn_cap=TN_CAP):
    """Pick (tn, n_blocks) for the batch-lane grid.

    Cover the batch in as few, as large tiles as possible (per-step pipeline
    overhead dominates the tiny per-tile compute), but keep an even block
    count >= 2 whenever n > 128 so the "parallel" axis shards across v7x's two
    TensorCores.  VMEM at tn=8192 is only a few MB of intermediates, far below
    the scoped limit on every generation, so no vmem_limit_bytes override.
    """
    if n <= 128:
        return 128, 1
    n_blocks = max(2, _cdiv(n, tn_cap))
    if n_blocks % 2:
        n_blocks += 1                      # even split across the 2 TCs (v7x)
    tn = _round_up(_cdiv(n, n_blocks), 128)
    return tn, _cdiv(n, tn)


def _mlp_tanh_kernel(x_ref, w2_ref, wb_ref, w3_ref, b3_ref, o_ref):
    x = x_ref[...]                          # (1, TN) -- batch on lanes

    # Packed per-feature columns: [:,0]=w1, [:,1]=b1, [:,2]=b2 (static slices).
    w1 = wb_ref[:, 0:1]                     # (40, 1)
    b1 = wb_ref[:, 1:2]                     # (40, 1)
    b2 = wb_ref[:, 2:3]                     # (40, 1)

    # Layer 1 (in_features=1): VPU broadcast outer product, no matmul needed.
    h1 = jnp.tanh(w1 * x + b1)              # (40, TN)

    # Layer 2: the only real matmul -> MXU (f32 accumulate, f32 inputs kept
    # for accuracy; MXU is nowhere near the bottleneck at these sizes).
    h2 = jnp.tanh(
        jnp.dot(w2_ref[...], h1, preferred_element_type=jnp.float32)
        + b2)                               # (40, TN)

    # Layer 3 (out_features=1): also an MXU dot (the MXU is otherwise idle)
    # instead of a VPU multiply + XLU sublane reduction.
    out = jnp.dot(w3_ref[...], h2,
                  preferred_element_type=jnp.float32) + b3_ref[0]   # (1, TN)
    o_ref[...] = out.astype(o_ref.dtype)
    # TODO(synk): if a bundle dump on v5e/v6e shows the single vst slot
    # saturating at large TN, strip-mine the h1/h2 elementwise chains with an
    # unrolled lax.fori_loop over ~512-lane chunks to keep them vreg-resident.


def mlp_tanh_forward(x, params, *, tn_cap=TN_CAP):
    """x: (N, 1) float32 -> (N, 1) float32."""
    w2, wb, w3, b3 = params
    N = x.shape[0]

    tn, n_blocks = _tile_plan(N, tn_cap)
    n_pad = n_blocks * tn

    # Feature-major layout: batch on lanes.  Padded tail lanes flow through
    # tanh/matmul as finite values and are sliced off below.
    xt = x.reshape(1, N)
    if n_pad != N:
        xt = jnp.pad(xt, ((0, 0), (0, n_pad - N)))

    rep = lambda i: (0, 0)  # weights: same (resident) block every grid step

    cost = pl.CostEstimate(
        flops=2 * n_pad * HIDDEN * (HIDDEN + 2),
        transcendentals=2 * HIDDEN * n_pad,
        bytes_accessed=8 * n_pad + 4 * (HIDDEN * HIDDEN + 4 * HIDDEN + 1),
    )

    out_t = pl.pallas_call(
        _mlp_tanh_kernel,
        out_shape=jax.ShapeDtypeStruct((1, n_pad), jnp.float32),
        grid=(n_blocks,),
        in_specs=[
            pl.BlockSpec((1, tn), lambda i: (0, i)),            # x tile
            pl.BlockSpec((HIDDEN, HIDDEN), rep),                # W2 (40,40)
            pl.BlockSpec((HIDDEN, 3), rep),                     # [w1|b1|b2]
            pl.BlockSpec((1, HIDDEN), rep),                     # W3 row (1,40)
            pl.BlockSpec(memory_space=pltpu.MemorySpace.SMEM),  # b3 scalar
        ],
        out_specs=pl.BlockSpec((1, tn), lambda i: (0, i)),
        compiler_params=pltpu.CompilerParams(
            dimension_semantics=("parallel",)),
        cost_estimate=cost,
    )(xt, w2, wb, w3, b3)

    return out_t[:, :N].reshape(N, 1)


def init_params(key):
    """Deterministic init matching torch.nn.Linear defaults:
    U(-1/sqrt(fan_in), 1/sqrt(fan_in)) for weight and bias, stored in the
    kernel's packed, feature-major layout (see header comment)."""
    ks = jax.random.split(key, 7)

    def linear(kw, kb, fan_in, fan_out):
        bound = 1.0 / math.sqrt(fan_in)
        w = jax.random.uniform(kw, (fan_out, fan_in), jnp.float32,
                               -bound, bound)
        b = jax.random.uniform(kb, (fan_out,), jnp.float32, -bound, bound)
        return w, b

    w1, b1 = linear(ks[0], ks[1], 1, HIDDEN)          # (40,1), (40,)
    w2, b2 = linear(ks[2], ks[3], HIDDEN, HIDDEN)     # (40,40), (40,)
    w3, b3 = linear(ks[4], ks[5], HIDDEN, 1)          # (1,40), (1,)
    wb = jnp.concatenate([w1, b1[:, None], b2[:, None]], axis=1)  # (40,3)
    gamma = jax.random.uniform(ks[6], (1,), jnp.float32)  # unused in forward
    return (w2, wb, w3, b3), gamma


def reference_forward(x, params):
    """Pure-JAX batch-major reference (mirrors the PyTorch forward)."""
    w2, wb, w3, b3 = params
    w1 = wb[:, 0]                       # (40,)
    b1 = wb[:, 1]
    b2 = wb[:, 2]
    h = jnp.tanh(x * w1[None, :] + b1[None, :])     # (N,40) == x @ w1.T + b1
    h = jnp.tanh(h @ w2.T + b2[None, :])            # (N,40)
    return h @ w3.T + b3                            # (N,1)


if __name__ == "__main__":
    key = jax.random.PRNGKey(0)
    kp, kx = jax.random.split(key)
    params, gamma = init_params(kp)

    # PINN-style batch of collocation points, 1 input feature.  N=10000
    # exercises the large-tile path: tn=5120 lanes, 2 parallel grid blocks,
    # plus ragged padding (10000 -> 10240) that is sliced off afterwards.
    N = 10000
    x = jax.random.uniform(kx, (N, 1), jnp.float32, -1.0, 1.0)

    out = mlp_tanh_forward(x, params)
    out = jax.block_until_ready(out)

    ref = reference_forward(x, params)
    assert out.shape == (N, 1)
    assert jnp.allclose(out, ref, atol=3e-5, rtol=1e-5), (
        float(jnp.max(jnp.abs(out - ref))))

    print("KERNEL_OK")
</pallas_src>

<mosaic_0001>
module attributes {stable_mosaic.version = 11 : i64} {
  func.func @_mlp_tanh_kernel(%arg0: i32, %arg1: memref<1x5120xf32, #tpu.memory_space<vmem>>, %arg2: memref<40x40xf32, #tpu.memory_space<vmem>>, %arg3: memref<40x3xf32, #tpu.memory_space<vmem>>, %arg4: memref<1x40xf32, #tpu.memory_space<vmem>>, %arg5: memref<1xf32, #tpu.memory_space<smem>>, %arg6: memref<1x5120xf32, #tpu.memory_space<vmem>>) attributes {dimension_semantics = [#tpu.dimension_semantics<parallel>], iteration_bounds = array<i64: 2>, scalar_prefetch = 0 : i64, scratch_operands = 0 : i64, tpu.core_type = #tpu.core_type<tc>, window_params = [{transform_indices = @transform_0, window_bounds = array<i64: 1, 5120>}, {pipeline_mode = #tpu.pipeline_mode<synchronous>, transform_indices = @transform_1, window_bounds = array<i64: 40, 40>}, {pipeline_mode = #tpu.pipeline_mode<synchronous>, transform_indices = @transform_2, window_bounds = array<i64: 40, 3>}, {pipeline_mode = #tpu.pipeline_mode<synchronous>, transform_indices = @transform_3, window_bounds = array<i64: 1, 40>}, {transform_indices = @transform_4, window_bounds = array<i64: 1>}, {transform_indices = @transform_5, window_bounds = array<i64: 1, 5120>}]} {
    %c0 = arith.constant 0 : index
    %c0_0 = arith.constant 0 : index
    %0 = vector.load %arg1[%c0, %c0_0] : memref<1x5120xf32, #tpu.memory_space<vmem>>, vector<1x5120xf32>
    %c0_1 = arith.constant 0 : index
    %c0_2 = arith.constant 0 : index
    %1 = vector.load %arg3[%c0_1, %c0_2] : memref<40x3xf32, #tpu.memory_space<vmem>>, vector<40x1xf32>
    %c0_3 = arith.constant 0 : index
    %c1 = arith.constant 1 : index
    %2 = vector.load %arg3[%c0_3, %c1] : memref<40x3xf32, #tpu.memory_space<vmem>>, vector<40x1xf32>
    %c0_4 = arith.constant 0 : index
    %c2 = arith.constant 2 : index
    %3 = vector.load %arg3[%c0_4, %c2] : memref<40x3xf32, #tpu.memory_space<vmem>>, vector<40x1xf32>
    %4 = vector.broadcast %1 : vector<40x1xf32> to vector<40x5120xf32>
    %5 = vector.broadcast %0 : vector<1x5120xf32> to vector<40x5120xf32>
    %6 = arith.mulf %4, %5 : vector<40x5120xf32>
    %7 = vector.broadcast %2 : vector<40x1xf32> to vector<40x5120xf32>
    %8 = arith.addf %6, %7 : vector<40x5120xf32>
    %9 = math.tanh %8 : vector<40x5120xf32>
    %c0_5 = arith.constant 0 : index
    %c0_6 = arith.constant 0 : index
    %10 = vector.load %arg2[%c0_5, %c0_6] : memref<40x40xf32, #tpu.memory_space<vmem>>, vector<40x40xf32>
    %cst = arith.constant dense<0.000000e+00> : vector<40x5120xf32>
    %11 = tpu.matmul %10, %9, %cst {dimension_numbers = #tpu.dot_dimension_numbers<[1], [0], [0], [1], [0, 0, 1, 1], [], []>} : vector<40x40xf32>, vector<40x5120xf32>, vector<40x5120xf32> -> vector<40x5120xf32>
    %12 = vector.broadcast %3 : vector<40x1xf32> to vector<40x5120xf32>
    %13 = arith.addf %11, %12 : vector<40x5120xf32>
    %14 = math.tanh %13 : vector<40x5120xf32>
    %c0_7 = arith.constant 0 : index
    %c0_8 = arith.constant 0 : index
    %15 = vector.load %arg4[%c0_7, %c0_8] : memref<1x40xf32, #tpu.memory_space<vmem>>, vector<1x40xf32>
    %cst_9 = arith.constant dense<0.000000e+00> : vector<1x5120xf32>
    %16 = tpu.matmul %15, %14, %cst_9 {dimension_numbers = #tpu.dot_dimension_numbers<[1], [0], [0], [1], [0, 0, 1, 1], [], []>} : vector<1x40xf32>, vector<40x5120xf32>, vector<1x5120xf32> -> vector<1x5120xf32>
    %c0_10 = arith.constant 0 : index
    %17 = memref.load %arg5[%c0_10] : memref<1xf32, #tpu.memory_space<smem>>
    %18 = vector.broadcast %17 : f32 to vector<1x5120xf32>
    %19 = arith.addf %16, %18 : vector<1x5120xf32>
    %c0_11 = arith.constant 0 : index
    %c0_12 = arith.constant 0 : index
    %20 = vector.load %arg6[%c0_11, %c0_12] : memref<1x5120xf32, #tpu.memory_space<vmem>>, vector<1x5120xf32>
    tpu.vector_store %arg6[%c0_11, %c0_12], %19 {strides = array<i32>} : memref<1x5120xf32, #tpu.memory_space<vmem>>, vector<1x5120xf32>,
    return
  }
  func.func @transform_0(%arg0: i32) -> (i32, i32) {
    %c0_i32 = arith.constant 0 : i32
    %c0_i32_0 = arith.constant 0 : i32
    return %c0_i32, %arg0 : i32, i32
  }
  func.func @transform_1(%arg0: i32) -> (i32, i32) {
    %c0_i32 = arith.constant 0 : i32
    %c0_i32_0 = arith.constant 0 : i32
    %c0_i32_1 = arith.constant 0 : i32
    return %c0_i32, %c0_i32_0 : i32, i32
  }
  func.func @transform_2(%arg0: i32) -> (i32, i32) {
    %c0_i32 = arith.constant 0 : i32
    %c0_i32_0 = arith.constant 0 : i32
    %c0_i32_1 = arith.constant 0 : i32
    return %c0_i32, %c0_i32_0 : i32, i32
  }
  func.func @transform_3(%arg0: i32) -> (i32, i32) {
    %c0_i32 = arith.constant 0 : i32
    %c0_i32_0 = arith.constant 0 : i32
    %c0_i32_1 = arith.constant 0 : i32
    return %c0_i32, %c0_i32_0 : i32, i32
  }
  func.func @transform_4(%arg0: i32) -> i32 {
    %c0_i32 = arith.constant 0 : i32
    %c0_i32_0 = arith.constant 0 : i32
    return %c0_i32 : i32
  }
  func.func @transform_5(%arg0: i32) -> (i32, i32) {
    %c0_i32 = arith.constant 0 : i32
    %c0_i32_0 = arith.constant 0 : i32
    return %c0_i32, %arg0 : i32, i32
  }
}

</mosaic_0001>

<bundles_post_ra>
// kernel: tpu_custom_call.1
= control target key start
LH: loop header
LB: loop body
LE: loop exit
PB: predicated region body
PF: predicated region fallthrough
CT: control target
= control target key end

     0   :  { %s8246_s0 = inlined_call_operand.hbm [shape: f32[1,10240], index: 0, kind: input, shape index: {}]   ;;  %s8247_s1 = inlined_call_operand.vmem [shape: f32[40,40], index: 1, kind: input, shape index: {}]   ;;  %s8248_s2 = inlined_call_operand.vmem [shape: f32[40,3], index: 2, kind: input, shape index: {}]   ;;  %s8249_s3 = inlined_call_operand.vmem [shape: f32[1,40], index: 3, kind: input, shape index: {}]   ;;  %s8250_s4 = inlined_call_operand.<no memory space> [shape: f32[1], index: 4, kind: input, shape index: {}]   ;;  %s8251_s5 = inlined_call_operand.hbm [shape: f32[1,10240], index: 5, kind: output, shape index: {}]  }
   0x1   :  { %10 = sst [smem:[#allocation2]] %s8250_s4 }
   0x2   :  { %11 = vsyncpa [#allocation4], 0 }
   0x3   :  { %13 = vsyncpa [#allocation4 + $0x1], 0 }
   0x4   :  { %14 = vsyncpa [#allocation5], 0 }
   0x5   :  { %16 = vsyncpa [#allocation5 + $0x1], 0  ;;  %s6513_s20 = smov 0   ;;  %s6515_s21 = smov 0  }
   0x6   :  { %s6517_s22 = smov 0   ;;  %s6519_s23 = smov 0  }
   0x7 LB: > { %s6534_s4 = sadd.s32 4294967295, %s6471_s23   ;;  %s5051_s24 = sadd.s32 4294967294, %s6471_s23   ;;  %s6471_s23 = sphi %s6519_s23, %s8265_s23   ;;  %s6467_s22 = sphi %s6517_s22, %s8264_s22   ;;  %s6463_s21 = sphi %s6515_s21, %s8263_s21   ;;  %s6459_s20 = sphi %s6513_s20, %s8262_s20  }
   0x8   : > { %s6538_s25 = sadd.s32 1, %s6471_s23   ;;  %s29_s26 = sadd.s32 1, %s6467_s22 }
   0x9   : > { %s26_s27 = ssub.s32 %s6471_s23, %s6538_s25  ;;  %p36_p0 = scmp.ne.s32.totalorder %s6467_s22, %s6463_s21 }
   0xa   : > { %p27_p1 = scmp.eq.s32.totalorder %s26_s27, 0  ;;  %p37_p2 = scmp.eq.s32.totalorder %s6471_s23, 0 }
   0xb   : > { %p42_p3 = scmp.ne.s32.totalorder %s6463_s21, %s6459_s20  ;;  %p43_p4 = scmp.eq.s32.totalorder %s6534_s4, 0 }
   0xc   : > { %s6550_s28 = scalar_select %p27_p1, %s6467_s22, %s29_s26  }
   0xd   : > { %p38_p5 = por %p37_p2, %p36_p0  ;;  %p6552_p6 = por %p43_p4, %p42_p3 }
   0xe   : > { %p150_p7 = scmp.eq.s32.totalorder %s6534_s4, 1  ;;  %p156_p8 = scmp.eq.s32.totalorder %s5051_s24, 1 }
   0xf   : > { %p5515_p10 = scmp.lt.s32.totalorder %s6471_s23, 2  ;;  %s188_s7 = sand.u32 1, %s6467_s22  }
  0x10   : > { %p6559_p11 = por %p150_p7, %p36_p0  ;;  %p6563_p12 = por %p156_p8, %p42_p3 }
  0x11   : > { %s5179_s8 = smul.u32 640, %s6471_s23  ;;  %p6574_p13 = pnand %p5515_p10, %p38_p5 }
  0x12   : > { %s8254_s30 = scalar_select %p6559_p11, 1, 0 }
  0x13   : > { %s8255_s6 = scalar_select %p6563_p12, 1, 0 }
  0x14   : > { %s5501_s9 = smul.u32 40, %s188_s7  ;;  %s6572_s12 = scalar_lea.hbm %s8246_s0, %s5179_s8 }
  0x15   : > { %s189_s16 = scalar_lea.sflag [#allocation4], %s188_s7  ;;  %s6375_s17 = scalar_lea.hbm %s6572_s12, 640 }
  0x16   : > { %s192_s14 = scalar_lea.vmem [#allocation3], %s5501_s9  ;;  %p6376_p2 = scmp.ne.s32.totalorder %s6572_s12, %s6375_s17 }
  0x17   : > { %s200_s15 = sshll.u32 %s192_s14, 4  ;;  %p6377_p3 = pneg %p6574_p13  ;;  %s6579_s15 = int_to_ptr.vmem [resolvable:$true] %s200_s15 }
  0x18   : > { %s6380_s24 = scalar_lea.hbm %s8246_s0, 1280  ;;  %p6381_p7 = scmp.lt.u32.totalorder %s6572_s12, %s8246_s0 }
  0x19   : > { %p6378_p4 = pnand %p6377_p3, %p6376_p2  ;;  %p6382_p8 = scmp.lt.u32.totalorder %s6380_s24, %s6375_s17 }
  0x1a   : > { %p6384_p9 = scmp.lt.u32.totalorder %s6375_s17, %s6572_s12 }
  0x1b   : > { %p6379_p5 = pneg %p6378_p4  ;;  %p6383_p10 = por %p6382_p8, %p6381_p7 }
  0x1d   : > { %p6385_p0 = por %p6384_p9, %p6383_p10 }
  0x1f   : > { %p6386_p1 = pnand %p6385_p0, %p6379_p5 }
  0x21   : > { %6389 = shalt.err (!%p6386_p1)
}
  0x22   : > { %s6390_s7 = scalar_lea.vmem %s6579_s15, 640  ;;  %s6473_s8 = smov [#allocation3]  }
  0x23   : > { %p6391_p2 = scmp.ne.s32.totalorder %s6579_s15, %s6390_s7  ;;  %s6395_s9 = sshll.u32 %s6473_s8, 4  ;;  %s6396_s9 = int_to_ptr.vmem [resolvable:$false] %s6395_s9 }
  0x24   : > { %s6397_s10 = scalar_lea.vmem %s6396_s9, 1280  ;;  %p6398_p11 = scmp.lt.s32.totalorder %s6579_s15, %s6396_s9 }
  0x25   : > { %p6393_p4 = pnand %p6391_p2, %p6377_p3  ;;  %p6399_p7 = scmp.lt.s32.totalorder %s6397_s10, %s6390_s7 }
  0x27   : > { %p6394_p12 = pneg %p6393_p4  ;;  %p6400_p8 = por %p6399_p7, %p6398_p11 }
  0x29   : > { %p6401_p9 = pnand %p6400_p8, %p6394_p12 }
  0x2b   : > { %6404 = shalt.err (!%p6401_p9)
}
  0x2c   : > { %5510 = dma.hbm_to_vmem [thread:$0]  (!%p6574_p13), %s6572_s12, 640, %s6579_s15, %s189_s16  }
  0x2d   : > { %p8257_p0 = scmp.lt.s32.totalorder %s6471_s23, 3  ;;  %p8258_p1 = scmp.ge.s32.totalorder %s6471_s23, 1 }
  0x2f   : > { %p206_p3 = pnand %p8258_p1, %p8257_p0 }
  0x30   : > { %s6612_s11 = sand.u32 (!%p206_p3), 1, %s6463_s21  }
  0x31   : > { %209 = sbr.rel (%p206_p3) target bundleno = 892 (0x37c), region = 40  ;;  %s212_s17 = scalar_lea.sflag (!%p206_p3), [#allocation4], %s6612_s11 }
  0x32   : > { %s5502_s14 = smul.u32 (!%p206_p3), 40, %s6612_s11 }
  0x34   : > { %s6618_s13 = scalar_lea.vmem (!%p206_p3), [#allocation3], %s5502_s14 }
  0x38   : > { %6450 = dma.done.wait (%p6552_p6), %s212_s17, 640  }
  0x39   : > { %6452 = vsyncadd (%p6552_p6), %s212_s17, 4294966656  ;;  %v6474_v0 = vmov 1   ;;  %v6475_v1 = vmov 0   ;;  %v6627_v2 = vld [vmem:[%s8248_s2] sm:$0xff]  ;;  %v250_v3 = vld [vmem:[%s8248_s2 + $0x8] sm:$0xff]  ;;  %v6476_v7 = vmov 0.0   ;;  %v284_v8 = vlaneseq }
  0x3a   : > { %5555 = vset.pattern.permute.xlu1 %v6474_v0  ;;  %5554 = vset.pattern.permute.xlu0 %v6475_v1  ;;  %v251_v4 = vld [vmem:[%s8248_s2 + $0x10] sm:$0xff]  ;;  %v252_v5 = vld [vmem:[%s8248_s2 + $0x18] sm:$0xff]  ;;  %v253_v6 = vld [vmem:[%s8248_s2 + $0x20] sm:$0xff]  ;;  %vm1129_vm0 = vcmask 326656   ;;  %s3246_s19 = sld [smem:[#allocation2]]  ;;  %s8134_s24 = scalar_lea.vmem [#allocation6], %s5502_s14 }
  0x3b   : > { %685 = vperm.xlu1 %5555, %v6627_v2   ;;  %256 = vperm.xlu0 %5554, %v6627_v2   ;;  %v6645_v9 = vshrl.u32 %v284_v8, 7  ;;  %v6660_v14 = vld [vmem:[%s6618_s13] sm:$0xff]  ;;  %s5180_s14 = smul.u32 640, %s6534_s4  ;;  %s4981_s26 = sshll.u32 %s8134_s24, 4  ;;  %s8203_s26 = int_to_ptr.vmem [resolvable:$true] %s4981_s26 }
  0x3c   : > { %1209 = vmatprep.mubr.f32.mxu0 %v6476_v7  ;;  %1304 = vmatprep.mubr.f32.mxu1 %v6476_v7  ;;  %s4967_s8 = scalar_lea.sflag [#allocation5], %s6612_s11  ;;  %s6405_s9 = scalar_lea.vmem %s8203_s26, 640 }
  0x3d   : > { %v6648_v10 = vsub.s32 1, %v6645_v9  ;;  %v6651_v11 = vsub.s32 3, %v6645_v9  ;;  %v6654_v12 = vsub.s32 0, %v6645_v9  ;;  %v6657_v13 = vsub.s32 2, %v6645_v9  ;;  %p6406_p6 = scmp.ne.s32.totalorder %s8203_s26, %s6405_s9  ;;  %p8259_p11 = scmp.ne.s32.totalorder %s8254_s30, 0 }
  0x3e   : > { %v6679_v19 = vsub.s32 5, %v6645_v9  ;;  %v6724_v44 = vsub.s32 7, %v6645_v9  ;;  %v6727_v45 = vsub.s32 4, %v6645_v9  ;;  %v6745_v53 = vsub.s32 6, %v6645_v9  ;;  %s6479_s4 = smov [#allocation6]  }
  0x3f   : > { %689 = vperm.xlu1 %5555, %v250_v3   ;;  %261 = vperm.xlu0 %5554, %v250_v3   ;;  %v6664_v15 = vrot.slane %v6660_v14, %v6648_v10  ;;  %v6668_v16 = vrot.slane %v6660_v14, %v6651_v11  ;;  %v6672_v17 = vrot.slane %v6660_v14, %v6654_v12  ;;  %p6407_p12 = pnand %p6406_p6, %p8259_p11  ;;  %s6409_s10 = sshll.u32 %s6479_s4, 4  ;;  %s6410_s10 = int_to_ptr.vmem [resolvable:$false] %s6409_s10 }
  0x40   : > { %v6676_v18 = vrot.slane %v6660_v14, %v6657_v13  ;;  %v6695_v26 = vrot.slane %v6660_v14, %v6679_v19  ;;  %v6742_v52 = vrot.slane %v6660_v14, %v6724_v44  ;;  %v6755_v58 = vrot.slane %v6660_v14, %v6727_v45  ;;  %s6411_s17 = scalar_lea.vmem %s6410_s10, 1280  ;;  %p6412_p5 = scmp.lt.s32.totalorder %s8203_s26, %s6410_s10 }
  0x41   : > { %p6408_p13 = pneg %p6407_p12  ;;  %p6413_p10 = scmp.lt.s32.totalorder %s6411_s17, %s6405_s9 }
  0x43   : > { %5556 = vset.pattern.permute.xlu1 %v6475_v1  ;;  %266 = vperm.xlu0 %5554, %v251_v4   ;;  %p6414_p2 = por %p6413_p10, %p6412_p5 }
  0x44   : > { %271 = vperm.xlu1 %5556, %v252_v5  }
  0x45   : > { %p6415_p4 = pnand %p6414_p2, %p6408_p13 }
  0x47   : > { %5557 = vset.pattern.permute.xlu0 %v6474_v0 }
  0x48   : > { %5558 = vset.pattern.permute.xlu1 %v6474_v0  ;;  %693 = vperm.xlu0 %5557, %v251_v4  }
  0x49   : > { %697 = vperm.xlu1 %5558, %v252_v5  }
  0x4c   : > { %701 = vperm.xlu0 %5557, %v253_v6  }
  0x4d   : > { %5559 = vset.pattern.permute.xlu1 %v6475_v1 }
  0x4e   : > { %276 = vperm.xlu1 %5559, %v253_v6   ;;  %v6769_v6 = vrot.slane %v6660_v14, %v6745_v53 }
  0xba   : > { %v6681_v20 = vpop.permute.xlu1 %685  ;;  %v6683_v21 = vpop.permute.xlu0 %256 }
  0xbb   : > { %v485_v22 = vmul.f32 %v6664_v15, %v6683_v21  ;;  %v487_v23 = vmul.f32 %v6668_v16, %v6683_v21  ;;  %v484_v24 = vmul.f32 %v6672_v17, %v6683_v21  ;;  %v486_v25 = vmul.f32 %v6676_v18, %v6683_v21 }
  0xbc   : > { %v489_v37 = vmul.f32 %v6695_v26, %v6683_v21 }
  0xbd   : > { %v705_v27 = vadd.f32 %v6681_v20, %v485_v22  ;;  %v707_v28 = vadd.f32 %v6681_v20, %v487_v23  ;;  %v704_v29 = vadd.f32 %v6681_v20, %v484_v24  ;;  %v706_v32 = vadd.f32 %v6681_v20, %v486_v25 }
  0xbe   : > { %v6700_v30 = vpop.permute.xlu1 %689  ;;  %v6702_v31 = vpop.permute.xlu0 %261  ;;  %v709_v46 = vadd.f32 %v6681_v20, %v489_v37  ;;  %v491_v23 = vmul.f32 %v6742_v52, %v6683_v21  ;;  %v488_v24 = vmul.f32 %v6755_v58, %v6683_v21 }
  0xbf   : > { %v525_v33 = vmul.f32 %v6664_v15, %v6702_v31  ;;  %5562 = vtanh.f32 %v705_v27  ;;  %v527_v34 = vmul.f32 %v6668_v16, %v6702_v31  ;;  %v524_v35 = vmul.f32 %v6672_v17, %v6702_v31 }
  0xc0   : > { %5564 = vtanh.f32 %v707_v28  ;;  %v526_v36 = vmul.f32 %v6676_v18, %v6702_v31  ;;  %v529_v14 = vmul.f32 %v6695_v26, %v6702_v31 }
  0xc1   : > { %v745_v38 = vadd.f32 %v6700_v30, %v525_v33  ;;  %v747_v39 = vadd.f32 %v6700_v30, %v527_v34  ;;  %v744_v40 = vadd.f32 %v6700_v30, %v524_v35  ;;  %5566 = vtanh.f32 %v704_v29 }
  0xc2   : > { %v6718_v41 = vpop.permute.xlu0 %266  ;;  %v746_v42 = vadd.f32 %v6700_v30, %v526_v36  ;;  %5568 = vtanh.f32 %v706_v32  ;;  %v531_v29 = vmul.f32 %v6742_v52, %v6702_v31 }
  0xc3   : > { %v6721_v43 = vpop.permute.xlu1 %271  ;;  %5570 = vtanh.f32 %v745_v38  ;;  %v565_v47 = vmul.f32 %v6664_v15, %v6718_v41  ;;  %v567_v48 = vmul.f32 %v6668_v16, %v6718_v41  ;;  %v564_v57 = vmul.f32 %v6672_v17, %v6718_v41 }
  0xc4   : > { %5572 = vtanh.f32 %v747_v39  ;;  %v605_v50 = vmul.f32 %v6664_v15, %v6721_v43  ;;  %v607_v51 = vmul.f32 %v6668_v16, %v6721_v43  ;;  %v604_v62 = vmul.f32 %v6672_v17, %v6721_v43 }
  0xc5   : > { %5574 = vtanh.f32 %v744_v40  ;;  %v566_v1 = vmul.f32 %v6676_v18, %v6718_v41  ;;  %v606_v5 = vmul.f32 %v6676_v18, %v6721_v43 }
  0xc6   : > { %5576 = vtanh.f32 %v746_v42 }
  0xc7   : > { %v6734_v49 = vpop.permute.xlu0 %693  ;;  %5578 = vtanh.f32 %v709_v46 }
  0xc8   : > { %v6747_v54 = vpop.permute.xlu1 %697  ;;  %v785_v55 = vadd.f32 %v6734_v49, %v565_v47  ;;  %v787_v56 = vadd.f32 %v6734_v49, %v567_v48  ;;  %v784_v0 = vadd.f32 %v6734_v49, %v564_v57  ;;  %v786_v22 = vadd.f32 %v6734_v49, %v566_v1 }
  0xc9   : > { %v5563_v59 = vpop.eup %5562  ;;  %v825_v60 = vadd.f32 %v6747_v54, %v605_v50  ;;  %v827_v61 = vadd.f32 %v6747_v54, %v607_v51  ;;  %v824_v4 = vadd.f32 %v6747_v54, %v604_v62  ;;  %v826_v28 = vadd.f32 %v6747_v54, %v606_v5 }
  0xca   : > { %v5565_v63 = vpop.eup %5564  ;;  %5580 = vtanh.f32 %v785_v55  ;;  %v711_v55 = vadd.f32 %v6681_v20, %v491_v23  ;;  %v708_v62 = vadd.f32 %v6681_v20, %v488_v24 }
  0xcb   : > { %v5567_v3 = vpop.eup %5566  ;;  %5582 = vtanh.f32 %v825_v60  ;;  %v6787_v37 = vpop.permute.xlu0 %701  ;;  %v530_v60 = vmul.f32 %v6769_v6, %v6702_v31 }
  0xcc   : > { %v5569_v8 = vpop.eup %5568  ;;  %5584 = vtanh.f32 %v787_v56  ;;  %v490_v56 = vmul.f32 %v6769_v6, %v6683_v21 }
  0xcd   : > { %v5571_v25 = vpop.eup %5570  ;;  %v6776_v27 = vpop.permute.xlu1 %276  ;;  %5586 = vtanh.f32 %v827_v61  ;;  %v750_v24 = vadd.f32 %v6700_v30, %v530_v60 }
  0xce   : > { %v5573_v32 = vpop.eup %5572  ;;  %v5181_v33 = vpack.c.bf16 %v5571_v25, %v5563_v59  ;;  %5588 = vtanh.f32 %v784_v0  ;;  %v645_v34 = vmul.f32 %v6664_v15, %v6776_v27  ;;  %v647_v35 = vmul.f32 %v6668_v16, %v6776_v27 }
  0xcf   : > { %v5575_v36 = vpop.eup %5574  ;;  %v5189_v38 = vpack.c.bf16 %v5573_v32, %v5565_v63  ;;  %5590 = vtanh.f32 %v824_v4  ;;  %v644_v39 = vmul.f32 %v6672_v17, %v6776_v27  ;;  %v646_v40 = vmul.f32 %v6676_v18, %v6776_v27 }
  0xd0   : > { %v5577_v42 = vpop.eup %5576  ;;  %5182 = vmatprep.subr.bf16.mxu0 %v5181_v33  ;;  %v5183_v46 = vpack.c.bf16 %v5575_v36, %v5567_v3  ;;  %5592 = vtanh.f32 %v786_v22  ;;  %v865_v15 = vadd.f32 %v6787_v37, %v645_v34  ;;  %v867_v47 = vadd.f32 %v6787_v37, %v647_v35  ;;  %v6811_v3 = vld [vmem:[%s6618_s13 + $0x8] sm:$0xff] }
  0xd1   : > { %5190 = vmatprep.subr.bf16.mxu1 %v5189_v38  ;;  %v5191_v16 = vpack.c.bf16 %v5577_v42, %v5569_v8  ;;  %5594 = vtanh.f32 %v826_v28  ;;  %v864_v48 = vadd.f32 %v6787_v37, %v644_v39  ;;  %v866_v50 = vadd.f32 %v6787_v37, %v646_v40  ;;  %v6800_v51 = vpop.eup %5578 }
  0xd2   : > { %5184 = vmatpush1.bf16.msra.mxu0 %v5183_v46  ;;  %5596 = vtanh.f32 %v865_v15  ;;  %v749_v17 = vadd.f32 %v6700_v30, %v529_v14  ;;  %v528_v18 = vmul.f32 %v6755_v58, %v6702_v31  ;;  %v751_v59 = vadd.f32 %v6700_v30, %v531_v29 }
  0xd3   : > { %5192 = vmatpush1.bf16.msra.mxu1 %v5191_v16  ;;  %5598 = vtanh.f32 %v867_v47  ;;  %v710_v5 = vadd.f32 %v6681_v20, %v490_v56  ;;  %v569_v8 = vmul.f32 %v6695_v26, %v6718_v41  ;;  %v609_v25 = vmul.f32 %v6695_v26, %v6721_v43 }
  0xd4   : > { %v5581_v57 = vpop.eup %5580  ;;  %5600 = vtanh.f32 %v864_v48  ;;  %v748_v1 = vadd.f32 %v6700_v30, %v528_v18  ;;  %v571_v29 = vmul.f32 %v6742_v52, %v6718_v41  ;;  %v6824_v32 = vrot.slane %v6811_v3, %v6648_v10 }
  0xd5   : > { %v5583_v61 = vpop.eup %5582  ;;  %5602 = vtanh.f32 %v866_v50  ;;  %v789_v14 = vadd.f32 %v6734_v49, %v569_v8  ;;  %v829_v35 = vadd.f32 %v6747_v54, %v609_v25  ;;  %v611_v36 = vmul.f32 %v6742_v52, %v6721_v43 }
  0xd6   : > { %v5585_v63 = vpop.eup %5584  ;;  %v5185_v0 = vpack.c.bf16 %v5583_v61, %v5581_v57  ;;  %5604 = vtanh.f32 %v749_v17  ;;  %v791_v39 = vadd.f32 %v6734_v49, %v571_v29  ;;  %v568_v40 = vmul.f32 %v6755_v58, %v6718_v41 }
  0xd7   : > { %v5587_v4 = vpop.eup %5586  ;;  %5606 = vtanh.f32 %v711_v55  ;;  %v831_v15 = vadd.f32 %v6747_v54, %v611_v36  ;;  %v608_v47 = vmul.f32 %v6755_v58, %v6721_v43  ;;  %v570_v50 = vmul.f32 %v6769_v6, %v6718_v41  ;;  %v6843_v55 = vld [vmem:[%s8247_s1] sm:$0xff] }
  0xd8   : > { %v5589_v22 = vpop.eup %5588  ;;  %5186 = vmatprep.subr.bf16.mxu0 %v5185_v0  ;;  %v5193_v23 = vpack.c.bf16 %v5587_v4, %v5585_v63  ;;  %5608 = vtanh.f32 %v751_v59  ;;  %v788_v48 = vadd.f32 %v6734_v49, %v568_v40  ;;  %v649_v17 = vmul.f32 %v6695_v26, %v6776_v27 }
  0xd9   : > { %v5591_v28 = vpop.eup %5590  ;;  %5610 = vtanh.f32 %v708_v62  ;;  %v828_v56 = vadd.f32 %v6747_v54, %v608_v47  ;;  %v610_v57 = vmul.f32 %v6769_v6, %v6721_v43  ;;  %v651_v59 = vmul.f32 %v6742_v52, %v6776_v27 }
  0xda   : > { %v5593_v33 = vpop.eup %5592  ;;  %5194 = vmatprep.subr.bf16.mxu1 %v5193_v23  ;;  %v5187_v34 = vpack.c.bf16 %v5591_v28, %v5589_v22  ;;  %5612 = vtanh.f32 %v748_v1  ;;  %v790_v26 = vadd.f32 %v6734_v49, %v570_v50  ;;  %v648_v61 = vmul.f32 %v6755_v58, %v6776_v27 }
  0xdb   : > { %v5595_v38 = vpop.eup %5594  ;;  %5614 = vtanh.f32 %v710_v5  ;;  %v6855_v62 = vrot.slane %v6811_v3, %v6651_v11  ;;  %v830_v0 = vadd.f32 %v6747_v54, %v610_v57  ;;  %v650_v52 = vmul.f32 %v6769_v6, %v6776_v27  ;;  %v6874_v6 = vld [vmem:[%s8247_s1 + $0x8] sm:$0xff] }
  0xdc   : > { %v5597_v42 = vpop.eup %5596  ;;  %5188 = vmatpush1.bf16.msra.mxu0 %v5187_v34  ;;  %v5195_v46 = vpack.c.bf16 %v5595_v38, %v5593_v33  ;;  %5616 = vtanh.f32 %v750_v24  ;;  %v6862_v1 = vrot.slane %v6811_v3, %v6654_v12  ;;  %v869_v5 = vadd.f32 %v6787_v37, %v649_v17 }
  0xdd   : > { %v5599_v16 = vpop.eup %5598  ;;  %1153 = vmatprep.subr.mxu0 %v5597_v42  ;;  %5618 = vtanh.f32 %v789_v14  ;;  %v493_v8 = vmul.f32 %v6824_v32, %v6683_v21  ;;  %v871_v23 = vadd.f32 %v6787_v37, %v651_v59  ;;  %v6881_v24 = vrot.slane %v6811_v3, %v6657_v13 }
  0xde   : > { %v5601_v18 = vpop.eup %5600  ;;  %5196 = vmatpush1.bf16.msra.mxu1 %v5195_v46  ;;  %5620 = vtanh.f32 %v829_v35  ;;  %v868_v14 = vadd.f32 %v6787_v37, %v648_v61  ;;  %v495_v29 = vmul.f32 %v6855_v62, %v6683_v21  ;;  %v870_v34 = vadd.f32 %v6787_v37, %v650_v52  ;;  %v6901_v46 = vld [vmem:[%s8247_s1 + $0x10] sm:$0xff] }
  0xdf   : > { %v5603_v60 = vpop.eup %5602  ;;  %1248 = vmatprep.subr.mxu1 %v5599_v16  ;;  %5622 = vtanh.f32 %v791_v39  ;;  %v535_v35 = vmul.f32 %v6855_v62, %v6702_v31  ;;  %v713_v39 = vadd.f32 %v6681_v20, %v493_v8  ;;  %v492_v40 = vmul.f32 %v6862_v1, %v6683_v21 }
  0xe0   : > { %v5605_v63 = vpop.eup %5604  ;;  %1154 = vmatpush1.msra.mxu0 %v5601_v18  ;;  %5624 = vtanh.f32 %v831_v15  ;;  %v532_v47 = vmul.f32 %v6862_v1, %v6702_v31  ;;  %v715_v50 = vadd.f32 %v6681_v20, %v495_v29  ;;  %v494_v17 = vmul.f32 %v6881_v24, %v6683_v21 }
  0xe1   : > { %v5607_v4 = vpop.eup %5606  ;;  %5056 = vmatmul.mubr.msk.f32.vlgmr.msra.gmra.mrb[0].mxu0 %vm1129_vm0, %v6843_v55  ;;  %v5197_v58 = vpack.c.bf16 %v5605_v63, %v6800_v51  ;;  %5626 = vtanh.f32 %v788_v48  ;;  %v533_v51 = vmul.f32 %v6824_v32, %v6702_v31  ;;  %v534_v57 = vmul.f32 %v6881_v24, %v6702_v31  ;;  %v6922_v63 = vld [vmem:[%s8247_s1 + $0x18] sm:$0xff] }
  0xe2   : > { %v5609_v22 = vpop.eup %5608  ;;  %1249 = vmatpush1.msra.mxu1 %v5603_v60  ;;  %1215 = vmatprep.mubr.f32.mxu0 %v6476_v7  ;;  %5628 = vtanh.f32 %v828_v56  ;;  %v755_v56 = vadd.f32 %v6700_v30, %v535_v35  ;;  %v615_v35 = vmul.f32 %v6855_v62, %v6721_v43 }
  0xe3   : > { %v5611_v25 = vpop.eup %5610  ;;  %5061 = vmatmul.mubr.msk.f32.vlgmr.msra.gmra.mrb[0].mxu1 %vm1129_vm0, %v6843_v55  ;;  %5198 = vmatprep.subr.bf16.mxu0 %v5197_v58  ;;  %v5205_v28 = vpack.c.bf16 %v5609_v22, %v5607_v4  ;;  %5630 = vtanh.f32 %v790_v26  ;;  %v753_v15 = vadd.f32 %v6700_v30, %v533_v51  ;;  %v712_v26 = vadd.f32 %v6681_v20, %v492_v40 }
  0xe4   : > { %v5613_v33 = vpop.eup %5612  ;;  %1310 = vmatprep.mubr.f32.mxu1 %v6476_v7  ;;  %5632 = vtanh.f32 %v830_v0  ;;  %v752_v0 = vadd.f32 %v6700_v30, %v532_v47  ;;  %v714_v58 = vadd.f32 %v6681_v20, %v494_v17  ;;  %v754_v22 = vadd.f32 %v6700_v30, %v534_v57 }
  0xe5   : > { %v5615_v36 = vpop.eup %5614  ;;  %5206 = vmatprep.subr.bf16.mxu1 %v5205_v28  ;;  %v5199_v38 = vpack.c.bf16 %v5613_v33, %v5611_v25  ;;  %5057 = vmatmul.mubr.msk.f32.gmra.mrb[2].mxu0 %vm1129_vm0, %v6874_v6  ;;  %5634 = vtanh.f32 %v869_v5  ;;  %v573_v5 = vmul.f32 %v6824_v32, %v6718_v41  ;;  %v6943_v33 = vld [vmem:[%s8247_s1 + $0x20] sm:$0xff]  ;;  %v572_v40 = vmul.f32 %v6862_v1, %v6718_v41 }
  0xe6   : > { %v5617_v42 = vpop.eup %5616  ;;  %5636 = vtanh.f32 %v871_v23  ;;  %1221 = vmatprep.mubr.f32.mxu0 %v6476_v7  ;;  %v613_v23 = vmul.f32 %v6824_v32, %v6721_v43  ;;  %v612_v47 = vmul.f32 %v6862_v1, %v6721_v43  ;;  %v574_v17 = vmul.f32 %v6881_v24, %v6718_v41 }
  0xe7   : > { %v5619_v16 = vpop.eup %5618  ;;  %5200 = vmatpush1.bf16.msra.mxu0 %v5199_v38  ;;  %v5207_v48 = vpack.c.bf16 %v5617_v42, %v5615_v36  ;;  %5062 = vmatmul.mubr.msk.f32.gmra.mrb[2].mxu1 %vm1129_vm0, %v6874_v6  ;;  %5638 = vtanh.f32 %v868_v14  ;;  %v793_v28 = vadd.f32 %v6734_v49, %v573_v5  ;;  %v575_v14 = vmul.f32 %v6855_v62, %v6718_v41 }
  0xe8   : > { %v5621_v18 = vpop.eup %5620  ;;  %1316 = vmatprep.mubr.f32.mxu1 %v6476_v7  ;;  %5640 = vtanh.f32 %v870_v34  ;;  %v833_v34 = vadd.f32 %v6747_v54, %v613_v23  ;;  %v832_v57 = vadd.f32 %v6747_v54, %v612_v47 }
  0xe9   : > { %v5623_v59 = vpop.eup %5622  ;;  %5208 = vmatpush1.bf16.msra.mxu1 %v5207_v48  ;;  %v5201_v60 = vpack.c.bf16 %v5621_v18, %v5619_v16  ;;  %5058 = vmatmul.mubr.msk.f32.gmra.mrb[4].mxu0 %vm1129_vm0, %v6901_v46  ;;  %5642 = vtanh.f32 %v713_v39  ;;  %v795_v39 = vadd.f32 %v6734_v49, %v575_v14  ;;  %v6959_v16 = vrot.slane %v6811_v3, %v6679_v19 }
  0xea   : > { %v5625_v61 = vpop.eup %5624  ;;  %5644 = vtanh.f32 %v753_v15  ;;  %1227 = vmatprep.mubr.f32.mxu0 %v6476_v7  ;;  %v835_v15 = vadd.f32 %v6747_v54, %v615_v35  ;;  %v653_v18 = vmul.f32 %v6824_v32, %v6776_v27  ;;  %v794_v32 = vadd.f32 %v6734_v49, %v574_v17 }
  0xeb   : > { %v5627_v52 = vpop.eup %5626  ;;  %5202 = vmatprep.subr.bf16.mxu0 %v5201_v60  ;;  %v5209_v4 = vpack.c.bf16 %v5625_v61, %v5623_v59  ;;  %5063 = vmatmul.mubr.msk.f32.gmra.mrb[4].mxu1 %vm1129_vm0, %v6901_v46  ;;  %5646 = vtanh.f32 %v715_v50  ;;  %v792_v50 = vadd.f32 %v6734_v49, %v572_v40  ;;  %v614_v59 = vmul.f32 %v6881_v24, %v6721_v43 }
  0xec   : > { %v5629_v8 = vpop.eup %5628  ;;  %5648 = vtanh.f32 %v755_v56  ;;  %1322 = vmatprep.mubr.f32.mxu1 %v6476_v7  ;;  %v655_v60 = vmul.f32 %v6855_v62, %v6776_v27  ;;  %v652_v61 = vmul.f32 %v6862_v1, %v6776_v27 }
  0xed   : > { %v5631_v51 = vpop.eup %5630  ;;  %5210 = vmatprep.subr.bf16.mxu1 %v5209_v4  ;;  %v5203_v25 = vpack.c.bf16 %v5629_v8, %v5627_v52  ;;  %5059 = vmatmul.mubr.msk.f32.gmra.mrb[6].mxu0 %vm1129_vm0, %v6922_v63  ;;  %5650 = vtanh.f32 %v712_v26  ;;  %v834_v62 = vadd.f32 %v6747_v54, %v614_v59  ;;  %v654_v4 = vmul.f32 %v6881_v24, %v6776_v27 }
  0xee   : > { %v5633_v29 = vpop.eup %5632  ;;  %1233 = vmatprep.mubr.f32.mxu0 %v6476_v7  ;;  %5652 = vtanh.f32 %v752_v0  ;;  %v6981_v0 = vrot.slane %v6811_v3, %v6724_v44  ;;  %v873_v8 = vadd.f32 %v6787_v37, %v653_v18  ;;  %v875_v24 = vadd.f32 %v6787_v37, %v655_v60 }
  0xef   : > { %v5635_v36 = vpop.eup %5634  ;;  %5204 = vmatpush1.bf16.msra.mxu0 %v5203_v25  ;;  %v5211_v38 = vpack.c.bf16 %v5633_v29, %v5631_v51  ;;  %5064 = vmatmul.mubr.msk.f32.gmra.mrb[6].mxu1 %vm1129_vm0, %v6922_v63  ;;  %5654 = vtanh.f32 %v714_v58  ;;  %v6989_v58 = vrot.slane %v6811_v3, %v6727_v45  ;;  %v537_v51 = vmul.f32 %v6959_v16, %v6702_v31 }
  0xf0   : > { %v5637_v42 = vpop.eup %5636  ;;  %1343 = vmatprep.subr.mxu0 %v5635_v36  ;;  %1328 = vmatprep.mubr.f32.mxu1 %v6476_v7  ;;  %5656 = vtanh.f32 %v754_v22  ;;  %v497_v22 = vmul.f32 %v6959_v16, %v6683_v21  ;;  %v7002_v25 = vrot.slane %v6811_v3, %v6745_v53  ;;  %v872_v29 = vadd.f32 %v6787_v37, %v652_v61 }
  0xf1   : > { %v5639_v48 = vpop.eup %5638  ;;  %5212 = vmatpush1.bf16.msra.mxu1 %v5211_v38  ;;  %5060 = vmatmul.mubr.msk.f32.gmra.mrb[8].mxu0 %vm1129_vm0, %v6943_v33  ;;  %5658 = vtanh.f32 %v793_v28  ;;  %v874_v36 = vadd.f32 %v6787_v37, %v654_v4  ;;  %v539_v3 = vmul.f32 %v6981_v0, %v6702_v31  ;;  %v757_v47 = vadd.f32 %v6700_v30, %v537_v51  ;;  %v7046_v51 = vld [vmem:[%s6618_s13 + $0x10] sm:$0xff] }
  0xf2   : > { %v5641_v56 = vpop.eup %5640  ;;  %1438 = vmatprep.subr.mxu1 %v5637_v42  ;;  %1399 = vmatprep.mubr.f32.mxu0 %v6476_v7  ;;  %5660 = vtanh.f32 %v833_v34  ;;  %v499_v34 = vmul.f32 %v6981_v0, %v6683_v21  ;;  %v717_v40 = vadd.f32 %v6681_v20, %v497_v22  ;;  %v496_v42 = vmul.f32 %v6989_v58, %v6683_v21 }
  0xf3   : > { %v5643_v26 = vpop.eup %5642  ;;  %1344 = vmatpush1.msra.mxu0 %v5639_v48  ;;  %5065 = vmatmul.mubr.msk.f32.gmra.mrb[8].mxu1 %vm1129_vm0, %v6943_v33  ;;  %5662 = vtanh.f32 %v795_v39  ;;  %v536_v48 = vmul.f32 %v6989_v58, %v6702_v31  ;;  %v759_v59 = vadd.f32 %v6700_v30, %v539_v3  ;;  %v538_v60 = vmul.f32 %v7002_v25, %v6702_v31 }
  0xf4   : > { %v5645_v52 = vpop.eup %5644  ;;  %1494 = vmatprep.mubr.f32.mxu1 %v6476_v7  ;;  %5664 = vtanh.f32 %v835_v15  ;;  %v719_v18 = vadd.f32 %v6681_v20, %v499_v34  ;;  %v716_v61 = vadd.f32 %v6681_v20, %v496_v42  ;;  %v579_v34 = vmul.f32 %v6981_v0, %v6718_v41 }
  0xf5   : > { %v5647_v5 = vpop.eup %5646  ;;  %1439 = vmatpush1.msra.mxu1 %v5641_v56  ;;  %v5213_v1 = vpack.c.bf16 %v5645_v52, %v5643_v26  ;;  %5066 = vmatmul.mubr.msk.f32.vlgmr.msra.gmra.mrb[10].mxu0 %vm1129_vm0, %v6843_v55  ;;  %5666 = vtanh.f32 %v792_v50  ;;  %v498_v56 = vmul.f32 %v7002_v25, %v6683_v21  ;;  %v619_v3 = vmul.f32 %v6981_v0, %v6721_v43 }
  0xf6   : > { %v5649_v23 = vpop.eup %5648  ;;  %1405 = vmatprep.mubr.f32.mxu0 %v6476_v7  ;;  %5668 = vtanh.f32 %v832_v57  ;;  %v799_v42 = vadd.f32 %v6734_v49, %v579_v34 }
  0xf7   : > { %v5651_v28 = vpop.eup %5650  ;;  %5214 = vmatprep.subr.bf16.mxu0 %v5213_v1  ;;  %v5221_v14 = vpack.c.bf16 %v5649_v23, %v5647_v5  ;;  %5071 = vmatmul.mubr.msk.f32.vlgmr.msra.gmra.mrb[10].mxu1 %vm1129_vm0, %v6843_v55  ;;  %5670 = vtanh.f32 %v794_v32  ;;  %v718_v1 = vadd.f32 %v6681_v20, %v498_v56  ;;  %v758_v23 = vadd.f32 %v6700_v30, %v538_v60 }
  0xf8   : > { %v5653_v35 = vpop.eup %5652  ;;  %1500 = vmatprep.mubr.f32.mxu1 %v6476_v7  ;;  %5672 = vtanh.f32 %v834_v62  ;;  %v756_v62 = vadd.f32 %v6700_v30, %v536_v48  ;;  %v839_v48 = vadd.f32 %v6747_v54, %v619_v3  ;;  %v578_v56 = vmul.f32 %v7002_v25, %v6718_v41 }
  0xf9   : > { %v5655_v38 = vpop.eup %5654  ;;  %5222 = vmatprep.subr.bf16.mxu1 %v5221_v14  ;;  %v5215_v39 = vpack.c.bf16 %v5653_v35, %v5651_v28  ;;  %5067 = vmatmul.mubr.msk.f32.gmra.mrb[12].mxu0 %vm1129_vm0, %v6874_v6  ;;  %5674 = vtanh.f32 %v873_v8  ;;  %v577_v8 = vmul.f32 %v6959_v16, %v6718_v41 }
  0xfa   : > { %v5657_v15 = vpop.eup %5656  ;;  %5676 = vtanh.f32 %v875_v24  ;;  %1411 = vmatprep.mubr.f32.mxu0 %v6476_v7  ;;  %v617_v24 = vmul.f32 %v6959_v16, %v6721_v43 }
  0xfb   : > { %v5659_v50 = vpop.eup %5658  ;;  %5216 = vmatpush1.bf16.msra.mxu0 %v5215_v39  ;;  %v5223_v17 = vpack.c.bf16 %v5657_v15, %v5655_v38  ;;  %5072 = vmatmul.mubr.msk.f32.gmra.mrb[12].mxu1 %vm1129_vm0, %v6874_v6  ;;  %5678 = vtanh.f32 %v872_v29  ;;  %v797_v29 = vadd.f32 %v6734_v49, %v577_v8  ;;  %v576_v38 = vmul.f32 %v6989_v58, %v6718_v41 }
  0xfc   : > { %v5661_v57 = vpop.eup %5660  ;;  %1506 = vmatprep.mubr.f32.mxu1 %v6476_v7  ;;  %5680 = vtanh.f32 %v874_v36  ;;  %v837_v36 = vadd.f32 %v6747_v54, %v617_v24  ;;  %v7064_v15 = vrot.slane %v7046_v51, %v6648_v10 }
  0xfd   : > { %v5663_v26 = vpop.eup %5662  ;;  %5224 = vmatpush1.bf16.msra.mxu1 %v5223_v17  ;;  %v5217_v32 = vpack.c.bf16 %v5661_v57, %v5659_v50  ;;  %5068 = vmatmul.mubr.msk.f32.gmra.mrb[14].mxu0 %vm1129_vm0, %v6901_v46  ;;  %5682 = vtanh.f32 %v717_v40  ;;  %v616_v50 = vmul.f32 %v6989_v58, %v6721_v43  ;;  %v796_v17 = vadd.f32 %v6734_v49, %v576_v38 }
  0xfe   : > { %v5665_v52 = vpop.eup %5664  ;;  %5684 = vtanh.f32 %v757_v47  ;;  %1417 = vmatprep.mubr.f32.mxu0 %v6476_v7  ;;  %v618_v57 = vmul.f32 %v7002_v25, %v6721_v43  ;;  %v501_v24 = vmul.f32 %v7064_v15, %v6683_v21 }
  0xff   : > { %v5667_v4 = vpop.eup %5666  ;;  %5218 = vmatprep.subr.bf16.mxu0 %v5217_v32  ;;  %v5225_v5 = vpack.c.bf16 %v5665_v52, %v5663_v26  ;;  %5073 = vmatmul.mubr.msk.f32.gmra.mrb[14].mxu1 %vm1129_vm0, %v6901_v46  ;;  %5686 = vtanh.f32 %v719_v18  ;;  %v836_v26 = vadd.f32 %v6747_v54, %v616_v50  ;;  %v659_v32 = vmul.f32 %v6981_v0, %v6776_v27 }
 0x100   : > { %v5669_v22 = vpop.eup %5668  ;;  %5688 = vtanh.f32 %v759_v59  ;;  %1512 = vmatprep.mubr.f32.mxu1 %v6476_v7  ;;  %v657_v59 = vmul.f32 %v6959_v16, %v6776_v27  ;;  %v798_v16 = vadd.f32 %v6734_v49, %v578_v56 }
 0x101   : > { %v5671_v28 = vpop.eup %5670  ;;  %5226 = vmatprep.subr.bf16.mxu1 %v5225_v5  ;;  %v5219_v14 = vpack.c.bf16 %v5669_v22, %v5667_v4  ;;  %5069 = vmatmul.mubr.msk.f32.gmra.mrb[16].mxu0 %vm1129_vm0, %v6922_v63  ;;  %5690 = vtanh.f32 %v716_v61  ;;  %v656_v61 = vmul.f32 %v6989_v58, %v6776_v27  ;;  %v7094_v4 = vrot.slane %v7046_v51, %v6654_v12 }
 0x102   : > { %v5673_v35 = vpop.eup %5672  ;;  %1423 = vmatprep.mubr.f32.mxu0 %v6476_v7  ;;  %5692 = vtanh.f32 %v756_v62  ;;  %v7090_v62 = vrot.slane %v7046_v51, %v6651_v11  ;;  %v838_v58 = vadd.f32 %v6747_v54, %v618_v57  ;;  %v658_v5 = vmul.f32 %v7002_v25, %v6776_v27 }
 0x103   : > { %v5675_v39 = vpop.eup %5674  ;;  %5220 = vmatpush1.bf16.msra.mxu0 %v5219_v14  ;;  %v5227_v40 = vpack.c.bf16 %v5673_v35, %v5671_v28  ;;  %5074 = vmatmul.mubr.msk.f32.gmra.mrb[16].mxu1 %vm1129_vm0, %v6922_v63  ;;  %5694 = vtanh.f32 %v718_v1  ;;  %v7102_v1 = vrot.slane %v7046_v51, %v6657_v13  ;;  %v879_v25 = vadd.f32 %v6787_v37, %v659_v32 }
 0x104   : > { %v5677_v47 = vpop.eup %5676  ;;  %1533 = vmatprep.subr.mxu0 %v5675_v39  ;;  %1518 = vmatprep.mubr.f32.mxu1 %v6476_v7  ;;  %5696 = vtanh.f32 %v758_v23  ;;  %v877_v23 = vadd.f32 %v6787_v37, %v657_v59  ;;  %v876_v14 = vadd.f32 %v6787_v37, %v656_v61  ;;  %v878_v38 = vadd.f32 %v6787_v37, %v658_v5 }
 0x105   : > { %v5679_v18 = vpop.eup %5678  ;;  %5228 = vmatpush1.bf16.msra.mxu1 %v5227_v40  ;;  %5070 = vmatmul.mubr.msk.f32.gmra.mrb[18].mxu0 %vm1129_vm0, %v6943_v33  ;;  %5698 = vtanh.f32 %v797_v29  ;;  %v541_v29 = vmul.f32 %v7064_v15, %v6702_v31  ;;  %v543_v39 = vmul.f32 %v7090_v62, %v6702_v31  ;;  %v6477_v40 = vmov 2  }
 0x106   : > { %v5681_v60 = vpop.eup %5680  ;;  %1628 = vmatprep.subr.mxu1 %v5677_v47  ;;  %1589 = vmatprep.mubr.f32.mxu0 %v6476_v7  ;;  %5700 = vtanh.f32 %v837_v36  ;;  %v503_v36 = vmul.f32 %v7090_v62, %v6683_v21  ;;  %v500_v50 = vmul.f32 %v7094_v4, %v6683_v21  ;;  %v540_v56 = vmul.f32 %v7094_v4, %v6702_v31 }
 0x107   : > { %v5683_v52 = vpop.eup %5682  ;;  %1534 = vmatpush1.msra.mxu0 %v5679_v18  ;;  %5075 = vmatmul.mubr.msk.f32.gmra.mrb[18].mxu1 %vm1129_vm0, %v6943_v33  ;;  %5702 = vtanh.f32 %v799_v42  ;;  %v761_v18 = vadd.f32 %v6700_v30, %v541_v29  ;;  %v763_v61 = vadd.f32 %v6700_v30, %v543_v39  ;;  %v621_v29 = vmul.f32 %v7064_v15, %v6721_v43 }
 0x108   : > { %v5685_v0 = vpop.eup %5684  ;;  %1684 = vmatprep.mubr.f32.mxu1 %v6476_v7  ;;  %5704 = vtanh.f32 %v839_v48  ;;  %5560 = vset.pattern.permute.xlu1 %v6477_v40  ;;  %v721_v48 = vadd.f32 %v6681_v20, %v501_v24  ;;  %v760_v5 = vadd.f32 %v6700_v30, %v540_v56 }
 0x109   : > { %v5687_v8 = vpop.eup %5686  ;;  %1629 = vmatpush1.msra.mxu1 %v5681_v60  ;;  %v5229_v22 = vpack.c.bf16 %v5685_v0, %v5683_v52  ;;  %5076 = vmatmul.mubr.msk.f32.vlgmr.msra.gmra.mrb[20].mxu0 %vm1129_vm0, %v6843_v55  ;;  %5706 = vtanh.f32 %v796_v17  ;;  %v723_v60 = vadd.f32 %v6681_v20, %v503_v36  ;;  %v720_v0 = vadd.f32 %v6681_v20, %v500_v50 }
 0x10a   : > { %v5689_v28 = vpop.eup %5688  ;;  %1595 = vmatprep.mubr.f32.mxu0 %v6476_v7  ;;  %5708 = vtanh.f32 %v836_v26  ;;  %1110 = vperm.xlu1 %5560, %v6627_v2   ;;  %v502_v26 = vmul.f32 %v7102_v1, %v6683_v21  ;;  %v542_v2 = vmul.f32 %v7102_v1, %v6702_v31 }
 0x10b   : > { %v5691_v34 = vpop.eup %5690  ;;  %5230 = vmatprep.subr.bf16.mxu0 %v5229_v22  ;;  %v5237_v35 = vpack.c.bf16 %v5689_v28, %v5687_v8  ;;  %5081 = vmatmul.mubr.msk.f32.vlgmr.msra.gmra.mrb[20].mxu1 %vm1129_vm0, %v6843_v55  ;;  %5710 = vtanh.f32 %v798_v16  ;;  %v6362_v8 = vld [vmem:[%s8248_s2 + $0x8] sm:$0xff]  ;;  %v581_v28 = vmul.f32 %v7064_v15, %v6718_v41 }
 0x10c   : > { %v5693_v3 = vpop.eup %5692  ;;  %1690 = vmatprep.mubr.f32.mxu1 %v6476_v7  ;;  %5712 = vtanh.f32 %v838_v58  ;;  %5561 = vset.pattern.permute.xlu0 %v6477_v40  ;;  %v722_v24 = vadd.f32 %v6681_v20, %v502_v26  ;;  %v841_v40 = vadd.f32 %v6747_v54, %v621_v29 }
 0x10d   : > { %v5695_v42 = vpop.eup %5694  ;;  %5238 = vmatprep.subr.bf16.mxu1 %v5237_v35  ;;  %v5231_v47 = vpack.c.bf16 %v5693_v3, %v5691_v34  ;;  %5077 = vmatmul.mubr.msk.f32.gmra.mrb[22].mxu0 %vm1129_vm0, %v6874_v6  ;;  %5714 = vtanh.f32 %v877_v23  ;;  %v6363_v34 = vld [vmem:[%s8248_s2 + $0x10] sm:$0xff]  ;;  %v801_v3 = vadd.f32 %v6734_v49, %v581_v28  ;;  %v7214_v28 = vrot.slane %v7046_v51, %v6727_v45 }
 0x10e   : > { %v5697_v17 = vpop.eup %5696  ;;  %5716 = vtanh.f32 %v879_v25  ;;  %1601 = vmatprep.mubr.f32.mxu0 %v6476_v7  ;;  %1114 = vperm.xlu0 %5561, %v6362_v8   ;;  %v660_v8 = vmul.f32 %v7094_v4, %v6776_v27 }
 0x10f   : > { %v5699_v57 = vpop.eup %5698  ;;  %5232 = vmatpush1.bf16.msra.mxu0 %v5231_v47  ;;  %v5239_v59 = vpack.c.bf16 %v5697_v17, %v5695_v42  ;;  %5082 = vmatmul.mubr.msk.f32.gmra.mrb[22].mxu1 %vm1129_vm0, %v6874_v6  ;;  %5718 = vtanh.f32 %v876_v14  ;;  %v762_v14 = vadd.f32 %v6700_v30, %v542_v2  ;;  %v623_v42 = vmul.f32 %v7090_v62, %v6721_v43  ;;  %v6364_v47 = vld [vmem:[%s8248_s2 + $0x20] sm:$0xff] }
 0x110   : > { %v5701_v32 = vpop.eup %5700  ;;  %1696 = vmatprep.mubr.f32.mxu1 %v6476_v7  ;;  %5720 = vtanh.f32 %v878_v38  ;;  %1118 = vperm.xlu1 %5560, %v6363_v34   ;;  %v583_v38 = vmul.f32 %v7090_v62, %v6718_v41  ;;  %v661_v2 = vmul.f32 %v7064_v15, %v6776_v27 }
 0x111   : > { %v5703_v52 = vpop.eup %5702  ;;  %5240 = vmatpush1.bf16.msra.mxu1 %v5239_v59  ;;  %v5233_v16 = vpack.c.bf16 %v5701_v32, %v5699_v57  ;;  %5078 = vmatmul.mubr.msk.f32.gmra.mrb[24].mxu0 %vm1129_vm0, %v6901_v46  ;;  %5722 = vtanh.f32 %v721_v48  ;;  %v843_v57 = vadd.f32 %v6747_v54, %v623_v42  ;;  %v620_v59 = vmul.f32 %v7094_v4, %v6721_v43 }
 0x112   : > { %v5705_v58 = vpop.eup %5704  ;;  %5724 = vtanh.f32 %v761_v18  ;;  %1607 = vmatprep.mubr.f32.mxu0 %v6476_v7  ;;  %1126 = vperm.xlu0 %5561, %v6364_v47   ;;  %v803_v17 = vadd.f32 %v6734_v49, %v583_v38  ;;  %v580_v18 = vmul.f32 %v7094_v4, %v6718_v41  ;;  %v6365_v4 = vld [vmem:[%s8248_s2 + $0x18] sm:$0xff]  ;;  %v881_v29 = vadd.f32 %v6787_v37, %v661_v2 }
 0x113   : > { %v5707_v22 = vpop.eup %5706  ;;  %5234 = vmatprep.subr.bf16.mxu0 %v5233_v16  ;;  %v5241_v23 = vpack.c.bf16 %v5705_v58, %v5703_v52  ;;  %5083 = vmatmul.mubr.msk.f32.gmra.mrb[24].mxu1 %vm1129_vm0, %v6901_v46  ;;  %5726 = vtanh.f32 %v723_v60  ;;  %v7184_v60 = vrot.slane %v7046_v51, %v6679_v19  ;;  %v840_v16 = vadd.f32 %v6747_v54, %v620_v59 }
 0x114   : > { %v5709_v25 = vpop.eup %5708  ;;  %5728 = vtanh.f32 %v763_v61  ;;  %1702 = vmatprep.mubr.f32.mxu1 %v6476_v7  ;;  %v800_v32 = vadd.f32 %v6734_v49, %v580_v18  ;;  %v582_v61 = vmul.f32 %v7102_v1, %v6718_v41  ;;  %v663_v58 = vmul.f32 %v7090_v62, %v6776_v27  ;;  %1122 = vperm.xlu1 %5560, %v6365_v4  }
 0x115   : > { %v5711_v35 = vpop.eup %5710  ;;  %5242 = vmatprep.subr.bf16.mxu1 %v5241_v23  ;;  %v5235_v36 = vpack.c.bf16 %v5709_v25, %v5707_v22  ;;  %5079 = vmatmul.mubr.msk.f32.gmra.mrb[26].mxu0 %vm1129_vm0, %v6922_v63  ;;  %5730 = vtanh.f32 %v720_v0  ;;  %v622_v0 = vmul.f32 %v7102_v1, %v6721_v43  ;;  %v7206_v22 = vrot.slane %v7046_v51, %v6724_v44 }
 0x116   : > { %v5713_v39 = vpop.eup %5712  ;;  %1613 = vmatprep.mubr.f32.mxu0 %v6476_v7  ;;  %5732 = vtanh.f32 %v760_v5  ;;  %v802_v15 = vadd.f32 %v6734_v49, %v582_v61  ;;  %v504_v18 = vmul.f32 %v7214_v28, %v6683_v21  ;;  %v544_v59 = vmul.f32 %v7214_v28, %v6702_v31 }
 0x117   : > { %v5715_v48 = vpop.eup %5714  ;;  %5236 = vmatpush1.bf16.msra.mxu0 %v5235_v36  ;;  %v5243_v50 = vpack.c.bf16 %v5713_v39, %v5711_v35  ;;  %5084 = vmatmul.mubr.msk.f32.gmra.mrb[26].mxu1 %vm1129_vm0, %v6922_v63  ;;  %5734 = vtanh.f32 %v722_v24  ;;  %v842_v62 = vadd.f32 %v6747_v54, %v622_v0  ;;  %v662_v24 = vmul.f32 %v7102_v1, %v6776_v27 }
 0x118   : > { %v5717_v56 = vpop.eup %5716  ;;  %1723 = vmatprep.subr.mxu0 %v5715_v48  ;;  %1708 = vmatprep.mubr.f32.mxu1 %v6476_v7  ;;  %5736 = vtanh.f32 %v762_v14  ;;  %v505_v1 = vmul.f32 %v7184_v60, %v6683_v21  ;;  %v883_v35 = vadd.f32 %v6787_v37, %v663_v58  ;;  %v545_v36 = vmul.f32 %v7184_v60, %v6702_v31 }
 0x119   : > { %v5719_v26 = vpop.eup %5718  ;;  %5244 = vmatpush1.bf16.msra.mxu1 %v5243_v50  ;;  %5080 = vmatmul.mubr.msk.f32.gmra.mrb[28].mxu0 %vm1129_vm0, %v6943_v33  ;;  %5738 = vtanh.f32 %v801_v3  ;;  %v7230_v3 = vrot.slane %v7046_v51, %v6745_v53  ;;  %v507_v42 = vmul.f32 %v7206_v22, %v6683_v21  ;;  %v882_v48 = vadd.f32 %v6787_v37, %v662_v24 }
 0x11a   : > { %v5721_v52 = vpop.eup %5720  ;;  %1818 = vmatprep.subr.mxu1 %v5717_v56  ;;  %1779 = vmatprep.mubr.f32.mxu0 %v6476_v7  ;;  %5740 = vtanh.f32 %v841_v40  ;;  %v880_v40 = vadd.f32 %v6787_v37, %v660_v8  ;;  %v547_v51 = vmul.f32 %v7206_v22, %v6702_v31  ;;  %v764_v8 = vadd.f32 %v6700_v30, %v544_v59 }
 0x11b   : > { %v5723_v5 = vpop.eup %5722  ;;  %1724 = vmatpush1.msra.mxu0 %v5719_v26  ;;  %5085 = vmatmul.mubr.msk.f32.gmra.mrb[28].mxu1 %vm1129_vm0, %v6943_v33  ;;  %5742 = vtanh.f32 %v803_v17  ;;  %v727_v61 = vadd.f32 %v6681_v20, %v507_v42  ;;  %v506_v2 = vmul.f32 %v7230_v3, %v6683_v21  ;;  %v546_v0 = vmul.f32 %v7230_v3, %v6702_v31 }
 0x11c   : > { %v5725_v23 = vpop.eup %5724  ;;  %1874 = vmatprep.mubr.f32.mxu1 %v6476_v7  ;;  %5744 = vtanh.f32 %v843_v57  ;;  %v765_v57 = vadd.f32 %v6700_v30, %v545_v36  ;;  %v585_v4 = vmul.f32 %v7184_v60, %v6718_v41  ;;  %v7279_v36 = vld [vmem:[%s6618_s13 + $0x18] sm:$0xff]  ;;  %v665_v59 = vmul.f32 %v7184_v60, %v6776_v27 }
 0x11d   : > { %v5727_v25 = vpop.eup %5726  ;;  %1819 = vmatpush1.msra.mxu1 %v5721_v52  ;;  %v5245_v14 = vpack.c.bf16 %v5725_v23, %v5723_v5  ;;  %5086 = vmatmul.mubr.msk.f32.vlgmr.msra.gmra.mrb[30].mxu0 %vm1129_vm0, %v6843_v55  ;;  %5746 = vtanh.f32 %v800_v32  ;;  %v726_v24 = vadd.f32 %v6681_v20, %v506_v2  ;;  %v667_v2 = vmul.f32 %v7206_v22, %v6776_v27 }
 0x11e   : > { %v5729_v34 = vpop.eup %5728  ;;  %1785 = vmatprep.mubr.f32.mxu0 %v6476_v7  ;;  %5748 = vtanh.f32 %v840_v16  ;;  %v767_v16 = vadd.f32 %v6700_v30, %v547_v51  ;;  %v584_v51 = vmul.f32 %v7214_v28, %v6718_v41 }
 0x11f   : > { %v5731_v38 = vpop.eup %5730  ;;  %5246 = vmatprep.subr.bf16.mxu0 %v5245_v14  ;;  %v5253_v39 = vpack.c.bf16 %v5729_v34, %v5727_v25  ;;  %5091 = vmatmul.mubr.msk.f32.vlgmr.msra.gmra.mrb[30].mxu1 %vm1129_vm0, %v6843_v55  ;;  %5750 = vtanh.f32 %v802_v15  ;;  %v725_v55 = vadd.f32 %v6681_v20, %v505_v1  ;;  %v766_v14 = vadd.f32 %v6700_v30, %v546_v0 }
 0x120   : > { %v5733_v47 = vpop.eup %5732  ;;  %1880 = vmatprep.mubr.f32.mxu1 %v6476_v7  ;;  %5752 = vtanh.f32 %v842_v62  ;;  %v7318_v0 = vrot.slane %v7279_v36, %v6651_v11 }
 0x121   : > { %v5735_v50 = vpop.eup %5734  ;;  %5254 = vmatprep.subr.bf16.mxu1 %v5253_v39  ;;  %v5247_v17 = vpack.c.bf16 %v5733_v47, %v5731_v38  ;;  %5087 = vmatmul.mubr.msk.f32.gmra.mrb[32].mxu0 %vm1129_vm0, %v6874_v6  ;;  %5754 = vtanh.f32 %v881_v29  ;;  %v625_v29 = vmul.f32 %v7184_v60, %v6721_v43 }
 0x122   : > { %v5737_v56 = vpop.eup %5736  ;;  %5756 = vtanh.f32 %v883_v35  ;;  %1791 = vmatprep.mubr.f32.mxu0 %v6476_v7  ;;  %v587_v35 = vmul.f32 %v7206_v22, %v6718_v41 }
 0x123   : > { %v5739_v26 = vpop.eup %5738  ;;  %5248 = vmatpush1.bf16.msra.mxu0 %v5247_v17  ;;  %v5255_v32 = vpack.c.bf16 %v5737_v56, %v5735_v50  ;;  %5092 = vmatmul.mubr.msk.f32.gmra.mrb[32].mxu1 %vm1129_vm0, %v6874_v6  ;;  %5758 = vtanh.f32 %v880_v40  ;;  %v724_v6 = vadd.f32 %v6681_v20, %v504_v18  ;;  %v845_v39 = vadd.f32 %v6747_v54, %v625_v29 }
 0x124   : > { %v5741_v52 = vpop.eup %5740  ;;  %1886 = vmatprep.mubr.f32.mxu1 %v6476_v7  ;;  %5760 = vtanh.f32 %v882_v48  ;;  %v627_v40 = vmul.f32 %v7206_v22, %v6721_v43  ;;  %v807_v48 = vadd.f32 %v6734_v49, %v587_v35  ;;  %v7296_v18 = vrot.slane %v7279_v36, %v6648_v10 }
 0x125   : > { %v5743_v58 = vpop.eup %5742  ;;  %5256 = vmatpush1.bf16.msra.mxu1 %v5255_v32  ;;  %v5249_v5 = vpack.c.bf16 %v5741_v52, %v5739_v26  ;;  %5088 = vmatmul.mubr.msk.f32.gmra.mrb[34].mxu0 %vm1129_vm0, %v6901_v46  ;;  %5762 = vtanh.f32 %v725_v55  ;;  %v624_v55 = vmul.f32 %v7214_v28, %v6721_v43  ;;  %v804_v56 = vadd.f32 %v6734_v49, %v584_v51 }
 0x126   : > { %v5745_v15 = vpop.eup %5744  ;;  %5764 = vtanh.f32 %v765_v57  ;;  %1797 = vmatprep.mubr.f32.mxu0 %v6476_v7  ;;  %v847_v17 = vadd.f32 %v6747_v54, %v627_v40  ;;  %v586_v57 = vmul.f32 %v7230_v3, %v6718_v41  ;;  %v551_v35 = vmul.f32 %v7318_v0, %v6702_v31  ;;  %v7358_v40 = vld [vmem:[%s8247_s1 + $0x8] sm:$0xff] }
 0x127   : > { %v5747_v23 = vpop.eup %5746  ;;  %5250 = vmatprep.subr.bf16.mxu0 %v5249_v5  ;;  %v5257_v62 = vpack.c.bf16 %v5745_v15, %v5743_v58  ;;  %5093 = vmatmul.mubr.msk.f32.gmra.mrb[34].mxu1 %vm1129_vm0, %v6901_v46  ;;  %5766 = vtanh.f32 %v727_v61  ;;  %v805_v46 = vadd.f32 %v6734_v49, %v585_v4  ;;  %v844_v32 = vadd.f32 %v6747_v54, %v624_v55  ;;  %v7331_v15 = vld [vmem:[%s8247_s1] sm:$0xff] }
 0x128   : > { %v5749_v25 = vpop.eup %5748  ;;  %5768 = vtanh.f32 %v767_v16  ;;  %1892 = vmatprep.mubr.f32.mxu1 %v6476_v7  ;;  %v626_v61 = vmul.f32 %v7230_v3, %v6721_v43  ;;  %v806_v60 = vadd.f32 %v6734_v49, %v586_v57  ;;  %v664_v16 = vmul.f32 %v7214_v28, %v6776_v27 }
 0x129   : > { %v5751_v1 = vpop.eup %5750  ;;  %5258 = vmatprep.subr.bf16.mxu1 %v5257_v62  ;;  %v5251_v34 = vpack.c.bf16 %v5749_v25, %v5747_v23  ;;  %5089 = vmatmul.mubr.msk.f32.gmra.mrb[36].mxu0 %vm1129_vm0, %v6922_v63  ;;  %5770 = vtanh.f32 %v724_v6  ;;  %v666_v5 = vmul.f32 %v7230_v3, %v6776_v27  ;;  %v509_v3 = vmul.f32 %v7296_v18, %v6683_v21 }
 0x12a   : > { %v5753_v38 = vpop.eup %5752  ;;  %1803 = vmatprep.mubr.f32.mxu0 %v6476_v7  ;;  %5772 = vtanh.f32 %v764_v8  ;;  %v846_v22 = vadd.f32 %v6747_v54, %v626_v61  ;;  %v885_v8 = vadd.f32 %v6787_v37, %v665_v59  ;;  %v887_v62 = vadd.f32 %v6787_v37, %v667_v2  ;;  %v7381_v2 = vld [vmem:[%s8247_s1 + $0x10] sm:$0xff] }
 0x12b   : > { %v5755_v42 = vpop.eup %5754  ;;  %5252 = vmatpush1.bf16.msra.mxu0 %v5251_v34  ;;  %v5259_v47 = vpack.c.bf16 %v5753_v38, %v5751_v1  ;;  %5094 = vmatmul.mubr.msk.f32.gmra.mrb[36].mxu1 %vm1129_vm0, %v6922_v63  ;;  %5774 = vtanh.f32 %v726_v24  ;;  %v549_v24 = vmul.f32 %v7296_v18, %v6702_v31  ;;  %v7344_v4 = vrot.slane %v7279_v36, %v6657_v13 }
 0x12c   : > { %v5757_v50 = vpop.eup %5756  ;;  %1913 = vmatprep.subr.mxu0 %v5755_v42  ;;  %1898 = vmatprep.mubr.f32.mxu1 %v6476_v7  ;;  %5776 = vtanh.f32 %v766_v14  ;;  %v884_v29 = vadd.f32 %v6787_v37, %v664_v16  ;;  %v511_v1 = vmul.f32 %v7318_v0, %v6683_v21  ;;  %v729_v42 = vadd.f32 %v6681_v20, %v509_v3 }
 0x12d   : > { %v5759_v63 = vpop.eup %5758  ;;  %5260 = vmatpush1.bf16.msra.mxu1 %v5259_v47  ;;  %5090 = vmatmul.mubr.msk.f32.gmra.mrb[38].mxu0 %vm1129_vm0, %v6943_v33  ;;  %5778 = vtanh.f32 %v805_v46  ;;  %v886_v46 = vadd.f32 %v6787_v37, %v666_v5  ;;  %v769_v51 = vadd.f32 %v6700_v30, %v549_v24  ;;  %v771_v59 = vadd.f32 %v6700_v30, %v551_v35  ;;  %v7400_v24 = vld [vmem:[%s8247_s1 + $0x18] sm:$0xff] }
 0x12e   : > { %v5761_v26 = vpop.eup %5760  ;;  %2008 = vmatprep.subr.mxu1 %v5757_v50  ;;  %1969 = vmatprep.mubr.f32.mxu0 %v6476_v7  ;;  %5780 = vtanh.f32 %v845_v39  ;;  %v629_v3 = vmul.f32 %v7296_v18, %v6721_v43 }
 0x12f   : > { %v5763_v52 = vpop.eup %5762  ;;  %1914 = vmatpush1.msra.mxu0 %v5759_v63  ;;  %5095 = vmatmul.mubr.msk.f32.gmra.mrb[38].mxu1 %vm1129_vm0, %v6943_v33  ;;  %5782 = vtanh.f32 %v807_v48  ;;  %v7326_v33 = vrot.slane %v7279_v36, %v6654_v12  ;;  %v731_v63 = vadd.f32 %v6681_v20, %v511_v1 }
 0x130   : > { %v5765_v58 = vpop.eup %5764  ;;  %2064 = vmatprep.mubr.f32.mxu1 %v6476_v7  ;;  %5784 = vtanh.f32 %v847_v17  ;;  %v849_v1 = vadd.f32 %v6747_v54, %v629_v3 }
 0x131   : > { %v5767_v6 = vpop.eup %5766  ;;  %2009 = vmatpush1.msra.mxu1 %v5761_v26  ;;  %v5261_v28 = vpack.c.bf16 %v5765_v58, %v5763_v52  ;;  %5096 = vmatmul.mubr.msk.f32.vlgmr.msra.gmra.mrb[40].mxu0 %vm1129_vm0, %v7331_v15  ;;  %5786 = vtanh.f32 %v804_v56  ;;  %v508_v47 = vmul.f32 %v7326_v33, %v6683_v21  ;;  %v548_v50 = vmul.f32 %v7326_v33, %v6702_v31 }
 0x132   : > { %v5769_v23 = vpop.eup %5768  ;;  %1975 = vmatprep.mubr.f32.mxu0 %v6476_v7  ;;  %5788 = vtanh.f32 %v844_v32  ;;  %v510_v56 = vmul.f32 %v7344_v4, %v6683_v21  ;;  %v550_v26 = vmul.f32 %v7344_v4, %v6702_v31 }
 0x133   : > { %v5771_v25 = vpop.eup %5770  ;;  %5262 = vmatprep.subr.bf16.mxu0 %v5261_v28  ;;  %v5269_v14 = vpack.c.bf16 %v5769_v23, %v5767_v6  ;;  %5101 = vmatmul.mubr.msk.f32.vlgmr.msra.gmra.mrb[40].mxu1 %vm1129_vm0, %v7331_v15  ;;  %5790 = vtanh.f32 %v806_v60  ;;  %v728_v52 = vadd.f32 %v6681_v20, %v508_v47  ;;  %v768_v16 = vadd.f32 %v6700_v30, %v548_v50 }
 0x134   : > { %v5773_v34 = vpop.eup %5772  ;;  %2070 = vmatprep.mubr.f32.mxu1 %v6476_v7  ;;  %5792 = vtanh.f32 %v846_v22  ;;  %v730_v5 = vadd.f32 %v6681_v20, %v510_v56  ;;  %v589_v6 = vmul.f32 %v7296_v18, %v6718_v41  ;;  %v669_v50 = vmul.f32 %v7296_v18, %v6776_v27 }
 0x135   : > { %v5775_v38 = vpop.eup %5774  ;;  %5270 = vmatprep.subr.bf16.mxu1 %v5269_v14  ;;  %v5263_v39 = vpack.c.bf16 %v5773_v34, %v5771_v25  ;;  %5097 = vmatmul.mubr.msk.f32.gmra.mrb[42].mxu0 %vm1129_vm0, %v7358_v40  ;;  %5794 = vtanh.f32 %v885_v8  ;;  %v770_v8 = vadd.f32 %v6700_v30, %v550_v26  ;;  %v591_v14 = vmul.f32 %v7318_v0, %v6718_v41 }
 0x136   : > { %v5777_v48 = vpop.eup %5776  ;;  %5796 = vtanh.f32 %v887_v62  ;;  %1981 = vmatprep.mubr.f32.mxu0 %v6476_v7  ;;  %v809_v25 = vadd.f32 %v6734_v49, %v589_v6  ;;  %v631_v34 = vmul.f32 %v7318_v0, %v6721_v43  ;;  %v590_v56 = vmul.f32 %v7344_v4, %v6718_v41 }
 0x137   : > { %v5779_v17 = vpop.eup %5778  ;;  %5264 = vmatpush1.bf16.msra.mxu0 %v5263_v39  ;;  %v5271_v55 = vpack.c.bf16 %v5777_v48, %v5775_v38  ;;  %5102 = vmatmul.mubr.msk.f32.gmra.mrb[42].mxu1 %vm1129_vm0, %v7358_v40  ;;  %5798 = vtanh.f32 %v884_v29  ;;  %v811_v39 = vadd.f32 %v6734_v49, %v591_v14  ;;  %v671_v26 = vmul.f32 %v7318_v0, %v6776_v27 }
 0x138   : > { %v5781_v57 = vpop.eup %5780  ;;  %2076 = vmatprep.mubr.f32.mxu1 %v6476_v7  ;;  %5800 = vtanh.f32 %v886_v46  ;;  %v7413_v46 = vrot.slane %v7279_v36, %v6679_v19  ;;  %v851_v48 = vadd.f32 %v6747_v54, %v631_v34 }
 0x139   : > { %v5783_v32 = vpop.eup %5782  ;;  %5272 = vmatpush1.bf16.msra.mxu1 %v5271_v55  ;;  %v5265_v61 = vpack.c.bf16 %v5781_v57, %v5779_v17  ;;  %5098 = vmatmul.mubr.msk.f32.gmra.mrb[44].mxu0 %vm1129_vm0, %v7381_v2  ;;  %5802 = vtanh.f32 %v729_v42  ;;  %v588_v42 = vmul.f32 %v7326_v33, %v6718_v41  ;;  %v7429_v55 = vld [vmem:[%s8247_s1 + $0x20] sm:$0xff]  ;;  %v630_v57 = vmul.f32 %v7344_v4, %v6721_v43 }
 0x13a   : > { %v5785_v60 = vpop.eup %5784  ;;  %5804 = vtanh.f32 %v769_v51  ;;  %1987 = vmatprep.mubr.f32.mxu0 %v6476_v7  ;;  %v628_v51 = vmul.f32 %v7326_v33, %v6721_v43  ;;  %v513_v6 = vmul.f32 %v7413_v46, %v6683_v21 }
 0x13b   : > { %v5787_v58 = vpop.eup %5786  ;;  %5266 = vmatprep.subr.bf16.mxu0 %v5265_v61  ;;  %v5273_v22 = vpack.c.bf16 %v5785_v60, %v5783_v32  ;;  %5103 = vmatmul.mubr.msk.f32.gmra.mrb[44].mxu1 %vm1129_vm0, %v7381_v2  ;;  %5806 = vtanh.f32 %v731_v63  ;;  %v808_v63 = vadd.f32 %v6734_v49, %v588_v42  ;;  %v668_v32 = vmul.f32 %v7326_v33, %v6776_v27 }
 0x13c   : > { %v5789_v28 = vpop.eup %5788  ;;  %5808 = vtanh.f32 %v771_v59  ;;  %2082 = vmatprep.mubr.f32.mxu1 %v6476_v7  ;;  %v848_v59 = vadd.f32 %v6747_v54, %v628_v51  ;;  %v7449_v60 = vrot.slane %v7279_v36, %v6724_v44  ;;  %v850_v0 = vadd.f32 %v6747_v54, %v630_v57 }
 0x13d   : > { %v5791_v23 = vpop.eup %5790  ;;  %5274 = vmatprep.subr.bf16.mxu1 %v5273_v22  ;;  %v5267_v62 = vpack.c.bf16 %v5789_v28, %v5787_v58  ;;  %5099 = vmatmul.mubr.msk.f32.gmra.mrb[46].mxu0 %vm1129_vm0, %v7400_v24  ;;  %5810 = vtanh.f32 %v728_v52  ;;  %v810_v52 = vadd.f32 %v6734_v49, %v590_v56  ;;  %v889_v33 = vadd.f32 %v6787_v37, %v669_v50 }
 0x13e   : > { %v5793_v29 = vpop.eup %5792  ;;  %1993 = vmatprep.mubr.f32.mxu0 %v6476_v7  ;;  %5812 = vtanh.f32 %v768_v16  ;;  %v670_v58 = vmul.f32 %v7344_v4, %v6776_v27  ;;  %v7462_v28 = vrot.slane %v7279_v36, %v6727_v45  ;;  %v891_v4 = vadd.f32 %v6787_v37, %v671_v26 }
 0x13f   : > { %v5795_v35 = vpop.eup %5794  ;;  %5268 = vmatpush1.bf16.msra.mxu0 %v5267_v62  ;;  %v5275_v38 = vpack.c.bf16 %v5793_v29, %v5791_v23  ;;  %5104 = vmatmul.mubr.msk.f32.gmra.mrb[46].mxu1 %vm1129_vm0, %v7400_v24  ;;  %5814 = vtanh.f32 %v730_v5  ;;  %v888_v3 = vadd.f32 %v6787_v37, %v668_v32  ;;  %v553_v23 = vmul.f32 %v7413_v46, %v6702_v31 }
 0x140   : > { %v5797_v47 = vpop.eup %5796  ;;  %2103 = vmatprep.subr.mxu0 %v5795_v35  ;;  %2088 = vmatprep.mubr.f32.mxu1 %v6476_v7  ;;  %5816 = vtanh.f32 %v770_v8  ;;  %v515_v14 = vmul.f32 %v7449_v60, %v6683_v21  ;;  %v7475_v29 = vrot.slane %v7279_v36, %v6745_v53  ;;  %v890_v34 = vadd.f32 %v6787_v37, %v670_v58 }
 0x141   : > { %v5799_v17 = vpop.eup %5798  ;;  %5276 = vmatpush1.bf16.msra.mxu1 %v5275_v38  ;;  %5100 = vmatmul.mubr.msk.f32.gmra.mrb[48].mxu0 %vm1129_vm0, %v7429_v55  ;;  %5818 = vtanh.f32 %v809_v25  ;;  %v555_v35 = vmul.f32 %v7449_v60, %v6702_v31  ;;  %v733_v42 = vadd.f32 %v6681_v20, %v513_v6  ;;  %v512_v36 = vmul.f32 %v7462_v28, %v6683_v21 }
 0x142   : > { %v5801_v18 = vpop.eup %5800  ;;  %2198 = vmatprep.subr.mxu1 %v5797_v47  ;;  %2159 = vmatprep.mubr.f32.mxu0 %v6476_v7  ;;  %5820 = vtanh.f32 %v849_v1  ;;  %v552_v51 = vmul.f32 %v7462_v28, %v6702_v31  ;;  %v514_v56 = vmul.f32 %v7475_v29, %v6683_v21 }
 0x143   : > { %v5803_v61 = vpop.eup %5802  ;;  %2104 = vmatpush1.msra.mxu0 %v5799_v17  ;;  %5105 = vmatmul.mubr.msk.f32.gmra.mrb[48].mxu1 %vm1129_vm0, %v7429_v55  ;;  %5822 = vtanh.f32 %v811_v39 }
 0x144   : > { %v5805_v16 = vpop.eup %5804  ;;  %2254 = vmatprep.mubr.f32.mxu1 %v6476_v7  ;;  %5824 = vtanh.f32 %v851_v48  ;;  %v773_v48 = vadd.f32 %v6700_v30, %v553_v23  ;;  %v734_v58 = vadd.f32 %v6681_v20, %v514_v56  ;;  %v634_v56 = vmul.f32 %v7475_v29, %v6721_v43 }
 0x145   : > { %v5807_v22 = vpop.eup %5806  ;;  %2199 = vmatpush1.msra.mxu1 %v5801_v18  ;;  %v5277_v5 = vpack.c.bf16 %v5805_v16, %v5803_v61  ;;  %5106 = vmatmul.mubr.msk.f32.vlgmr.msra.gmra.mrb[50].mxu0 %vm1129_vm0, %v7331_v15  ;;  %5826 = vtanh.f32 %v808_v63  ;;  %v735_v63 = vadd.f32 %v6681_v20, %v515_v14  ;;  %v775_v18 = vadd.f32 %v6700_v30, %v555_v35  ;;  %v7524_v35 = vld [vmem:[%s6618_s13 + $0x20] sm:$0xff]  ;;  %s8201_s13 = scalar_lea.hbm %s8251_s5, %s5180_s14 }
 0x146   : > { %v5809_v8 = vpop.eup %5808  ;;  %2165 = vmatprep.mubr.f32.mxu0 %v6476_v7  ;;  %5828 = vtanh.f32 %v848_v59  ;;  %v554_v59 = vmul.f32 %v7475_v29, %v6702_v31  ;;  %v732_v61 = vadd.f32 %v6681_v20, %v512_v36  ;;  %v772_v16 = vadd.f32 %v6700_v30, %v552_v51 }
 0x147   : > { %v5811_v62 = vpop.eup %5810  ;;  %5278 = vmatprep.subr.bf16.mxu0 %v5277_v5  ;;  %v5285_v25 = vpack.c.bf16 %v5809_v8, %v5807_v22  ;;  %5111 = vmatmul.mubr.msk.f32.vlgmr.msra.gmra.mrb[50].mxu1 %vm1129_vm0, %v7331_v15  ;;  %5830 = vtanh.f32 %v810_v52  ;;  %v593_v22 = vmul.f32 %v7413_v46, %v6718_v41  ;;  %v633_v8 = vmul.f32 %v7413_v46, %v6721_v43 }
 0x148   : > { %v5813_v1 = vpop.eup %5812  ;;  %2260 = vmatprep.mubr.f32.mxu1 %v6476_v7  ;;  %5832 = vtanh.f32 %v850_v0  ;;  %v774_v6 = vadd.f32 %v6700_v30, %v554_v59  ;;  %v592_v36 = vmul.f32 %v7462_v28, %v6718_v41  ;;  %v594_v51 = vmul.f32 %v7475_v29, %v6718_v41 }
 0x149   : > { %v5815_v38 = vpop.eup %5814  ;;  %5286 = vmatprep.subr.bf16.mxu1 %v5285_v25  ;;  %v5279_v39 = vpack.c.bf16 %v5813_v1, %v5811_v62  ;;  %5107 = vmatmul.mubr.msk.f32.gmra.mrb[52].mxu0 %vm1129_vm0, %v7358_v40  ;;  %5834 = vtanh.f32 %v889_v33  ;;  %v813_v62 = vadd.f32 %v6734_v49, %v593_v22  ;;  %v635_v25 = vmul.f32 %v7449_v60, %v6721_v43 }
 0x14a   : > { %v5817_v47 = vpop.eup %5816  ;;  %5836 = vtanh.f32 %v891_v4  ;;  %2171 = vmatprep.mubr.f32.mxu0 %v6476_v7  ;;  %v595_v4 = vmul.f32 %v7449_v60, %v6718_v41  ;;  %v853_v1 = vadd.f32 %v6747_v54, %v633_v8  ;;  %v675_v59 = vmul.f32 %v7449_v60, %v6776_v27 }
 0x14b   : > { %v5819_v50 = vpop.eup %5818  ;;  %5280 = vmatpush1.bf16.msra.mxu0 %v5279_v39  ;;  %v5287_v17 = vpack.c.bf16 %v5817_v47, %v5815_v38  ;;  %5112 = vmatmul.mubr.msk.f32.gmra.mrb[52].mxu1 %vm1129_vm0, %v7358_v40  ;;  %5838 = vtanh.f32 %v888_v3  ;;  %v854_v60 = vadd.f32 %v6747_v54, %v634_v56 }
 0x14c   : > { %v5821_v57 = vpop.eup %5820  ;;  %2266 = vmatprep.mubr.f32.mxu1 %v6476_v7  ;;  %5840 = vtanh.f32 %v890_v34  ;;  %v815_v34 = vadd.f32 %v6734_v49, %v595_v4 }
 0x14d   : > { %v5823_v26 = vpop.eup %5822  ;;  %5288 = vmatpush1.bf16.msra.mxu1 %v5287_v17  ;;  %v5281_v32 = vpack.c.bf16 %v5821_v57, %v5819_v50  ;;  %5108 = vmatmul.mubr.msk.f32.gmra.mrb[54].mxu0 %vm1129_vm0, %v7381_v2  ;;  %5842 = vtanh.f32 %v733_v42  ;;  %v855_v42 = vadd.f32 %v6747_v54, %v635_v25  ;;  %v673_v50 = vmul.f32 %v7413_v46, %v6776_v27 }
 0x14e   : > { %v5825_v52 = vpop.eup %5824  ;;  %5844 = vtanh.f32 %v773_v48  ;;  %2177 = vmatprep.mubr.f32.mxu0 %v6476_v7  ;;  %v632_v48 = vmul.f32 %v7462_v28, %v6721_v43  ;;  %v7545_v57 = vrot.slane %v7524_v35, %v6648_v10  ;;  %v814_v10 = vadd.f32 %v6734_v49, %v594_v51 }
 0x14f   : > { %v5827_v0 = vpop.eup %5826  ;;  %5282 = vmatprep.subr.bf16.mxu0 %v5281_v32  ;;  %v5289_v33 = vpack.c.bf16 %v5825_v52, %v5823_v26  ;;  %5113 = vmatmul.mubr.msk.f32.gmra.mrb[54].mxu1 %vm1129_vm0, %v7381_v2  ;;  %5846 = vtanh.f32 %v735_v63  ;;  %v812_v63 = vadd.f32 %v6734_v49, %v592_v36  ;;  %v672_v26 = vmul.f32 %v7462_v28, %v6776_v27 }
 0x150   : > { %v5829_v5 = vpop.eup %5828  ;;  %5848 = vtanh.f32 %v775_v18  ;;  %2272 = vmatprep.mubr.f32.mxu1 %v6476_v7  ;;  %v852_v46 = vadd.f32 %v6747_v54, %v632_v48  ;;  %v893_v28 = vadd.f32 %v6787_v37, %v673_v50 }
 0x151   : > { %v5831_v3 = vpop.eup %5830  ;;  %5290 = vmatprep.subr.bf16.mxu1 %v5289_v33  ;;  %v5283_v23 = vpack.c.bf16 %v5829_v5, %v5827_v0  ;;  %5109 = vmatmul.mubr.msk.f32.gmra.mrb[56].mxu0 %vm1129_vm0, %v7400_v24  ;;  %5850 = vtanh.f32 %v732_v61  ;;  %v7558_v61 = vrot.slane %v7524_v35, %v6651_v11  ;;  %v517_v11 = vmul.f32 %v7545_v57, %v6683_v21 }
 0x152   : > { %v5833_v14 = vpop.eup %5832  ;;  %2183 = vmatprep.mubr.f32.mxu0 %v6476_v7  ;;  %5852 = vtanh.f32 %v772_v16  ;;  %v674_v16 = vmul.f32 %v7475_v29, %v6776_v27  ;;  %v895_v29 = vadd.f32 %v6787_v37, %v675_v59  ;;  %v892_v5 = vadd.f32 %v6787_v37, %v672_v26 }
 0x153   : > { %v5835_v38 = vpop.eup %5834  ;;  %5284 = vmatpush1.bf16.msra.mxu0 %v5283_v23  ;;  %v5291_v39 = vpack.c.bf16 %v5833_v14, %v5831_v3  ;;  %5114 = vmatmul.mubr.msk.f32.gmra.mrb[56].mxu1 %vm1129_vm0, %v7400_v24  ;;  %5854 = vtanh.f32 %v734_v58  ;;  %v7571_v58 = vrot.slane %v7524_v35, %v6654_v12  ;;  %v519_v12 = vmul.f32 %v7558_v61, %v6683_v21 }
 0x154   : > { %v5837_v47 = vpop.eup %5836  ;;  %2293 = vmatprep.subr.mxu0 %v5835_v38  ;;  %2278 = vmatprep.mubr.f32.mxu1 %v6476_v7  ;;  %5856 = vtanh.f32 %v774_v6  ;;  %v557_v6 = vmul.f32 %v7545_v57, %v6702_v31  ;;  %v7584_v3 = vrot.slane %v7524_v35, %v6657_v13  ;;  %v559_v25 = vmul.f32 %v7558_v61, %v6702_v31 }
 0x155   : > { %v5839_v17 = vpop.eup %5838  ;;  %5292 = vmatpush1.bf16.msra.mxu1 %v5291_v39  ;;  %5110 = vmatmul.mubr.msk.f32.gmra.mrb[58].mxu0 %vm1129_vm0, %v7429_v55  ;;  %5858 = vtanh.f32 %v813_v62  ;;  %v894_v62 = vadd.f32 %v6787_v37, %v674_v16  ;;  %v516_v13 = vmul.f32 %v7571_v58, %v6683_v21  ;;  %v739_v48 = vadd.f32 %v6681_v20, %v519_v12 }
 0x156   : > { %v5841_v18 = vpop.eup %5840  ;;  %2388 = vmatprep.subr.mxu1 %v5837_v47  ;;  %2349 = vmatprep.mubr.f32.mxu0 %v6476_v7  ;;  %5860 = vtanh.f32 %v853_v1  ;;  %v777_v39 = vadd.f32 %v6700_v30, %v557_v6  ;;  %v518_v51 = vmul.f32 %v7584_v3, %v6683_v21 }
 0x157   : > { %v5843_v32 = vpop.eup %5842  ;;  %2294 = vmatpush1.msra.mxu0 %v5839_v17  ;;  %5115 = vmatmul.mubr.msk.f32.gmra.mrb[58].mxu1 %vm1129_vm0, %v7429_v55  ;;  %5862 = vtanh.f32 %v815_v34  ;;  %v737_v34 = vadd.f32 %v6681_v20, %v517_v11  ;;  %v779_v17 = vadd.f32 %v6700_v30, %v559_v25  ;;  %v596_v25 = vmul.f32 %v7571_v58, %v6718_v41 }
 0x158   : > { %v5845_v52 = vpop.eup %5844  ;;  %2444 = vmatprep.mubr.f32.mxu1 %v6476_v7  ;;  %5864 = vtanh.f32 %v855_v42  ;;  %v556_v42 = vmul.f32 %v7571_v58, %v6702_v31 }
 0x159   : > { %v5847_v0 = vpop.eup %5846  ;;  %2389 = vmatpush1.msra.mxu1 %v5841_v18  ;;  %v5293_v33 = vpack.c.bf16 %v5845_v52, %v5843_v32  ;;  %5116 = vmatmul.mubr.msk.f32.vlgmr.msra.gmra.mrb[60].mxu0 %vm1129_vm0, %v7331_v15  ;;  %5866 = vtanh.f32 %v812_v63  ;;  %v558_v63 = vmul.f32 %v7584_v3, %v6702_v31  ;;  %v738_v52 = vadd.f32 %v6681_v20, %v518_v51 }
 0x15a   : > { %v5849_v22 = vpop.eup %5848  ;;  %2355 = vmatprep.mubr.f32.mxu0 %v6476_v7  ;;  %5868 = vtanh.f32 %v852_v46  ;;  %v736_v46 = vadd.f32 %v6681_v20, %v516_v13  ;;  %v776_v26 = vadd.f32 %v6700_v30, %v556_v42  ;;  %v677_v13 = vmul.f32 %v7545_v57, %v6776_v27 }
 0x15b   : > { %v5851_v8 = vpop.eup %5850  ;;  %5294 = vmatprep.subr.bf16.mxu0 %v5293_v33  ;;  %v5301_v4 = vpack.c.bf16 %v5849_v22, %v5847_v0  ;;  %5121 = vmatmul.mubr.msk.f32.vlgmr.msra.gmra.mrb[60].mxu1 %vm1129_vm0, %v7331_v15  ;;  %5870 = vtanh.f32 %v814_v10  ;;  %v778_v16 = vadd.f32 %v6700_v30, %v558_v63  ;;  %v637_v0 = vmul.f32 %v7545_v57, %v6721_v43 }
 0x15c   : > { %v5853_v23 = vpop.eup %5852  ;;  %2450 = vmatprep.mubr.f32.mxu1 %v6476_v7  ;;  %5872 = vtanh.f32 %v854_v60  ;;  %v597_v60 = vmul.f32 %v7545_v57, %v6718_v41  ;;  %v599_v33 = vmul.f32 %v7558_v61, %v6718_v41  ;;  %v638_v42 = vmul.f32 %v7584_v3, %v6721_v43 }
 0x15d   : > { %v5855_v14 = vpop.eup %5854  ;;  %5302 = vmatprep.subr.bf16.mxu1 %v5301_v4  ;;  %v5295_v1 = vpack.c.bf16 %v5853_v23, %v5851_v8  ;;  %5117 = vmatmul.mubr.msk.f32.gmra.mrb[62].mxu0 %vm1129_vm0, %v7358_v40  ;;  %5874 = vtanh.f32 %v893_v28  ;;  %v857_v8 = vadd.f32 %v6747_v54, %v637_v0  ;;  %v676_v51 = vmul.f32 %v7571_v58, %v6776_v27 }
 0x15e   : > { %v5857_v38 = vpop.eup %5856  ;;  %5876 = vtanh.f32 %v895_v29  ;;  %2361 = vmatprep.mubr.f32.mxu0 %v6476_v7  ;;  %v817_v29 = vadd.f32 %v6734_v49, %v597_v60  ;;  %v819_v4 = vadd.f32 %v6734_v49, %v599_v33 }
 0x15f   : > { %v5859_v36 = vpop.eup %5858  ;;  %5296 = vmatpush1.bf16.msra.mxu0 %v5295_v1  ;;  %v5303_v47 = vpack.c.bf16 %v5857_v38, %v5855_v14  ;;  %5122 = vmatmul.mubr.msk.f32.gmra.mrb[62].mxu1 %vm1129_vm0, %v7358_v40  ;;  %5878 = vtanh.f32 %v892_v5  ;;  %v639_v5 = vmul.f32 %v7558_v61, %v6721_v43  ;;  %v636_v1 = vmul.f32 %v7571_v58, %v6721_v43 }
 0x160   : > { %v5861_v50 = vpop.eup %5860  ;;  %2456 = vmatprep.mubr.f32.mxu1 %v6476_v7  ;;  %5880 = vtanh.f32 %v894_v62  ;;  %v897_v58 = vadd.f32 %v6787_v37, %v677_v13 }
 0x161   : > { %v5863_v56 = vpop.eup %5862  ;;  %5304 = vmatpush1.bf16.msra.mxu1 %v5303_v47  ;;  %v5297_v18 = vpack.c.bf16 %v5861_v50, %v5859_v36  ;;  %5118 = vmatmul.mubr.msk.f32.gmra.mrb[64].mxu0 %vm1129_vm0, %v7381_v2  ;;  %5882 = vtanh.f32 %v737_v34  ;;  %v859_v62 = vadd.f32 %v6747_v54, %v639_v5  ;;  %v598_v34 = vmul.f32 %v7584_v3, %v6718_v41 }
 0x162   : > { %v5865_v59 = vpop.eup %5864  ;;  %5884 = vtanh.f32 %v777_v39  ;;  %2367 = vmatprep.mubr.f32.mxu0 %v6476_v7  ;;  %v816_v39 = vadd.f32 %v6734_v49, %v596_v25  ;;  %v7651_v36 = vrot.slane %v7524_v35, %v6679_v19  ;;  %v856_v57 = vadd.f32 %v6747_v54, %v636_v1 }
 0x163   : > { %v5867_v32 = vpop.eup %5866  ;;  %5298 = vmatprep.subr.bf16.mxu0 %v5297_v18  ;;  %v5305_v10 = vpack.c.bf16 %v5865_v59, %v5863_v56  ;;  %5123 = vmatmul.mubr.msk.f32.gmra.mrb[64].mxu1 %vm1129_vm0, %v7381_v2  ;;  %5886 = vtanh.f32 %v739_v48  ;;  %v679_v48 = vmul.f32 %v7558_v61, %v6776_v27  ;;  %v818_v19 = vadd.f32 %v6734_v49, %v598_v34 }
 0x164   : > { %v5869_v28 = vpop.eup %5868  ;;  %5888 = vtanh.f32 %v779_v17  ;;  %2462 = vmatprep.mubr.f32.mxu1 %v6476_v7  ;;  %v7664_v17 = vrot.slane %v7524_v35, %v6724_v44  ;;  %v858_v61 = vadd.f32 %v6747_v54, %v638_v42  ;;  %v678_v56 = vmul.f32 %v7584_v3, %v6776_v27 }
 0x165   : > { %v5871_v11 = vpop.eup %5870  ;;  %5306 = vmatprep.subr.bf16.mxu1 %v5305_v10  ;;  %v5299_v22 = vpack.c.bf16 %v5869_v28, %v5867_v32  ;;  %5119 = vmatmul.mubr.msk.f32.gmra.mrb[66].mxu0 %vm1129_vm0, %v7400_v24  ;;  %5890 = vtanh.f32 %v736_v46  ;;  %v521_v44 = vmul.f32 %v7651_v36, %v6683_v21  ;;  %v7677_v59 = vrot.slane %v7524_v35, %v6727_v45 }
 0x166   : > { %v5873_v6 = vpop.eup %5872  ;;  %2373 = vmatprep.mubr.f32.mxu0 %v6476_v7  ;;  %5892 = vtanh.f32 %v776_v26  ;;  %v899_v3 = vadd.f32 %v6787_v37, %v679_v48  ;;  %v896_v32 = vadd.f32 %v6787_v37, %v676_v51  ;;  %v561_v10 = vmul.f32 %v7651_v36, %v6702_v31 }
 0x167   : > { %v5875_v12 = vpop.eup %5874  ;;  %5300 = vmatpush1.bf16.msra.mxu0 %v5299_v22  ;;  %v5307_v23 = vpack.c.bf16 %v5873_v6, %v5871_v11  ;;  %5124 = vmatmul.mubr.msk.f32.gmra.mrb[66].mxu1 %vm1129_vm0, %v7400_v24  ;;  %5894 = vtanh.f32 %v738_v52  ;;  %v523_v45 = vmul.f32 %v7664_v17, %v6683_v21  ;;  %v7690_v28 = vrot.slane %v7524_v35, %v6745_v53 }
 0x168   : > { %v5877_v14 = vpop.eup %5876  ;;  %2483 = vmatprep.subr.mxu0 %v5875_v12  ;;  %2468 = vmatprep.mubr.f32.mxu1 %v6476_v7  ;;  %5896 = vtanh.f32 %v778_v16  ;;  %v898_v0 = vadd.f32 %v6787_v37, %v678_v56  ;;  %v563_v33 = vmul.f32 %v7664_v17, %v6702_v31  ;;  %v520_v53 = vmul.f32 %v7677_v59, %v6683_v21 }
 0x169   : > { %v5879_v38 = vpop.eup %5878  ;;  %5308 = vmatpush1.bf16.msra.mxu1 %v5307_v23  ;;  %5120 = vmatmul.mubr.msk.f32.gmra.mrb[68].mxu0 %vm1129_vm0, %v7429_v55  ;;  %5898 = vtanh.f32 %v817_v29  ;;  %v741_v29 = vadd.f32 %v6681_v20, %v521_v44  ;;  %v781_v5 = vadd.f32 %v6700_v30, %v561_v10  ;;  %v560_v6 = vmul.f32 %v7677_v59, %v6702_v31 }
 0x16a   : > { %v5881_v47 = vpop.eup %5880  ;;  %2578 = vmatprep.subr.mxu1 %v5877_v14  ;;  %2539 = vmatprep.mubr.f32.mxu0 %v6476_v7  ;;  %5900 = vtanh.f32 %v857_v8  ;;  %v743_v12 = vadd.f32 %v6681_v20, %v523_v45  ;;  %v522_v23 = vmul.f32 %v7690_v28, %v6683_v21  ;;  %v783_v25 = vadd.f32 %v6700_v30, %v563_v33 }
 0x16b   : > { %v5883_v50 = vpop.eup %5882  ;;  %2484 = vmatpush1.msra.mxu0 %v5879_v38  ;;  %5125 = vmatmul.mubr.msk.f32.gmra.mrb[68].mxu1 %vm1129_vm0, %v7429_v55  ;;  %5902 = vtanh.f32 %v819_v4  ;;  %v562_v14 = vmul.f32 %v7690_v28, %v6702_v31  ;;  %v740_v13 = vadd.f32 %v6681_v20, %v520_v53  ;;  %v780_v21 = vadd.f32 %v6700_v30, %v560_v6 }
 0x16c   : > { %v5885_v63 = vpop.eup %5884  ;;  %2634 = vmatprep.mubr.f32.mxu1 %v6476_v7  ;;  %5904 = vtanh.f32 %v859_v62  ;;  %v742_v31 = vadd.f32 %v6681_v20, %v522_v23  ;;  %v641_v51 = vmul.f32 %v7651_v36, %v6721_v43  ;;  %v600_v44 = vmul.f32 %v7677_v59, %v6718_v41 }
 0x16d   : > { %v5887_v18 = vpop.eup %5886  ;;  %2579 = vmatpush1.msra.mxu1 %v5881_v47  ;;  %v5309_v46 = vpack.c.bf16 %v5885_v63, %v5883_v50  ;;  %5126 = vmatmul.mubr.msk.f32.vlgmr.msra.gmra.mrb[70].mxu0 %vm1129_vm0, %v7331_v15  ;;  %5906 = vtanh.f32 %v816_v39  ;;  %v601_v47 = vmul.f32 %v7651_v36, %v6718_v41  ;;  %v782_v48 = vadd.f32 %v6700_v30, %v562_v14 }
 0x16e   : > { %v5889_v26 = vpop.eup %5888  ;;  %2545 = vmatprep.mubr.f32.mxu0 %v6476_v7  ;;  %5908 = vtanh.f32 %v856_v57  ;;  %v603_v63 = vmul.f32 %v7664_v17, %v6718_v41  ;;  %v861_v30 = vadd.f32 %v6747_v54, %v641_v51  ;;  %v681_v45 = vmul.f32 %v7651_v36, %v6776_v27  ;;  %v6372_v51 = vld [vmem:[%s8247_s1 + $0x8] sm:$0xff] }
 0x16f   : > { %v5891_v52 = vpop.eup %5890  ;;  %5310 = vmatprep.subr.bf16.mxu0 %v5309_v46  ;;  %v5317_v60 = vpack.c.bf16 %v5889_v26, %v5887_v18  ;;  %5131 = vmatmul.mubr.msk.f32.vlgmr.msra.gmra.mrb[70].mxu1 %vm1129_vm0, %v7331_v15  ;;  %5910 = vtanh.f32 %v818_v19  ;;  %v821_v20 = vadd.f32 %v6734_v49, %v601_v47  ;;  %v642_v33 = vmul.f32 %v7690_v28, %v6721_v43 }
 0x170   : > { %v5893_v16 = vpop.eup %5892  ;;  %2640 = vmatprep.mubr.f32.mxu1 %v6476_v7  ;;  %5912 = vtanh.f32 %v858_v61  ;;  %v823_v46 = vadd.f32 %v6734_v49, %v603_v63  ;;  %v683_v36 = vmul.f32 %v7664_v17, %v6776_v27 }
 0x171   : > { %v5895_v11 = vpop.eup %5894  ;;  %5318 = vmatprep.subr.bf16.mxu1 %v5317_v60  ;;  %v5311_v22 = vpack.c.bf16 %v5893_v16, %v5891_v52  ;;  %5127 = vmatmul.mubr.msk.f32.gmra.mrb[72].mxu0 %vm1129_vm0, %v7358_v40  ;;  %5914 = vtanh.f32 %v897_v58  ;;  %v643_v58 = vmul.f32 %v7664_v17, %v6721_v43  ;;  %v820_v52 = vadd.f32 %v6734_v49, %v600_v44 }
 0x172   : > { %v5897_v35 = vpop.eup %5896  ;;  %5916 = vtanh.f32 %v899_v3  ;;  %2551 = vmatprep.mubr.f32.mxu0 %v6476_v7  ;;  %v602_v60 = vmul.f32 %v7690_v28, %v6718_v41  ;;  %v682_v17 = vmul.f32 %v7690_v28, %v6776_v27 }
 0x173   : > { %v5899_v8 = vpop.eup %5898  ;;  %5312 = vmatpush1.bf16.msra.mxu0 %v5311_v22  ;;  %v5319_v4 = vpack.c.bf16 %v5897_v35, %v5895_v11  ;;  %5132 = vmatmul.mubr.msk.f32.gmra.mrb[72].mxu1 %vm1129_vm0, %v7358_v40  ;;  %5918 = vtanh.f32 %v896_v32  ;;  %v863_v3 = vadd.f32 %v6747_v54, %v643_v58  ;;  %v640_v32 = vmul.f32 %v7677_v59, %v6721_v43 }
 0x174   : > { %v5901_v62 = vpop.eup %5900  ;;  %2646 = vmatprep.mubr.f32.mxu1 %v6476_v7  ;;  %5920 = vtanh.f32 %v898_v0  ;;  %v822_v41 = vadd.f32 %v6734_v49, %v602_v60  ;;  %v680_v43 = vmul.f32 %v7677_v59, %v6776_v27  ;;  %v901_v49 = vadd.f32 %v6787_v37, %v681_v45 }
 0x175   : > { %v5903_v1 = vpop.eup %5902  ;;  %5320 = vmatpush1.bf16.msra.mxu1 %v5319_v4  ;;  %v5313_v34 = vpack.c.bf16 %v5901_v62, %v5899_v8  ;;  %5128 = vmatmul.mubr.msk.f32.gmra.mrb[74].mxu0 %vm1129_vm0, %v7381_v2  ;;  %5922 = vtanh.f32 %v741_v29  ;;  %v860_v0 = vadd.f32 %v6747_v54, %v640_v32  ;;  %v862_v29 = vadd.f32 %v6747_v54, %v642_v33 }
 0x176   : > { %v5905_v38 = vpop.eup %5904  ;;  %5924 = vtanh.f32 %v781_v5  ;;  %2557 = vmatprep.mubr.f32.mxu0 %v6476_v7  ;;  %v903_v59 = vadd.f32 %v6787_v37, %v683_v36  ;;  %v900_v4 = vadd.f32 %v6787_v37, %v680_v43 }
 0x177   : > { %v5907_v39 = vpop.eup %5906  ;;  %5314 = vmatprep.subr.bf16.mxu0 %v5313_v34  ;;  %v5321_v42 = vpack.c.bf16 %v5905_v38, %v5903_v1  ;;  %5133 = vmatmul.mubr.msk.f32.gmra.mrb[74].mxu1 %vm1129_vm0, %v7381_v2  ;;  %5926 = vtanh.f32 %v743_v12 }
 0x178   : > { %v5909_v57 = vpop.eup %5908  ;;  %5928 = vtanh.f32 %v783_v25  ;;  %2652 = vmatprep.mubr.f32.mxu1 %v6476_v7 }
 0x179   : > { %v5911_v50 = vpop.eup %5910  ;;  %5322 = vmatprep.subr.bf16.mxu1 %v5321_v42  ;;  %v5315_v19 = vpack.c.bf16 %v5909_v57, %v5907_v39  ;;  %5129 = vmatmul.mubr.msk.f32.gmra.mrb[76].mxu0 %vm1129_vm0, %v7400_v24  ;;  %5930 = vtanh.f32 %v740_v13 }
 0x17a   : > { %v5913_v61 = vpop.eup %5912  ;;  %2563 = vmatprep.mubr.f32.mxu0 %v6476_v7  ;;  %5932 = vtanh.f32 %v780_v21 }
 0x17b   : > { %v5915_v56 = vpop.eup %5914  ;;  %5316 = vmatpush1.bf16.msra.mxu0 %v5315_v19  ;;  %v5323_v18 = vpack.c.bf16 %v5913_v61, %v5911_v50  ;;  %5134 = vmatmul.mubr.msk.f32.gmra.mrb[76].mxu1 %vm1129_vm0, %v7400_v24  ;;  %5934 = vtanh.f32 %v742_v31  ;;  %v6373_v50 = vld [vmem:[%s8247_s1 + $0x10] sm:$0xff] }
 0x17c   : > { %v5917_v26 = vpop.eup %5916  ;;  %2673 = vmatprep.subr.mxu0 %v5915_v56  ;;  %2658 = vmatprep.mubr.f32.mxu1 %v6476_v7  ;;  %5936 = vtanh.f32 %v782_v48  ;;  %v6371_v48 = vld [vmem:[%s8247_s1] sm:$0xff] }
 0x17d   : > { %v5919_v10 = vpop.eup %5918  ;;  %5324 = vmatpush1.bf16.msra.mxu1 %v5323_v18  ;;  %5130 = vmatmul.mubr.msk.f32.gmra.mrb[78].mxu0 %vm1129_vm0, %v7429_v55  ;;  %5938 = vtanh.f32 %v821_v20 }
 0x17e   : > { %v5921_v16 = vpop.eup %5920  ;;  %2768 = vmatprep.subr.mxu1 %v5917_v26  ;;  %2729 = vmatprep.mubr.f32.mxu0 %v6476_v7  ;;  %5940 = vtanh.f32 %v861_v30 }
 0x17f   : > { %v5923_v11 = vpop.eup %5922  ;;  %2674 = vmatpush1.msra.mxu0 %v5919_v10  ;;  %5135 = vmatmul.mubr.msk.f32.gmra.mrb[78].mxu1 %vm1129_vm0, %v7429_v55  ;;  %5942 = vtanh.f32 %v823_v46 }
 0x180   : > { %v5925_v22 = vpop.eup %5924  ;;  %2824 = vmatprep.mubr.f32.mxu1 %v6476_v7  ;;  %5944 = vtanh.f32 %v863_v3 }
 0x181   : > { %v5927_v53 = vpop.eup %5926  ;;  %2769 = vmatpush1.msra.mxu1 %v5921_v16  ;;  %v5325_v35 = vpack.c.bf16 %v5925_v22, %v5923_v11  ;;  %5136 = vmatmul.mubr.msk.f32.vlgmr.msra.gmra.mrb[80].mxu0 %vm1129_vm0, %v7331_v15  ;;  %5946 = vtanh.f32 %v820_v52 }
 0x182   : > { %v5929_v5 = vpop.eup %5928  ;;  %2735 = vmatprep.mubr.f32.mxu0 %v6476_v7  ;;  %5948 = vtanh.f32 %v860_v0 }
 0x183   : > { %v5931_v54 = vpop.eup %5930  ;;  %5326 = vmatprep.subr.bf16.mxu0 %v5325_v35  ;;  %v5333_v6 = vpack.c.bf16 %v5929_v5, %v5927_v53  ;;  %5141 = vmatmul.mubr.msk.f32.vlgmr.msra.gmra.mrb[80].mxu1 %vm1129_vm0, %v7331_v15  ;;  %5950 = vtanh.f32 %v822_v41  ;;  %v902_v15 = vadd.f32 %v6787_v37, %v682_v17 }
 0x184   : > { %v5933_v8 = vpop.eup %5932  ;;  %2830 = vmatprep.mubr.f32.mxu1 %v6476_v7  ;;  %5952 = vtanh.f32 %v862_v29 }
 0x185   : > { %v5935_v12 = vpop.eup %5934  ;;  %5334 = vmatprep.subr.bf16.mxu1 %v5333_v6  ;;  %v5327_v23 = vpack.c.bf16 %v5933_v8, %v5931_v54  ;;  %5137 = vmatmul.mubr.msk.f32.gmra.mrb[82].mxu0 %vm1129_vm0, %v7358_v40  ;;  %5954 = vtanh.f32 %v901_v49 }
 0x186   : > { %v5937_v27 = vpop.eup %5936  ;;  %2741 = vmatprep.mubr.f32.mxu0 %v6476_v7  ;;  %5956 = vtanh.f32 %v903_v59 }
 0x187   : > { %v5939_v28 = vpop.eup %5938  ;;  %5328 = vmatpush1.bf16.msra.mxu0 %v5327_v23  ;;  %v5335_v62 = vpack.c.bf16 %v5937_v27, %v5935_v12  ;;  %5142 = vmatmul.mubr.msk.f32.gmra.mrb[82].mxu1 %vm1129_vm0, %v7358_v40  ;;  %5958 = vtanh.f32 %v900_v4 }
 0x188   : > { %v5941_v25 = vpop.eup %5940  ;;  %2836 = vmatprep.mubr.f32.mxu1 %v6476_v7  ;;  %5960 = vtanh.f32 %v902_v15 }
 0x189   : > { %v5943_v14 = vpop.eup %5942  ;;  %5336 = vmatpush1.bf16.msra.mxu1 %v5335_v62  ;;  %v5329_v1 = vpack.c.bf16 %v5941_v25, %v5939_v28  ;;  %5138 = vmatmul.mubr.msk.f32.gmra.mrb[84].mxu0 %vm1129_vm0, %v7381_v2  ;;  %v7835_v19 = vpop.permute.xlu1 %1110 }
 0x18a   : > { %v5945_v34 = vpop.eup %5944  ;;  %2747 = vmatprep.mubr.f32.mxu0 %v6476_v7 }
 0x18b   : > { %v5947_v37 = vpop.eup %5946  ;;  %5330 = vmatprep.subr.bf16.mxu0 %v5329_v1  ;;  %v5337_v13 = vpack.c.bf16 %v5945_v34, %v5943_v14  ;;  %5143 = vmatmul.mubr.msk.f32.gmra.mrb[84].mxu1 %vm1129_vm0, %v7381_v2 }
 0x18c   : > { %v5949_v40 = vpop.eup %5948  ;;  %2842 = vmatprep.mubr.f32.mxu1 %v6476_v7 }
 0x18d   : > { %v5951_v38 = vpop.eup %5950  ;;  %5338 = vmatprep.subr.bf16.mxu1 %v5337_v13  ;;  %v5331_v21 = vpack.c.bf16 %v5949_v40, %v5947_v37  ;;  %5139 = vmatmul.mubr.msk.f32.gmra.mrb[86].mxu0 %vm1129_vm0, %v7400_v24  ;;  %v7839_v58 = vpop.permute.xlu0 %1114 }
 0x18e   : > { %v5953_v39 = vpop.eup %5952  ;;  %2753 = vmatprep.mubr.f32.mxu0 %v6476_v7 }
 0x18f   : > { %v5955_v42 = vpop.eup %5954  ;;  %5332 = vmatpush1.bf16.msra.mxu0 %v5331_v21  ;;  %v5339_v31 = vpack.c.bf16 %v5953_v39, %v5951_v38  ;;  %5144 = vmatmul.mubr.msk.f32.gmra.mrb[86].mxu1 %vm1129_vm0, %v7400_v24  ;;  %v7843_v44 = vpop.permute.xlu1 %1118 }
 0x190   : > { %2863 = vmatprep.subr.mxu0 %v5955_v42  ;;  %2848 = vmatprep.mubr.f32.mxu1 %v6476_v7  ;;  %v5957_v2 = vpop.eup %5956 }
 0x191   : > { %5340 = vmatpush1.bf16.msra.mxu1 %v5339_v31  ;;  %5140 = vmatmul.mubr.msk.f32.gmra.mrb[88].mxu0 %vm1129_vm0, %v7429_v55  ;;  %v5959_v47 = vpop.eup %5958  ;;  %v7857_v59 = vpop.permute.xlu0 %1126 }
 0x192   : > { %2958 = vmatprep.subr.mxu1 %v5957_v2  ;;  %2919 = vmatprep.mubr.f32.mxu0 %v6476_v7  ;;  %v5961_v57 = vpop.eup %5960 }
 0x193   : > { %2864 = vmatpush1.msra.mxu0 %v5959_v47  ;;  %5145 = vmatmul.mubr.msk.f32.gmra.mrb[88].mxu1 %vm1129_vm0, %v7429_v55  ;;  %v7851_v36 = vpop.permute.xlu1 %1122 }
 0x194   : > { %3014 = vmatprep.mubr.f32.mxu1 %v6476_v7 }
 0x195   : > { %2959 = vmatpush1.msra.mxu1 %v5961_v57  ;;  %5146 = vmatmul.mubr.msk.f32.vlgmr.msra.gmra.mrb[90].mxu0 %vm1129_vm0, %v6371_v48 }
 0x196   : > { %2925 = vmatprep.mubr.f32.mxu0 %v6476_v7 }
 0x197   : > { %5151 = vmatmul.mubr.msk.f32.vlgmr.msra.gmra.mrb[90].mxu1 %vm1129_vm0, %v6371_v48 }
 0x198   : > { %3020 = vmatprep.mubr.f32.mxu1 %v6476_v7 }
 0x199   : > { %5147 = vmatmul.mubr.msk.f32.gmra.mrb[92].mxu0 %vm1129_vm0, %v6372_v51 }
 0x19a   : > { %2931 = vmatprep.mubr.f32.mxu0 %v6476_v7 }
 0x19b   : > { %5152 = vmatmul.mubr.msk.f32.gmra.mrb[92].mxu1 %vm1129_vm0, %v6372_v51 }
 0x19c   : > { %3026 = vmatprep.mubr.f32.mxu1 %v6476_v7 }
 0x19d   : > { %5148 = vmatmul.mubr.msk.f32.gmra.mrb[94].mxu0 %vm1129_vm0, %v6373_v50 }
 0x19e   : > { %2937 = vmatprep.mubr.f32.mxu0 %v6476_v7 }
 0x19f   : > { %5153 = vmatmul.mubr.msk.f32.gmra.mrb[94].mxu1 %vm1129_vm0, %v6373_v50 }
 0x1a0   : > { %3032 = vmatprep.mubr.f32.mxu1 %v6476_v7 }
 0x1a1   : > { %5149 = vmatmul.mubr.msk.f32.gmra.mrb[96].mxu0 %vm1129_vm0, %v7400_v24 }
 0x1a2   : > { %2943 = vmatprep.mubr.f32.mxu0 %v6476_v7 }
 0x1a3   : > { %5154 = vmatmul.mubr.msk.f32.gmra.mrb[96].mxu1 %vm1129_vm0, %v7400_v24 }
 0x1a4   : > { %3038 = vmatprep.mubr.f32.mxu1 %v6476_v7 }
 0x1a5   : > { %5150 = vmatmul.mubr.msk.f32.gmra.mrb[98].mxu0 %vm1129_vm0, %v7429_v55 }
 0x1a6   : > { %3315 = vmatprep.mubr.f32.mxu0 %v6476_v7 }
 0x1a7   : > { %5155 = vmatmul.mubr.msk.f32.gmra.mrb[98].mxu1 %vm1129_vm0, %v7429_v55 }
 0x1a8   : > { %3386 = vmatprep.mubr.f32.mxu1 %v6476_v7 }
 0x1b4   : > { %v1211_v20 = vpop.f32.mrb[0].mxu0 }
 0x1b5   : > { %v1213_v63 = vpop.f32.mrb[1].mxu0  ;;  %v1212_v61 = vadd.f32 %v1211_v20, %v7835_v19 }
 0x1b6   : > { %v1306_v30 = vpop.f32.mrb[0].mxu1  ;;  %v1214_v24 = vadd.f32 %v1213_v63, %v7835_v19 }
 0x1b7   : > { %v1308_v56 = vpop.f32.mrb[1].mxu1  ;;  %5962 = vtanh.f32 %v1212_v61  ;;  %v1307_v18 = vadd.f32 %v1306_v30, %v7835_v19 }
 0x1b8   : > { %5964 = vtanh.f32 %v1214_v24  ;;  %v1309_v55 = vadd.f32 %v1308_v56, %v7835_v19  ;;  %v1217_v46 = vpop.f32.mrb[2].mxu0 }
 0x1b9   : > { %v1218_v26 = vadd.f32 %v1217_v46, %v7839_v58  ;;  %v1219_v3 = vpop.f32.mrb[3].mxu0  ;;  %5966 = vtanh.f32 %v1307_v18 }
 0x1ba   : > { %5968 = vtanh.f32 %v1309_v55  ;;  %v1312_v32 = vpop.f32.mrb[2].mxu1  ;;  %v1220_v10 = vadd.f32 %v1219_v3, %v7839_v58 }
 0x1bb   : > { %5970 = vtanh.f32 %v1218_v26  ;;  %v1313_v52 = vadd.f32 %v1312_v32, %v7839_v58  ;;  %v1314_v60 = vpop.f32.mrb[3].mxu1 }
 0x1bc   : > { %5972 = vtanh.f32 %v1220_v10  ;;  %v1315_v45 = vadd.f32 %v1314_v60, %v7839_v58  ;;  %v1223_v16 = vpop.f32.mrb[4].mxu0 }
 0x1bd   : > { %5974 = vtanh.f32 %v1313_v52  ;;  %v1224_v0 = vadd.f32 %v1223_v16, %v7843_v44  ;;  %v1225_v33 = vpop.f32.mrb[5].mxu0 }
 0x1be   : > { %5976 = vtanh.f32 %v1315_v45  ;;  %v1318_v11 = vpop.f32.mrb[4].mxu1  ;;  %v1226_v41 = vadd.f32 %v1225_v33, %v7843_v44 }
 0x1bf   : > { %5978 = vtanh.f32 %v1224_v0  ;;  %v1319_v22 = vadd.f32 %v1318_v11, %v7843_v44  ;;  %v1320_v29 = vpop.f32.mrb[5].mxu1 }
 0x1c0   : > { %5980 = vtanh.f32 %v1226_v41  ;;  %v1321_v43 = vadd.f32 %v1320_v29, %v7843_v44  ;;  %v1229_v53 = vpop.f32.mrb[6].mxu0 }
 0x1c1   : > { %v5963_v35 = vpop.eup %5962  ;;  %5982 = vtanh.f32 %v1319_v22  ;;  %v1230_v49 = vadd.f32 %v1229_v53, %v7851_v36  ;;  %v1231_v5 = vpop.f32.mrb[7].mxu0 }
 0x1c2   : > { %v5965_v17 = vpop.eup %5964  ;;  %5984 = vtanh.f32 %v1321_v43  ;;  %v1324_v54 = vpop.f32.mrb[6].mxu1  ;;  %v1232_v6 = vadd.f32 %v1231_v5, %v7851_v36 }
 0x1c3   : > { %v5967_v8 = vpop.eup %5966  ;;  %5986 = vtanh.f32 %v1230_v49  ;;  %v1325_v4 = vadd.f32 %v1324_v54, %v7851_v36  ;;  %v1326_v12 = vpop.f32.mrb[7].mxu1 }
 0x1c4   : > { %v5969_v23 = vpop.eup %5968  ;;  %5988 = vtanh.f32 %v1232_v6  ;;  %v1327_v27 = vadd.f32 %v1326_v12, %v7851_v36  ;;  %v1235_v15 = vpop.f32.mrb[8].mxu0 }
 0x1c5   : > { %v5971_v28 = vpop.eup %5970  ;;  %5990 = vtanh.f32 %v1325_v4  ;;  %v1237_v62 = vpop.f32.mrb[9].mxu0  ;;  %v1236_v25 = vadd.f32 %v1235_v15, %v7857_v59  ;;  %v7880_v15 = vld [vmem:[%s8249_s3] sm:$0x1] }
 0x1c6   : > { %v5973_v14 = vpop.eup %5972  ;;  %5992 = vtanh.f32 %v1327_v27  ;;  %v1330_v1 = vpop.f32.mrb[8].mxu1  ;;  %v1238_v34 = vadd.f32 %v1237_v62, %v7857_v59  ;;  %v5343_v37 = vpack.c.bf16 %v5971_v28, %v5963_v35 }
 0x1c7   : > { %v5975_v13 = vpop.eup %5974  ;;  %v1332_v40 = vpop.f32.mrb[9].mxu1  ;;  %v5341_v38 = vpack.c.bf16 %v5973_v14, %v5965_v17  ;;  %5994 = vtanh.f32 %v1236_v25  ;;  %v1331_v21 = vadd.f32 %v1330_v1, %v7857_v59 }
 0x1c8   : > { %v5977_v39 = vpop.eup %5976  ;;  %5996 = vtanh.f32 %v1238_v34  ;;  %v1333_v42 = vadd.f32 %v1332_v40, %v7857_v59  ;;  %v1401_v31 = vpop.f32.mrb[10].mxu0  ;;  %v5351_v2 = vpack.c.bf16 %v5975_v13, %v5967_v8 }
 0x1c9   : > { %v5979_v47 = vpop.eup %5978  ;;  %v1402_v57 = vadd.f32 %v1401_v31, %v7835_v19  ;;  %v1403_v48 = vpop.f32.mrb[11].mxu0  ;;  %5342 = vmatprep.subr.bf16.mxu0 %v5341_v38  ;;  %v5349_v51 = vpack.c.bf16 %v5977_v39, %v5969_v23  ;;  %5998 = vtanh.f32 %v1331_v21 }
 0x1ca   : > { %v5981_v50 = vpop.eup %5980  ;;  %6000 = vtanh.f32 %v1333_v42  ;;  %v1496_v20 = vpop.f32.mrb[10].mxu1  ;;  %v1404_v63 = vadd.f32 %v1403_v48, %v7835_v19  ;;  %5344 = vmatpush1.bf16.msra.mxu0 %v5343_v37 }
 0x1cb   : > { %v5983_v61 = vpop.eup %5982  ;;  %6002 = vtanh.f32 %v1402_v57  ;;  %v1497_v30 = vadd.f32 %v1496_v20, %v7835_v19  ;;  %v1498_v24 = vpop.f32.mrb[11].mxu1  ;;  %5350 = vmatprep.subr.bf16.mxu1 %v5349_v51 }
 0x1cc   : > { %v5985_v56 = vpop.eup %5984  ;;  %6004 = vtanh.f32 %v1404_v63  ;;  %v1499_v18 = vadd.f32 %v1498_v24, %v7835_v19  ;;  %5352 = vmatpush1.bf16.msra.mxu1 %v5351_v2  ;;  %v1407_v55 = vpop.f32.mrb[12].mxu0 }
 0x1cd   : > { %v5987_v46 = vpop.eup %5986  ;;  %6006 = vtanh.f32 %v1497_v30  ;;  %v1408_v26 = vadd.f32 %v1407_v55, %v7839_v58  ;;  %v1409_v3 = vpop.f32.mrb[13].mxu0 }
 0x1ce   : > { %v5989_v32 = vpop.eup %5988  ;;  %6008 = vtanh.f32 %v1499_v18  ;;  %v1502_v10 = vpop.f32.mrb[12].mxu1  ;;  %v1410_v52 = vadd.f32 %v1409_v3, %v7839_v58  ;;  %v5347_v60 = vpack.c.bf16 %v5987_v46, %v5979_v47 }
 0x1cf   : > { %v5991_v45 = vpop.eup %5990  ;;  %6010 = vtanh.f32 %v1408_v26  ;;  %v1503_v16 = vadd.f32 %v1502_v10, %v7839_v58  ;;  %v1504_v0 = vpop.f32.mrb[13].mxu1  ;;  %v5345_v33 = vpack.c.bf16 %v5989_v32, %v5981_v50 }
 0x1d0   : > { %v5993_v11 = vpop.eup %5992  ;;  %6012 = vtanh.f32 %v1410_v52  ;;  %v1505_v41 = vadd.f32 %v1504_v0, %v7839_v58  ;;  %v1413_v22 = vpop.f32.mrb[14].mxu0  ;;  %v5355_v29 = vpack.c.bf16 %v5991_v45, %v5983_v61 }
 0x1d1   : > { %v5995_v43 = vpop.eup %5994  ;;  %6014 = vtanh.f32 %v1503_v16  ;;  %v1414_v53 = vadd.f32 %v1413_v22, %v7843_v44  ;;  %v1415_v35 = vpop.f32.mrb[15].mxu0  ;;  %5346 = vmatprep.subr.bf16.mxu0 %v5345_v33  ;;  %v5353_v49 = vpack.c.bf16 %v5993_v11, %v5985_v56 }
 0x1d2   : > { %v5997_v5 = vpop.eup %5996  ;;  %6016 = vtanh.f32 %v1505_v41  ;;  %v1508_v17 = vpop.f32.mrb[14].mxu1  ;;  %v1416_v54 = vadd.f32 %v1415_v35, %v7843_v44  ;;  %5348 = vmatpush1.bf16.msra.mxu0 %v5347_v60 }
 0x1d3   : > { %v5999_v6 = vpop.eup %5998  ;;  %6018 = vtanh.f32 %v1414_v53  ;;  %v1509_v8 = vadd.f32 %v1508_v17, %v7843_v44  ;;  %v1510_v4 = vpop.f32.mrb[15].mxu1  ;;  %5354 = vmatprep.subr.bf16.mxu1 %v5353_v49  ;;  %3259 = vmatprep.subr.mxu0 %v5997_v5 }
 0x1d4   : > { %v6001_v12 = vpop.eup %6000  ;;  %6020 = vtanh.f32 %v1416_v54  ;;  %v1511_v23 = vadd.f32 %v1510_v4, %v7843_v44  ;;  %5356 = vmatpush1.bf16.msra.mxu1 %v5355_v29  ;;  %v1419_v27 = vpop.f32.mrb[16].mxu0 }
 0x1d5   : > { %v6003_v28 = vpop.eup %6002  ;;  %6022 = vtanh.f32 %v1509_v8  ;;  %3330 = vmatprep.subr.mxu1 %v6001_v12  ;;  %v1420_v62 = vadd.f32 %v1419_v27, %v7851_v36  ;;  %v1421_v25 = vpop.f32.mrb[17].mxu0 }
 0x1d6   : > { %v6005_v14 = vpop.eup %6004  ;;  %6024 = vtanh.f32 %v1511_v23  ;;  %v1514_v1 = vpop.f32.mrb[16].mxu1  ;;  %v1422_v34 = vadd.f32 %v1421_v25, %v7851_v36  ;;  %3260 = vmatpush1.msra.mxu0 %v5995_v43 }
 0x1d7   : > { %v6007_v37 = vpop.eup %6006  ;;  %6026 = vtanh.f32 %v1420_v62  ;;  %v1515_v13 = vadd.f32 %v1514_v1, %v7851_v36  ;;  %v1516_v40 = vpop.f32.mrb[17].mxu1  ;;  %5156 = vmatmul.mubr.msk.f32.vlgmr.msra.gmra.mrb[100].mxu0 %vm1129_vm0, %v7880_v15 }
 0x1d8   : > { %v6009_v38 = vpop.eup %6008  ;;  %6028 = vtanh.f32 %v1422_v34  ;;  %v1517_v21 = vadd.f32 %v1516_v40, %v7851_v36  ;;  %3331 = vmatpush1.msra.mxu1 %v5999_v6  ;;  %v1425_v39 = vpop.f32.mrb[18].mxu0  ;;  %3457 = vmatprep.mubr.f32.mxu0 %v6476_v7 }
 0x1d9   : > { %v6011_v42 = vpop.eup %6010  ;;  %6030 = vtanh.f32 %v1515_v13  ;;  %v1426_v31 = vadd.f32 %v1425_v39, %v7857_v59  ;;  %v1427_v2 = vpop.f32.mrb[19].mxu0  ;;  %5157 = vmatmul.mubr.msk.f32.vlgmr.msra.gmra.mrb[100].mxu1 %vm1129_vm0, %v7880_v15 }
 0x1da   : > { %v6013_v47 = vpop.eup %6012  ;;  %6032 = vtanh.f32 %v1517_v21  ;;  %v1520_v57 = vpop.f32.mrb[18].mxu1  ;;  %v1428_v48 = vadd.f32 %v1427_v2, %v7857_v59  ;;  %v5359_v51 = vpack.c.bf16 %v6011_v42, %v6003_v28  ;;  %3528 = vmatprep.mubr.f32.mxu1 %v6476_v7 }
 0x1db   : > { %v6015_v50 = vpop.eup %6014  ;;  %6034 = vtanh.f32 %v1426_v31  ;;  %v1521_v20 = vadd.f32 %v1520_v57, %v7857_v59  ;;  %v1522_v63 = vpop.f32.mrb[19].mxu1  ;;  %v5357_v61 = vpack.c.bf16 %v6013_v47, %v6005_v14 }
 0x1dc   : > { %v6017_v30 = vpop.eup %6016  ;;  %6036 = vtanh.f32 %v1428_v48  ;;  %v1523_v24 = vadd.f32 %v1522_v63, %v7857_v59  ;;  %v1591_v56 = vpop.f32.mrb[20].mxu0  ;;  %v5367_v18 = vpack.c.bf16 %v6015_v50, %v6007_v37 }
 0x1dd   : > { %v6019_v55 = vpop.eup %6018  ;;  %6038 = vtanh.f32 %v1521_v20  ;;  %v1592_v46 = vadd.f32 %v1591_v56, %v7835_v19  ;;  %v1593_v26 = vpop.f32.mrb[21].mxu0  ;;  %5358 = vmatprep.subr.bf16.mxu0 %v5357_v61  ;;  %v5365_v3 = vpack.c.bf16 %v6017_v30, %v6009_v38 }
 0x1de   : > { %v6021_v32 = vpop.eup %6020  ;;  %6040 = vtanh.f32 %v1523_v24  ;;  %v1686_v10 = vpop.f32.mrb[20].mxu1  ;;  %v1594_v52 = vadd.f32 %v1593_v26, %v7835_v19  ;;  %5360 = vmatpush1.bf16.msra.mxu0 %v5359_v51 }
 0x1df   : > { %v6023_v60 = vpop.eup %6022  ;;  %6042 = vtanh.f32 %v1592_v46  ;;  %v1687_v45 = vadd.f32 %v1686_v10, %v7835_v19  ;;  %v1688_v16 = vpop.f32.mrb[21].mxu1  ;;  %5366 = vmatprep.subr.bf16.mxu1 %v5365_v3 }
 0x1e0   : > { %v6025_v0 = vpop.eup %6024  ;;  %6044 = vtanh.f32 %v1594_v52  ;;  %v1689_v33 = vadd.f32 %v1688_v16, %v7835_v19  ;;  %5368 = vmatpush1.bf16.msra.mxu1 %v5367_v18  ;;  %v1597_v11 = vpop.f32.mrb[22].mxu0 }
 0x1e1   : > { %v6027_v41 = vpop.eup %6026  ;;  %6046 = vtanh.f32 %v1687_v45  ;;  %v1598_v22 = vadd.f32 %v1597_v11, %v7839_v58  ;;  %v1599_v29 = vpop.f32.mrb[23].mxu0 }
 0x1e2   : > { %v6029_v43 = vpop.eup %6028  ;;  %6048 = vtanh.f32 %v1689_v33  ;;  %v1692_v53 = vpop.f32.mrb[22].mxu1  ;;  %v1600_v35 = vadd.f32 %v1599_v29, %v7839_v58  ;;  %v5363_v49 = vpack.c.bf16 %v6027_v41, %v6019_v55 }
 0x1e3   : > { %v6031_v5 = vpop.eup %6030  ;;  %6050 = vtanh.f32 %v1598_v22  ;;  %v1693_v17 = vadd.f32 %v1692_v53, %v7839_v58  ;;  %v1694_v54 = vpop.f32.mrb[23].mxu1  ;;  %v5361_v6 = vpack.c.bf16 %v6029_v43, %v6021_v32 }
 0x1e4   : > { %v6033_v8 = vpop.eup %6032  ;;  %6052 = vtanh.f32 %v1600_v35  ;;  %v1695_v4 = vadd.f32 %v1694_v54, %v7839_v58  ;;  %v1603_v12 = vpop.f32.mrb[24].mxu0  ;;  %v5371_v23 = vpack.c.bf16 %v6031_v5, %v6023_v60 }
 0x1e5   : > { %v6035_v27 = vpop.eup %6034  ;;  %6054 = vtanh.f32 %v1693_v17  ;;  %v1604_v28 = vadd.f32 %v1603_v12, %v7843_v44  ;;  %v1605_v62 = vpop.f32.mrb[25].mxu0  ;;  %5362 = vmatprep.subr.bf16.mxu0 %v5361_v6  ;;  %v5369_v25 = vpack.c.bf16 %v6033_v8, %v6025_v0 }
 0x1e6   : > { %v6037_v14 = vpop.eup %6036  ;;  %6056 = vtanh.f32 %v1695_v4  ;;  %v1698_v1 = vpop.f32.mrb[24].mxu1  ;;  %v1606_v34 = vadd.f32 %v1605_v62, %v7843_v44  ;;  %5364 = vmatpush1.bf16.msra.mxu0 %v5363_v49 }
 0x1e7   : > { %v6039_v37 = vpop.eup %6038  ;;  %6058 = vtanh.f32 %v1604_v28  ;;  %v1699_v13 = vadd.f32 %v1698_v1, %v7843_v44  ;;  %v1700_v40 = vpop.f32.mrb[25].mxu1  ;;  %5370 = vmatprep.subr.bf16.mxu1 %v5369_v25  ;;  %3401 = vmatprep.subr.mxu0 %v6037_v14 }
 0x1e8   : > { %v6041_v38 = vpop.eup %6040  ;;  %6060 = vtanh.f32 %v1606_v34  ;;  %v1701_v21 = vadd.f32 %v1700_v40, %v7843_v44  ;;  %5372 = vmatpush1.bf16.msra.mxu1 %v5371_v23  ;;  %v1609_v39 = vpop.f32.mrb[26].mxu0 }
 0x1e9   : > { %v6043_v42 = vpop.eup %6042  ;;  %6062 = vtanh.f32 %v1699_v13  ;;  %3472 = vmatprep.subr.mxu1 %v6041_v38  ;;  %v1610_v31 = vadd.f32 %v1609_v39, %v7851_v36  ;;  %v1611_v2 = vpop.f32.mrb[27].mxu0 }
 0x1ea   : > { %v6045_v47 = vpop.eup %6044  ;;  %6064 = vtanh.f32 %v1701_v21  ;;  %v1704_v57 = vpop.f32.mrb[26].mxu1  ;;  %v1612_v48 = vadd.f32 %v1611_v2, %v7851_v36  ;;  %3402 = vmatpush1.msra.mxu0 %v6035_v27 }
 0x1eb   : > { %v6047_v51 = vpop.eup %6046  ;;  %6066 = vtanh.f32 %v1610_v31  ;;  %v1705_v50 = vadd.f32 %v1704_v57, %v7851_v36  ;;  %v1706_v20 = vpop.f32.mrb[27].mxu1  ;;  %5158 = vmatmul.mubr.msk.f32.vlgmr.msra.gmra.mrb[102].mxu0 %vm1129_vm0, %v7880_v15 }
 0x1ec   : > { %v6049_v63 = vpop.eup %6048  ;;  %6068 = vtanh.f32 %v1612_v48  ;;  %v1707_v61 = vadd.f32 %v1706_v20, %v7851_v36  ;;  %3473 = vmatpush1.msra.mxu1 %v6039_v37  ;;  %v1615_v30 = vpop.f32.mrb[28].mxu0  ;;  %3599 = vmatprep.mubr.f32.mxu0 %v6476_v7 }
 0x1ed   : > { %v6051_v24 = vpop.eup %6050  ;;  %6070 = vtanh.f32 %v1705_v50  ;;  %v1616_v56 = vadd.f32 %v1615_v30, %v7857_v59  ;;  %v1617_v18 = vpop.f32.mrb[29].mxu0  ;;  %5159 = vmatmul.mubr.msk.f32.vlgmr.msra.gmra.mrb[102].mxu1 %vm1129_vm0, %v7880_v15 }
 0x1ee   : > { %v6053_v55 = vpop.eup %6052  ;;  %6072 = vtanh.f32 %v1707_v61  ;;  %v1710_v46 = vpop.f32.mrb[28].mxu1  ;;  %v1618_v26 = vadd.f32 %v1617_v18, %v7857_v59  ;;  %v5375_v3 = vpack.c.bf16 %v6051_v24, %v6043_v42  ;;  %3670 = vmatprep.mubr.f32.mxu1 %v6476_v7 }
 0x1ef   : > { %v6055_v32 = vpop.eup %6054  ;;  %6074 = vtanh.f32 %v1616_v56  ;;  %v1711_v10 = vadd.f32 %v1710_v46, %v7857_v59  ;;  %v1712_v52 = vpop.f32.mrb[29].mxu1  ;;  %v5373_v60 = vpack.c.bf16 %v6053_v55, %v6045_v47 }
 0x1f0   : > { %v6057_v45 = vpop.eup %6056  ;;  %6076 = vtanh.f32 %v1618_v26  ;;  %v1713_v16 = vadd.f32 %v1712_v52, %v7857_v59  ;;  %v1781_v0 = vpop.f32.mrb[30].mxu0  ;;  %v5383_v33 = vpack.c.bf16 %v6055_v32, %v6047_v51 }
 0x1f1   : > { %v6059_v11 = vpop.eup %6058  ;;  %6078 = vtanh.f32 %v1711_v10  ;;  %v1782_v41 = vadd.f32 %v1781_v0, %v7835_v19  ;;  %v1783_v22 = vpop.f32.mrb[31].mxu0  ;;  %5374 = vmatprep.subr.bf16.mxu0 %v5373_v60  ;;  %v5381_v29 = vpack.c.bf16 %v6057_v45, %v6049_v63 }
 0x1f2   : > { %v6061_v43 = vpop.eup %6060  ;;  %6080 = vtanh.f32 %v1713_v16  ;;  %v1876_v53 = vpop.f32.mrb[30].mxu1  ;;  %v1784_v35 = vadd.f32 %v1783_v22, %v7835_v19  ;;  %5376 = vmatpush1.bf16.msra.mxu0 %v5375_v3 }
 0x1f3   : > { %v6063_v49 = vpop.eup %6062  ;;  %6082 = vtanh.f32 %v1782_v41  ;;  %v1877_v5 = vadd.f32 %v1876_v53, %v7835_v19  ;;  %v1878_v17 = vpop.f32.mrb[31].mxu1  ;;  %5382 = vmatprep.subr.bf16.mxu1 %v5381_v29 }
 0x1f4   : > { %v6065_v54 = vpop.eup %6064  ;;  %6084 = vtanh.f32 %v1784_v35  ;;  %v1879_v6 = vadd.f32 %v1878_v17, %v7835_v19  ;;  %5384 = vmatpush1.bf16.msra.mxu1 %v5383_v33  ;;  %v1787_v8 = vpop.f32.mrb[32].mxu0 }
 0x1f5   : > { %v6067_v4 = vpop.eup %6066  ;;  %6086 = vtanh.f32 %v1877_v5  ;;  %v1788_v12 = vadd.f32 %v1787_v8, %v7839_v58  ;;  %v1789_v23 = vpop.f32.mrb[33].mxu0 }
 0x1f6   : > { %v6069_v27 = vpop.eup %6068  ;;  %6088 = vtanh.f32 %v1879_v6  ;;  %v1882_v28 = vpop.f32.mrb[32].mxu1  ;;  %v1790_v62 = vadd.f32 %v1789_v23, %v7839_v58  ;;  %v5379_v25 = vpack.c.bf16 %v6067_v4, %v6059_v11 }
 0x1f7   : > { %v6071_v14 = vpop.eup %6070  ;;  %6090 = vtanh.f32 %v1788_v12  ;;  %v1883_v1 = vadd.f32 %v1882_v28, %v7839_v58  ;;  %v1884_v34 = vpop.f32.mrb[33].mxu1  ;;  %v5377_v37 = vpack.c.bf16 %v6069_v27, %v6061_v43 }
 0x1f8   : > { %v6073_v13 = vpop.eup %6072  ;;  %6092 = vtanh.f32 %v1790_v62  ;;  %v1885_v40 = vadd.f32 %v1884_v34, %v7839_v58  ;;  %v1793_v38 = vpop.f32.mrb[34].mxu0  ;;  %v5387_v21 = vpack.c.bf16 %v6071_v14, %v6063_v49 }
 0x1f9   : > { %v6075_v39 = vpop.eup %6074  ;;  %6094 = vtanh.f32 %v1883_v1  ;;  %v1794_v42 = vadd.f32 %v1793_v38, %v7843_v44  ;;  %v1795_v31 = vpop.f32.mrb[35].mxu0  ;;  %5378 = vmatprep.subr.bf16.mxu0 %v5377_v37  ;;  %v5385_v2 = vpack.c.bf16 %v6073_v13, %v6065_v54 }
 0x1fa   : > { %v6077_v47 = vpop.eup %6076  ;;  %6096 = vtanh.f32 %v1885_v40  ;;  %v1888_v57 = vpop.f32.mrb[34].mxu1  ;;  %v1796_v48 = vadd.f32 %v1795_v31, %v7843_v44  ;;  %5380 = vmatpush1.bf16.msra.mxu0 %v5379_v25 }
 0x1fb   : > { %v6079_v51 = vpop.eup %6078  ;;  %6098 = vtanh.f32 %v1794_v42  ;;  %v1889_v50 = vadd.f32 %v1888_v57, %v7843_v44  ;;  %v1890_v20 = vpop.f32.mrb[35].mxu1  ;;  %5386 = vmatprep.subr.bf16.mxu1 %v5385_v2  ;;  %3543 = vmatprep.subr.mxu0 %v6077_v47 }
 0x1fc   : > { %v6081_v63 = vpop.eup %6080  ;;  %6100 = vtanh.f32 %v1796_v48  ;;  %v1891_v61 = vadd.f32 %v1890_v20, %v7843_v44  ;;  %5388 = vmatpush1.bf16.msra.mxu1 %v5387_v21  ;;  %v1799_v30 = vpop.f32.mrb[36].mxu0 }
 0x1fd   : > { %v6083_v24 = vpop.eup %6082  ;;  %6102 = vtanh.f32 %v1889_v50  ;;  %3614 = vmatprep.subr.mxu1 %v6081_v63  ;;  %v1800_v56 = vadd.f32 %v1799_v30, %v7851_v36  ;;  %v1801_v18 = vpop.f32.mrb[37].mxu0 }
 0x1fe   : > { %v6085_v55 = vpop.eup %6084  ;;  %6104 = vtanh.f32 %v1891_v61  ;;  %v1894_v46 = vpop.f32.mrb[36].mxu1  ;;  %v1802_v26 = vadd.f32 %v1801_v18, %v7851_v36  ;;  %3544 = vmatpush1.msra.mxu0 %v6075_v39 }
 0x1ff   : > { %v6087_v3 = vpop.eup %6086  ;;  %6106 = vtanh.f32 %v1800_v56  ;;  %v1895_v32 = vadd.f32 %v1894_v46, %v7851_v36  ;;  %v1896_v10 = vpop.f32.mrb[37].mxu1  ;;  %5160 = vmatmul.mubr.msk.f32.vlgmr.msra.gmra.mrb[104].mxu0 %vm1129_vm0, %v7880_v15 }
 0x200   : > { %v6089_v52 = vpop.eup %6088  ;;  %6108 = vtanh.f32 %v1802_v26  ;;  %v1897_v60 = vadd.f32 %v1896_v10, %v7851_v36  ;;  %3615 = vmatpush1.msra.mxu1 %v6079_v51  ;;  %v1805_v45 = vpop.f32.mrb[38].mxu0  ;;  %3741 = vmatprep.mubr.f32.mxu0 %v6476_v7 }
 0x201   : > { %v6091_v16 = vpop.eup %6090  ;;  %6110 = vtanh.f32 %v1895_v32  ;;  %v1806_v0 = vadd.f32 %v1805_v45, %v7857_v59  ;;  %v1807_v33 = vpop.f32.mrb[39].mxu0  ;;  %5161 = vmatmul.mubr.msk.f32.vlgmr.msra.gmra.mrb[104].mxu1 %vm1129_vm0, %v7880_v15 }
 0x202   : > { %v6093_v11 = vpop.eup %6092  ;;  %6112 = vtanh.f32 %v1897_v60  ;;  %v1900_v41 = vpop.f32.mrb[38].mxu1  ;;  %v1808_v22 = vadd.f32 %v1807_v33, %v7857_v59  ;;  %v5391_v29 = vpack.c.bf16 %v6091_v16, %v6083_v24  ;;  %3812 = vmatprep.mubr.f32.mxu1 %v6476_v7 }
 0x203   : > { %v6095_v43 = vpop.eup %6094  ;;  %6114 = vtanh.f32 %v1806_v0  ;;  %v1901_v53 = vadd.f32 %v1900_v41, %v7857_v59  ;;  %v1902_v35 = vpop.f32.mrb[39].mxu1  ;;  %v5389_v49 = vpack.c.bf16 %v6093_v11, %v6085_v55 }
 0x204   : > { %v6097_v5 = vpop.eup %6096  ;;  %6116 = vtanh.f32 %v1808_v22  ;;  %v1903_v17 = vadd.f32 %v1902_v35, %v7857_v59  ;;  %v1971_v54 = vpop.f32.mrb[40].mxu0  ;;  %v5399_v6 = vpack.c.bf16 %v6095_v43, %v6087_v3 }
 0x205   : > { %v6099_v8 = vpop.eup %6098  ;;  %6118 = vtanh.f32 %v1901_v53  ;;  %v1972_v4 = vadd.f32 %v1971_v54, %v7835_v19  ;;  %v1973_v12 = vpop.f32.mrb[41].mxu0  ;;  %5390 = vmatprep.subr.bf16.mxu0 %v5389_v49  ;;  %v5397_v23 = vpack.c.bf16 %v6097_v5, %v6089_v52 }
 0x206   : > { %v6101_v27 = vpop.eup %6100  ;;  %6120 = vtanh.f32 %v1903_v17  ;;  %v2066_v28 = vpop.f32.mrb[40].mxu1  ;;  %v1974_v62 = vadd.f32 %v1973_v12, %v7835_v19  ;;  %5392 = vmatpush1.bf16.msra.mxu0 %v5391_v29 }
 0x207   : > { %v6103_v25 = vpop.eup %6102  ;;  %6122 = vtanh.f32 %v1972_v4  ;;  %v2067_v14 = vadd.f32 %v2066_v28, %v7835_v19  ;;  %v2068_v1 = vpop.f32.mrb[41].mxu1  ;;  %5398 = vmatprep.subr.bf16.mxu1 %v5397_v23 }
 0x208   : > { %v6105_v34 = vpop.eup %6104  ;;  %6124 = vtanh.f32 %v1974_v62  ;;  %v2069_v37 = vadd.f32 %v2068_v1, %v7835_v19  ;;  %5400 = vmatpush1.bf16.msra.mxu1 %v5399_v6  ;;  %v1977_v13 = vpop.f32.mrb[42].mxu0 }
 0x209   : > { %v6107_v40 = vpop.eup %6106  ;;  %6126 = vtanh.f32 %v2067_v14  ;;  %v1978_v38 = vadd.f32 %v1977_v13, %v7839_v58  ;;  %v1979_v21 = vpop.f32.mrb[43].mxu0 }
 0x20a   : > { %v6109_v39 = vpop.eup %6108  ;;  %6128 = vtanh.f32 %v2069_v37  ;;  %v2072_v42 = vpop.f32.mrb[42].mxu1  ;;  %v1980_v31 = vadd.f32 %v1979_v21, %v7839_v58  ;;  %v5395_v2 = vpack.c.bf16 %v6107_v40, %v6099_v8 }
 0x20b   : > { %v6111_v47 = vpop.eup %6110  ;;  %6130 = vtanh.f32 %v1978_v38  ;;  %v2073_v57 = vadd.f32 %v2072_v42, %v7839_v58  ;;  %v2074_v48 = vpop.f32.mrb[43].mxu1  ;;  %v5393_v51 = vpack.c.bf16 %v6109_v39, %v6101_v27 }
 0x20c   : > { %v6113_v50 = vpop.eup %6112  ;;  %6132 = vtanh.f32 %v1980_v31  ;;  %v2075_v20 = vadd.f32 %v2074_v48, %v7839_v58  ;;  %v1983_v63 = vpop.f32.mrb[44].mxu0  ;;  %v5403_v61 = vpack.c.bf16 %v6111_v47, %v6103_v25 }
 0x20d   : > { %v6115_v30 = vpop.eup %6114  ;;  %6134 = vtanh.f32 %v2073_v57  ;;  %v1984_v24 = vadd.f32 %v1983_v63, %v7843_v44  ;;  %v1985_v56 = vpop.f32.mrb[45].mxu0  ;;  %5394 = vmatprep.subr.bf16.mxu0 %v5393_v51  ;;  %v5401_v18 = vpack.c.bf16 %v6113_v50, %v6105_v34 }
 0x20e   : > { %v6117_v55 = vpop.eup %6116  ;;  %6136 = vtanh.f32 %v2075_v20  ;;  %v2078_v46 = vpop.f32.mrb[44].mxu1  ;;  %v1986_v26 = vadd.f32 %v1985_v56, %v7843_v44  ;;  %5396 = vmatpush1.bf16.msra.mxu0 %v5395_v2 }
 0x20f   : > { %v6119_v3 = vpop.eup %6118  ;;  %6138 = vtanh.f32 %v1984_v24  ;;  %v2079_v32 = vadd.f32 %v2078_v46, %v7843_v44  ;;  %v2080_v10 = vpop.f32.mrb[45].mxu1  ;;  %5402 = vmatprep.subr.bf16.mxu1 %v5401_v18  ;;  %3685 = vmatprep.subr.mxu0 %v6117_v55 }
 0x210   : > { %v6121_v52 = vpop.eup %6120  ;;  %6140 = vtanh.f32 %v1986_v26  ;;  %v2081_v60 = vadd.f32 %v2080_v10, %v7843_v44  ;;  %5404 = vmatpush1.bf16.msra.mxu1 %v5403_v61  ;;  %v1989_v45 = vpop.f32.mrb[46].mxu0 }
 0x211   : > { %v6123_v16 = vpop.eup %6122  ;;  %6142 = vtanh.f32 %v2079_v32  ;;  %3756 = vmatprep.subr.mxu1 %v6121_v52  ;;  %v1990_v0 = vadd.f32 %v1989_v45, %v7851_v36  ;;  %v1991_v33 = vpop.f32.mrb[47].mxu0 }
 0x212   : > { %v6125_v11 = vpop.eup %6124  ;;  %6144 = vtanh.f32 %v2081_v60  ;;  %v2084_v41 = vpop.f32.mrb[46].mxu1  ;;  %v1992_v22 = vadd.f32 %v1991_v33, %v7851_v36  ;;  %3686 = vmatpush1.msra.mxu0 %v6115_v30 }
 0x213   : > { %v6127_v29 = vpop.eup %6126  ;;  %6146 = vtanh.f32 %v1990_v0  ;;  %v2085_v43 = vadd.f32 %v2084_v41, %v7851_v36  ;;  %v2086_v53 = vpop.f32.mrb[47].mxu1  ;;  %5162 = vmatmul.mubr.msk.f32.vlgmr.msra.gmra.mrb[106].mxu0 %vm1129_vm0, %v7880_v15 }
 0x214   : > { %v6129_v35 = vpop.eup %6128  ;;  %6148 = vtanh.f32 %v1992_v22  ;;  %v2087_v49 = vadd.f32 %v2086_v53, %v7851_v36  ;;  %3757 = vmatpush1.msra.mxu1 %v6119_v3  ;;  %v1995_v5 = vpop.f32.mrb[48].mxu0  ;;  %3883 = vmatprep.mubr.f32.mxu0 %v6476_v7 }
 0x215   : > { %v6131_v17 = vpop.eup %6130  ;;  %6150 = vtanh.f32 %v2085_v43  ;;  %v1996_v54 = vadd.f32 %v1995_v5, %v7857_v59  ;;  %v1997_v6 = vpop.f32.mrb[49].mxu0  ;;  %5163 = vmatmul.mubr.msk.f32.vlgmr.msra.gmra.mrb[106].mxu1 %vm1129_vm0, %v7880_v15 }
 0x216   : > { %v6133_v8 = vpop.eup %6132  ;;  %6152 = vtanh.f32 %v2087_v49  ;;  %v2090_v4 = vpop.f32.mrb[48].mxu1  ;;  %v1998_v12 = vadd.f32 %v1997_v6, %v7857_v59  ;;  %v5407_v23 = vpack.c.bf16 %v6131_v17, %v6123_v16  ;;  %3954 = vmatprep.mubr.f32.mxu1 %v6476_v7 }
 0x217   : > { %v6135_v27 = vpop.eup %6134  ;;  %6154 = vtanh.f32 %v1996_v54  ;;  %v2091_v28 = vadd.f32 %v2090_v4, %v7857_v59  ;;  %v2092_v62 = vpop.f32.mrb[49].mxu1  ;;  %v5405_v25 = vpack.c.bf16 %v6133_v8, %v6125_v11 }
 0x218   : > { %v6137_v14 = vpop.eup %6136  ;;  %6156 = vtanh.f32 %v1998_v12  ;;  %v2093_v1 = vadd.f32 %v2092_v62, %v7857_v59  ;;  %v2161_v34 = vpop.f32.mrb[50].mxu0  ;;  %v5415_v37 = vpack.c.bf16 %v6135_v27, %v6127_v29 }
 0x219   : > { %v6139_v13 = vpop.eup %6138  ;;  %6158 = vtanh.f32 %v2091_v28  ;;  %v2162_v40 = vadd.f32 %v2161_v34, %v7835_v19  ;;  %v2163_v38 = vpop.f32.mrb[51].mxu0  ;;  %5406 = vmatprep.subr.bf16.mxu0 %v5405_v25  ;;  %v5413_v21 = vpack.c.bf16 %v6137_v14, %v6129_v35 }
 0x21a   : > { %v6141_v39 = vpop.eup %6140  ;;  %6160 = vtanh.f32 %v2093_v1  ;;  %v2256_v42 = vpop.f32.mrb[50].mxu1  ;;  %v2164_v31 = vadd.f32 %v2163_v38, %v7835_v19  ;;  %5408 = vmatpush1.bf16.msra.mxu0 %v5407_v23 }
 0x21b   : > { %v6143_v2 = vpop.eup %6142  ;;  %6162 = vtanh.f32 %v2162_v40  ;;  %v2257_v47 = vadd.f32 %v2256_v42, %v7835_v19  ;;  %v2258_v57 = vpop.f32.mrb[51].mxu1  ;;  %5414 = vmatprep.subr.bf16.mxu1 %v5413_v21 }
 0x21c   : > { %v6145_v48 = vpop.eup %6144  ;;  %6164 = vtanh.f32 %v2164_v31  ;;  %v2259_v51 = vadd.f32 %v2258_v57, %v7835_v19  ;;  %5416 = vmatpush1.bf16.msra.mxu1 %v5415_v37  ;;  %v2167_v50 = vpop.f32.mrb[52].mxu0 }
 0x21d   : > { %v6147_v20 = vpop.eup %6146  ;;  %6166 = vtanh.f32 %v2257_v47  ;;  %v2168_v63 = vadd.f32 %v2167_v50, %v7839_v58  ;;  %v2169_v61 = vpop.f32.mrb[53].mxu0 }
 0x21e   : > { %v6149_v30 = vpop.eup %6148  ;;  %6168 = vtanh.f32 %v2259_v51  ;;  %v2262_v24 = vpop.f32.mrb[52].mxu1  ;;  %v2170_v56 = vadd.f32 %v2169_v61, %v7839_v58  ;;  %v5411_v18 = vpack.c.bf16 %v6147_v20, %v6139_v13 }
 0x21f   : > { %v6151_v55 = vpop.eup %6150  ;;  %6170 = vtanh.f32 %v2168_v63  ;;  %v2263_v46 = vadd.f32 %v2262_v24, %v7839_v58  ;;  %v2264_v26 = vpop.f32.mrb[53].mxu1  ;;  %v5409_v3 = vpack.c.bf16 %v6149_v30, %v6141_v39 }
 0x220   : > { %v6153_v32 = vpop.eup %6152  ;;  %6172 = vtanh.f32 %v2170_v56  ;;  %v2265_v10 = vadd.f32 %v2264_v26, %v7839_v58  ;;  %v2173_v52 = vpop.f32.mrb[54].mxu0  ;;  %v5419_v60 = vpack.c.bf16 %v6151_v55, %v6143_v2 }
 0x221   : > { %v6155_v45 = vpop.eup %6154  ;;  %6174 = vtanh.f32 %v2263_v46  ;;  %v2174_v16 = vadd.f32 %v2173_v52, %v7843_v44  ;;  %v2175_v0 = vpop.f32.mrb[55].mxu0  ;;  %5410 = vmatprep.subr.bf16.mxu0 %v5409_v3  ;;  %v5417_v33 = vpack.c.bf16 %v6153_v32, %v6145_v48 }
 0x222   : > { %v6157_v11 = vpop.eup %6156  ;;  %6176 = vtanh.f32 %v2265_v10  ;;  %v2268_v41 = vpop.f32.mrb[54].mxu1  ;;  %v2176_v22 = vadd.f32 %v2175_v0, %v7843_v44  ;;  %5412 = vmatpush1.bf16.msra.mxu0 %v5411_v18 }
 0x223   : > { %v6159_v29 = vpop.eup %6158  ;;  %6178 = vtanh.f32 %v2174_v16  ;;  %v2269_v43 = vadd.f32 %v2268_v41, %v7843_v44  ;;  %v2270_v53 = vpop.f32.mrb[55].mxu1  ;;  %5418 = vmatprep.subr.bf16.mxu1 %v5417_v33  ;;  %3827 = vmatprep.subr.mxu0 %v6157_v11 }
 0x224   : > { %v6161_v35 = vpop.eup %6160  ;;  %6180 = vtanh.f32 %v2176_v22  ;;  %v2271_v49 = vadd.f32 %v2270_v53, %v7843_v44  ;;  %5420 = vmatpush1.bf16.msra.mxu1 %v5419_v60  ;;  %v2179_v5 = vpop.f32.mrb[56].mxu0 }
 0x225   : > { %v6163_v17 = vpop.eup %6162  ;;  %6182 = vtanh.f32 %v2269_v43  ;;  %3898 = vmatprep.subr.mxu1 %v6161_v35  ;;  %v2180_v54 = vadd.f32 %v2179_v5, %v7851_v36  ;;  %v2181_v6 = vpop.f32.mrb[57].mxu0 }
 0x226   : > { %v6165_v8 = vpop.eup %6164  ;;  %6184 = vtanh.f32 %v2271_v49  ;;  %v2274_v4 = vpop.f32.mrb[56].mxu1  ;;  %v2182_v12 = vadd.f32 %v2181_v6, %v7851_v36  ;;  %3828 = vmatpush1.msra.mxu0 %v6155_v45 }
 0x227   : > { %v6167_v23 = vpop.eup %6166  ;;  %6186 = vtanh.f32 %v2180_v54  ;;  %v2275_v27 = vadd.f32 %v2274_v4, %v7851_v36  ;;  %v2276_v28 = vpop.f32.mrb[57].mxu1  ;;  %5164 = vmatmul.mubr.msk.f32.vlgmr.msra.gmra.mrb[108].mxu0 %vm1129_vm0, %v7880_v15 }
 0x228   : > { %v6169_v62 = vpop.eup %6168  ;;  %6188 = vtanh.f32 %v2182_v12  ;;  %v2277_v25 = vadd.f32 %v2276_v28, %v7851_v36  ;;  %3899 = vmatpush1.msra.mxu1 %v6159_v29  ;;  %v2185_v14 = vpop.f32.mrb[58].mxu0  ;;  %4025 = vmatprep.mubr.f32.mxu0 %v6476_v7 }
 0x229   : > { %v6171_v1 = vpop.eup %6170  ;;  %6190 = vtanh.f32 %v2275_v27  ;;  %v2186_v34 = vadd.f32 %v2185_v14, %v7857_v59  ;;  %v2187_v37 = vpop.f32.mrb[59].mxu0  ;;  %5165 = vmatmul.mubr.msk.f32.vlgmr.msra.gmra.mrb[108].mxu1 %vm1129_vm0, %v7880_v15 }
 0x22a   : > { %v6173_v13 = vpop.eup %6172  ;;  %6192 = vtanh.f32 %v2277_v25  ;;  %v2280_v40 = vpop.f32.mrb[58].mxu1  ;;  %v2188_v38 = vadd.f32 %v2187_v37, %v7857_v59  ;;  %v5423_v21 = vpack.c.bf16 %v6171_v1, %v6163_v17  ;;  %4096 = vmatprep.mubr.f32.mxu1 %v6476_v7 }
 0x22b   : > { %v6175_v39 = vpop.eup %6174  ;;  %6194 = vtanh.f32 %v2186_v34  ;;  %v2281_v42 = vadd.f32 %v2280_v40, %v7857_v59  ;;  %v2282_v31 = vpop.f32.mrb[59].mxu1  ;;  %v5421_v2 = vpack.c.bf16 %v6173_v13, %v6165_v8 }
 0x22c   : > { %v6177_v47 = vpop.eup %6176  ;;  %6196 = vtanh.f32 %v2188_v38  ;;  %v2283_v57 = vadd.f32 %v2282_v31, %v7857_v59  ;;  %v2351_v48 = vpop.f32.mrb[60].mxu0  ;;  %v5431_v15 = vpack.c.bf16 %v6175_v39, %v6167_v23 }
 0x22d   : > { %v6179_v51 = vpop.eup %6178  ;;  %6198 = vtanh.f32 %v2281_v42  ;;  %v2352_v50 = vadd.f32 %v2351_v48, %v7835_v19  ;;  %v2353_v20 = vpop.f32.mrb[61].mxu0  ;;  %5422 = vmatprep.subr.bf16.mxu0 %v5421_v2  ;;  %v5429_v63 = vpack.c.bf16 %v6177_v47, %v6169_v62  ;;  %v8018_v42 = vld [vmem:[%s8249_s3] sm:$0x1] }
 0x22e   : > { %v6181_v61 = vpop.eup %6180  ;;  %6200 = vtanh.f32 %v2283_v57  ;;  %v2446_v30 = vpop.f32.mrb[60].mxu1  ;;  %v2354_v24 = vadd.f32 %v2353_v20, %v7835_v19  ;;  %5424 = vmatpush1.bf16.msra.mxu0 %v5423_v21 }
 0x22f   : > { %v6183_v56 = vpop.eup %6182  ;;  %6202 = vtanh.f32 %v2352_v50  ;;  %v2447_v18 = vadd.f32 %v2446_v30, %v7835_v19  ;;  %v2448_v55 = vpop.f32.mrb[61].mxu1  ;;  %5430 = vmatprep.subr.bf16.mxu1 %v5429_v63 }
 0x230   : > { %v6185_v46 = vpop.eup %6184  ;;  %6204 = vtanh.f32 %v2354_v24  ;;  %v2449_v26 = vadd.f32 %v2448_v55, %v7835_v19  ;;  %5432 = vmatpush1.bf16.msra.mxu1 %v5431_v15  ;;  %v2357_v3 = vpop.f32.mrb[62].mxu0 }
 0x231   : > { %v6187_v32 = vpop.eup %6186  ;;  %6206 = vtanh.f32 %v2447_v18  ;;  %v2358_v10 = vadd.f32 %v2357_v3, %v7839_v58  ;;  %v2359_v52 = vpop.f32.mrb[63].mxu0 }
 0x232   : > { %v6189_v60 = vpop.eup %6188  ;;  %6208 = vtanh.f32 %v2449_v26  ;;  %v2452_v45 = vpop.f32.mrb[62].mxu1  ;;  %v2360_v16 = vadd.f32 %v2359_v52, %v7839_v58  ;;  %v5427_v0 = vpack.c.bf16 %v6187_v32, %v6179_v51 }
 0x233   : > { %v6191_v33 = vpop.eup %6190  ;;  %6210 = vtanh.f32 %v2358_v10  ;;  %v2453_v11 = vadd.f32 %v2452_v45, %v7839_v58  ;;  %v2454_v41 = vpop.f32.mrb[63].mxu1  ;;  %v5425_v22 = vpack.c.bf16 %v6189_v60, %v6181_v61 }
 0x234   : > { %v6193_v29 = vpop.eup %6192  ;;  %6212 = vtanh.f32 %v2360_v16  ;;  %v2455_v43 = vadd.f32 %v2454_v41, %v7839_v58  ;;  %v2363_v53 = vpop.f32.mrb[64].mxu0  ;;  %v5435_v35 = vpack.c.bf16 %v6191_v33, %v6183_v56 }
 0x235   : > { %v6195_v49 = vpop.eup %6194  ;;  %6214 = vtanh.f32 %v2453_v11  ;;  %v2364_v5 = vadd.f32 %v2363_v53, %v7843_v44  ;;  %v2365_v17 = vpop.f32.mrb[65].mxu0  ;;  %5426 = vmatprep.subr.bf16.mxu0 %v5425_v22  ;;  %v5433_v54 = vpack.c.bf16 %v6193_v29, %v6185_v46 }
 0x236   : > { %v6197_v6 = vpop.eup %6196  ;;  %6216 = vtanh.f32 %v2455_v43  ;;  %v2458_v8 = vpop.f32.mrb[64].mxu1  ;;  %v2366_v4 = vadd.f32 %v2365_v17, %v7843_v44  ;;  %5428 = vmatpush1.bf16.msra.mxu0 %v5427_v0 }
 0x237   : > { %v6199_v12 = vpop.eup %6198  ;;  %6218 = vtanh.f32 %v2364_v5  ;;  %v2459_v23 = vadd.f32 %v2458_v8, %v7843_v44  ;;  %v2460_v27 = vpop.f32.mrb[65].mxu1  ;;  %5434 = vmatprep.subr.bf16.mxu1 %v5433_v54  ;;  %3969 = vmatprep.subr.mxu0 %v6197_v6 }
 0x238   : > { %v6201_v28 = vpop.eup %6200  ;;  %6220 = vtanh.f32 %v2366_v4  ;;  %v2461_v62 = vadd.f32 %v2460_v27, %v7843_v44  ;;  %5436 = vmatpush1.bf16.msra.mxu1 %v5435_v35  ;;  %v2369_v25 = vpop.f32.mrb[66].mxu0 }
 0x239   : > { %v6203_v14 = vpop.eup %6202  ;;  %6222 = vtanh.f32 %v2459_v23  ;;  %4040 = vmatprep.subr.mxu1 %v6201_v28  ;;  %v2370_v1 = vadd.f32 %v2369_v25, %v7851_v36  ;;  %v2371_v34 = vpop.f32.mrb[67].mxu0 }
 0x23a   : > { %v6205_v37 = vpop.eup %6204  ;;  %6224 = vtanh.f32 %v2461_v62  ;;  %v2464_v13 = vpop.f32.mrb[66].mxu1  ;;  %v2372_v40 = vadd.f32 %v2371_v34, %v7851_v36  ;;  %3970 = vmatpush1.msra.mxu0 %v6195_v49 }
 0x23b   : > { %v6207_v38 = vpop.eup %6206  ;;  %6226 = vtanh.f32 %v2370_v1  ;;  %v2465_v21 = vadd.f32 %v2464_v13, %v7851_v36  ;;  %v2466_v39 = vpop.f32.mrb[67].mxu1  ;;  %5166 = vmatmul.mubr.msk.f32.vlgmr.msra.gmra.mrb[110].mxu0 %vm1129_vm0, %v8018_v42 }
 0x23c   : > { %v6209_v31 = vpop.eup %6208  ;;  %6228 = vtanh.f32 %v2372_v40  ;;  %v2467_v2 = vadd.f32 %v2466_v39, %v7851_v36  ;;  %4041 = vmatpush1.msra.mxu1 %v6199_v12  ;;  %v2375_v47 = vpop.f32.mrb[68].mxu0  ;;  %4167 = vmatprep.mubr.f32.mxu0 %v6476_v7 }
 0x23d   : > { %v6211_v57 = vpop.eup %6210  ;;  %6230 = vtanh.f32 %v2465_v21  ;;  %v2376_v48 = vadd.f32 %v2375_v47, %v7857_v59  ;;  %v2377_v15 = vpop.f32.mrb[69].mxu0  ;;  %5167 = vmatmul.mubr.msk.f32.vlgmr.msra.gmra.mrb[110].mxu1 %vm1129_vm0, %v8018_v42 }
 0x23e   : > { %v6213_v51 = vpop.eup %6212  ;;  %6232 = vtanh.f32 %v2467_v2  ;;  %v2470_v50 = vpop.f32.mrb[68].mxu1  ;;  %v2378_v20 = vadd.f32 %v2377_v15, %v7857_v59  ;;  %v5439_v63 = vpack.c.bf16 %v6211_v57, %v6203_v14  ;;  %4238 = vmatprep.mubr.f32.mxu1 %v6476_v7 }
 0x23f   : > { %v6215_v61 = vpop.eup %6214  ;;  %6234 = vtanh.f32 %v2376_v48  ;;  %v2471_v30 = vadd.f32 %v2470_v50, %v7857_v59  ;;  %v2472_v24 = vpop.f32.mrb[69].mxu1  ;;  %v5437_v56 = vpack.c.bf16 %v6213_v51, %v6205_v37 }
 0x240   : > { %v6217_v18 = vpop.eup %6216  ;;  %6236 = vtanh.f32 %v2378_v20  ;;  %v2473_v55 = vadd.f32 %v2472_v24, %v7857_v59  ;;  %v2541_v46 = vpop.f32.mrb[70].mxu0  ;;  %v5447_v26 = vpack.c.bf16 %v6215_v61, %v6207_v38 }
 0x241   : > { %v6219_v3 = vpop.eup %6218  ;;  %6238 = vtanh.f32 %v2471_v30  ;;  %v2542_v32 = vadd.f32 %v2541_v46, %v7835_v19  ;;  %v2543_v10 = vpop.f32.mrb[71].mxu0  ;;  %5438 = vmatprep.subr.bf16.mxu0 %v5437_v56  ;;  %v5445_v52 = vpack.c.bf16 %v6217_v18, %v6209_v31 }
 0x242   : > { %v6221_v60 = vpop.eup %6220  ;;  %6240 = vtanh.f32 %v2473_v55  ;;  %v2636_v45 = vpop.f32.mrb[70].mxu1  ;;  %v2544_v16 = vadd.f32 %v2543_v10, %v7835_v19  ;;  %5440 = vmatpush1.bf16.msra.mxu0 %v5439_v63 }
 0x243   : > { %v6223_v0 = vpop.eup %6222  ;;  %6242 = vtanh.f32 %v2542_v32  ;;  %v2637_v33 = vadd.f32 %v2636_v45, %v7835_v19  ;;  %v2638_v11 = vpop.f32.mrb[71].mxu1  ;;  %5446 = vmatprep.subr.bf16.mxu1 %v5445_v52 }
 0x244   : > { %v6225_v41 = vpop.eup %6224  ;;  %6244 = vtanh.f32 %v2544_v16  ;;  %v2639_v22 = vadd.f32 %v2638_v11, %v7835_v19  ;;  %5448 = vmatpush1.bf16.msra.mxu1 %v5447_v26  ;;  %v2547_v29 = vpop.f32.mrb[72].mxu0 }
 0x245   : > { %v6227_v43 = vpop.eup %6226  ;;  %6246 = vtanh.f32 %v2637_v33  ;;  %v2548_v53 = vadd.f32 %v2547_v29, %v7839_v58  ;;  %v2549_v35 = vpop.f32.mrb[73].mxu0 }
 0x246   : > { %v6229_v49 = vpop.eup %6228  ;;  %6248 = vtanh.f32 %v2639_v22  ;;  %v2642_v5 = vpop.f32.mrb[72].mxu1  ;;  %v2550_v17 = vadd.f32 %v2549_v35, %v7839_v58  ;;  %v5443_v54 = vpack.c.bf16 %v6227_v43, %v6219_v3 }
 0x247   : > { %v6231_v6 = vpop.eup %6230  ;;  %6250 = vtanh.f32 %v2548_v53  ;;  %v2643_v8 = vadd.f32 %v2642_v5, %v7839_v58  ;;  %v2644_v4 = vpop.f32.mrb[73].mxu1  ;;  %v5441_v12 = vpack.c.bf16 %v6229_v49, %v6221_v60 }
 0x248   : > { %v6233_v23 = vpop.eup %6232  ;;  %6252 = vtanh.f32 %v2550_v17  ;;  %v2645_v27 = vadd.f32 %v2644_v4, %v7839_v58  ;;  %v2553_v28 = vpop.f32.mrb[74].mxu0  ;;  %v5451_v62 = vpack.c.bf16 %v6231_v6, %v6223_v0 }
 0x249   : > { %v6235_v25 = vpop.eup %6234  ;;  %6254 = vtanh.f32 %v2643_v8  ;;  %v2554_v14 = vadd.f32 %v2553_v28, %v7843_v44  ;;  %v2555_v1 = vpop.f32.mrb[75].mxu0  ;;  %5442 = vmatprep.subr.bf16.mxu0 %v5441_v12  ;;  %v5449_v34 = vpack.c.bf16 %v6233_v23, %v6225_v41 }
 0x24a   : > { %v6237_v37 = vpop.eup %6236  ;;  %6256 = vtanh.f32 %v2645_v27  ;;  %v2648_v13 = vpop.f32.mrb[74].mxu1  ;;  %v2556_v40 = vadd.f32 %v2555_v1, %v7843_v44  ;;  %5444 = vmatpush1.bf16.msra.mxu0 %v5443_v54 }
 0x24b   : > { %v6239_v38 = vpop.eup %6238  ;;  %6258 = vtanh.f32 %v2554_v14  ;;  %v2649_v21 = vadd.f32 %v2648_v13, %v7843_v44  ;;  %v2650_v39 = vpop.f32.mrb[75].mxu1  ;;  %5450 = vmatprep.subr.bf16.mxu1 %v5449_v34  ;;  %4111 = vmatprep.subr.mxu0 %v6237_v37 }
 0x24c   : > { %v6241_v31 = vpop.eup %6240  ;;  %6260 = vtanh.f32 %v2556_v40  ;;  %v2651_v2 = vadd.f32 %v2650_v39, %v7843_v44  ;;  %5452 = vmatpush1.bf16.msra.mxu1 %v5451_v62  ;;  %v2559_v47 = vpop.f32.mrb[76].mxu0 }
 0x24d   : > { %v6243_v57 = vpop.eup %6242  ;;  %6262 = vtanh.f32 %v2649_v21  ;;  %4182 = vmatprep.subr.mxu1 %v6241_v31  ;;  %v2560_v48 = vadd.f32 %v2559_v47, %v7851_v36  ;;  %v2561_v15 = vpop.f32.mrb[77].mxu0 }
 0x24e   : > { %v6245_v51 = vpop.eup %6244  ;;  %6264 = vtanh.f32 %v2651_v2  ;;  %v2654_v50 = vpop.f32.mrb[76].mxu1  ;;  %v2562_v20 = vadd.f32 %v2561_v15, %v7851_v36  ;;  %4112 = vmatpush1.msra.mxu0 %v6235_v25 }
 0x24f   : > { %v6247_v63 = vpop.eup %6246  ;;  %6266 = vtanh.f32 %v2560_v48  ;;  %v2655_v61 = vadd.f32 %v2654_v50, %v7851_v36  ;;  %v2656_v30 = vpop.f32.mrb[77].mxu1  ;;  %5168 = vmatmul.mubr.msk.f32.vlgmr.msra.gmra.mrb[112].mxu0 %vm1129_vm0, %v8018_v42 }
 0x250   : > { %v6249_v24 = vpop.eup %6248  ;;  %6268 = vtanh.f32 %v2562_v20  ;;  %v2657_v56 = vadd.f32 %v2656_v30, %v7851_v36  ;;  %4183 = vmatpush1.msra.mxu1 %v6239_v38  ;;  %v2565_v18 = vpop.f32.mrb[78].mxu0  ;;  %4309 = vmatprep.mubr.f32.mxu0 %v6476_v7 }
 0x251   : > { %v6251_v55 = vpop.eup %6250  ;;  %6270 = vtanh.f32 %v2655_v61  ;;  %v2566_v46 = vadd.f32 %v2565_v18, %v7857_v59  ;;  %v2567_v26 = vpop.f32.mrb[79].mxu0  ;;  %5169 = vmatmul.mubr.msk.f32.vlgmr.msra.gmra.mrb[112].mxu1 %vm1129_vm0, %v8018_v42 }
 0x252   : > { %v6253_v3 = vpop.eup %6252  ;;  %6272 = vtanh.f32 %v2657_v56  ;;  %v2660_v32 = vpop.f32.mrb[78].mxu1  ;;  %v2568_v10 = vadd.f32 %v2567_v26, %v7857_v59  ;;  %v5455_v52 = vpack.c.bf16 %v6251_v55, %v6243_v57  ;;  %4380 = vmatprep.mubr.f32.mxu1 %v6476_v7 }
 0x253   : > { %v6255_v60 = vpop.eup %6254  ;;  %6274 = vtanh.f32 %v2566_v46  ;;  %v2661_v45 = vadd.f32 %v2660_v32, %v7857_v59  ;;  %v2662_v16 = vpop.f32.mrb[79].mxu1  ;;  %v5453_v0 = vpack.c.bf16 %v6253_v3, %v6245_v51 }
 0x254   : > { %v6257_v33 = vpop.eup %6256  ;;  %6276 = vtanh.f32 %v2568_v10  ;;  %v2663_v11 = vadd.f32 %v2662_v16, %v7857_v59  ;;  %v2731_v41 = vpop.f32.mrb[80].mxu0  ;;  %v5463_v22 = vpack.c.bf16 %v6255_v60, %v6247_v63 }
 0x255   : > { %v6259_v29 = vpop.eup %6258  ;;  %6278 = vtanh.f32 %v2661_v45  ;;  %v2732_v43 = vadd.f32 %v2731_v41, %v7835_v19  ;;  %v2733_v53 = vpop.f32.mrb[81].mxu0  ;;  %5454 = vmatprep.subr.bf16.mxu0 %v5453_v0  ;;  %v5461_v35 = vpack.c.bf16 %v6257_v33, %v6249_v24 }
 0x256   : > { %v6261_v49 = vpop.eup %6260  ;;  %6280 = vtanh.f32 %v2663_v11  ;;  %v2826_v5 = vpop.f32.mrb[80].mxu1  ;;  %v2734_v17 = vadd.f32 %v2733_v53, %v7835_v19  ;;  %5456 = vmatpush1.bf16.msra.mxu0 %v5455_v52 }
 0x257   : > { %v6263_v54 = vpop.eup %6262  ;;  %6282 = vtanh.f32 %v2732_v43  ;;  %v2827_v6 = vadd.f32 %v2826_v5, %v7835_v19  ;;  %v2828_v8 = vpop.f32.mrb[81].mxu1  ;;  %5462 = vmatprep.subr.bf16.mxu1 %v5461_v35 }
 0x258   : > { %v6265_v4 = vpop.eup %6264  ;;  %6284 = vtanh.f32 %v2734_v17  ;;  %v2829_v12 = vadd.f32 %v2828_v8, %v7835_v19  ;;  %5464 = vmatpush1.bf16.msra.mxu1 %v5463_v22  ;;  %v2737_v23 = vpop.f32.mrb[82].mxu0 }
 0x259   : > { %v6267_v27 = vpop.eup %6266  ;;  %6286 = vtanh.f32 %v2827_v6  ;;  %v2738_v28 = vadd.f32 %v2737_v23, %v7839_v58  ;;  %v2739_v62 = vpop.f32.mrb[83].mxu0 }
 0x25a   : > { %v6269_v25 = vpop.eup %6268  ;;  %6288 = vtanh.f32 %v2829_v12  ;;  %v2832_v14 = vpop.f32.mrb[82].mxu1  ;;  %v2740_v1 = vadd.f32 %v2739_v62, %v7839_v58  ;;  %v5459_v34 = vpack.c.bf16 %v6267_v27, %v6259_v29 }
 0x25b   : > { %v6271_v37 = vpop.eup %6270  ;;  %6290 = vtanh.f32 %v2738_v28  ;;  %v2833_v13 = vadd.f32 %v2832_v14, %v7839_v58  ;;  %v2834_v40 = vpop.f32.mrb[83].mxu1  ;;  %v5457_v38 = vpack.c.bf16 %v6269_v25, %v6261_v49 }
 0x25c   : > { %v6273_v21 = vpop.eup %6272  ;;  %6292 = vtanh.f32 %v2740_v1  ;;  %v2835_v39 = vadd.f32 %v2834_v40, %v7839_v58  ;;  %v2743_v31 = vpop.f32.mrb[84].mxu0  ;;  %v5467_v2 = vpack.c.bf16 %v6271_v37, %v6263_v54 }
 0x25d   : > { %v6275_v47 = vpop.eup %6274  ;;  %6294 = vtanh.f32 %v2833_v13  ;;  %v2744_v57 = vadd.f32 %v2743_v31, %v7843_v44  ;;  %v2745_v48 = vpop.f32.mrb[85].mxu0  ;;  %5458 = vmatprep.subr.bf16.mxu0 %v5457_v38  ;;  %v5465_v15 = vpack.c.bf16 %v6273_v21, %v6265_v4 }
 0x25e   : > { %v6277_v51 = vpop.eup %6276  ;;  %6296 = vtanh.f32 %v2835_v39  ;;  %v2838_v50 = vpop.f32.mrb[84].mxu1  ;;  %v2746_v20 = vadd.f32 %v2745_v48, %v7843_v44  ;;  %5460 = vmatpush1.bf16.msra.mxu0 %v5459_v34 }
 0x25f   : > { %v6279_v63 = vpop.eup %6278  ;;  %6298 = vtanh.f32 %v2744_v57  ;;  %v2839_v61 = vadd.f32 %v2838_v50, %v7843_v44  ;;  %v2840_v30 = vpop.f32.mrb[85].mxu1  ;;  %5466 = vmatprep.subr.bf16.mxu1 %v5465_v15  ;;  %4253 = vmatprep.subr.mxu0 %v6277_v51 }
 0x260   : > { %v6281_v24 = vpop.eup %6280  ;;  %6300 = vtanh.f32 %v2746_v20  ;;  %v2841_v56 = vadd.f32 %v2840_v30, %v7843_v44  ;;  %5468 = vmatpush1.bf16.msra.mxu1 %v5467_v2  ;;  %v2749_v18 = vpop.f32.mrb[86].mxu0 }
 0x261   : > { %v6283_v55 = vpop.eup %6282  ;;  %6302 = vtanh.f32 %v2839_v61  ;;  %4324 = vmatprep.subr.mxu1 %v6281_v24  ;;  %v2750_v46 = vadd.f32 %v2749_v18, %v7851_v36  ;;  %v2751_v26 = vpop.f32.mrb[87].mxu0 }
 0x262   : > { %v6285_v3 = vpop.eup %6284  ;;  %6304 = vtanh.f32 %v2841_v56  ;;  %v2844_v32 = vpop.f32.mrb[86].mxu1  ;;  %v2752_v10 = vadd.f32 %v2751_v26, %v7851_v36  ;;  %4254 = vmatpush1.msra.mxu0 %v6275_v47 }
 0x263   : > { %v6287_v52 = vpop.eup %6286  ;;  %6306 = vtanh.f32 %v2750_v46  ;;  %v2845_v60 = vadd.f32 %v2844_v32, %v7851_v36  ;;  %v2846_v45 = vpop.f32.mrb[87].mxu1  ;;  %5170 = vmatmul.mubr.msk.f32.vlgmr.msra.gmra.mrb[114].mxu0 %vm1129_vm0, %v8018_v42 }
 0x264   : > { %v6289_v16 = vpop.eup %6288  ;;  %6308 = vtanh.f32 %v2752_v10  ;;  %v2847_v0 = vadd.f32 %v2846_v45, %v7851_v36  ;;  %4325 = vmatpush1.msra.mxu1 %v6279_v63  ;;  %v2755_v33 = vpop.f32.mrb[88].mxu0  ;;  %4451 = vmatprep.mubr.f32.mxu0 %v6476_v7 }
 0x265   : > { %v6291_v11 = vpop.eup %6290  ;;  %6310 = vtanh.f32 %v2845_v60  ;;  %v2756_v41 = vadd.f32 %v2755_v33, %v7857_v59  ;;  %v2757_v22 = vpop.f32.mrb[89].mxu0  ;;  %5171 = vmatmul.mubr.msk.f32.vlgmr.msra.gmra.mrb[114].mxu1 %vm1129_vm0, %v8018_v42 }
 0x266   : > { %v6293_v29 = vpop.eup %6292  ;;  %6312 = vtanh.f32 %v2847_v0  ;;  %v2850_v43 = vpop.f32.mrb[88].mxu1  ;;  %v2758_v53 = vadd.f32 %v2757_v22, %v7857_v59  ;;  %v5471_v35 = vpack.c.bf16 %v6291_v11, %v6283_v55  ;;  %4522 = vmatprep.mubr.f32.mxu1 %v6476_v7 }
 0x267   : > { %v6295_v49 = vpop.eup %6294  ;;  %6314 = vtanh.f32 %v2756_v41  ;;  %v2851_v5 = vadd.f32 %v2850_v43, %v7857_v59  ;;  %v2852_v17 = vpop.f32.mrb[89].mxu1  ;;  %v5469_v54 = vpack.c.bf16 %v6293_v29, %v6285_v3 }
 0x268   : > { %v6297_v6 = vpop.eup %6296  ;;  %6316 = vtanh.f32 %v2758_v53  ;;  %v2853_v8 = vadd.f32 %v2852_v17, %v7857_v59  ;;  %v2921_v4 = vpop.f32.mrb[90].mxu0  ;;  %v5479_v12 = vpack.c.bf16 %v6295_v49, %v6287_v52 }
 0x269   : > { %v6299_v23 = vpop.eup %6298  ;;  %6318 = vtanh.f32 %v2851_v5  ;;  %v2922_v27 = vadd.f32 %v2921_v4, %v7835_v19  ;;  %v2923_v28 = vpop.f32.mrb[91].mxu0  ;;  %5470 = vmatprep.subr.bf16.mxu0 %v5469_v54  ;;  %v5477_v62 = vpack.c.bf16 %v6297_v6, %v6289_v16 }
 0x26a   : > { %v6301_v25 = vpop.eup %6300  ;;  %6320 = vtanh.f32 %v2853_v8  ;;  %v3016_v14 = vpop.f32.mrb[90].mxu1  ;;  %v2924_v1 = vadd.f32 %v2923_v28, %v7835_v19  ;;  %5472 = vmatpush1.bf16.msra.mxu0 %v5471_v35 }
 0x26b   : > { %v6303_v34 = vpop.eup %6302  ;;  %6322 = vtanh.f32 %v2922_v27  ;;  %v3017_v37 = vadd.f32 %v3016_v14, %v7835_v19  ;;  %v3018_v13 = vpop.f32.mrb[91].mxu1  ;;  %5478 = vmatprep.subr.bf16.mxu1 %v5477_v62 }
 0x26c   : > { %v6305_v40 = vpop.eup %6304  ;;  %6324 = vtanh.f32 %v2924_v1  ;;  %v3019_v38 = vadd.f32 %v3018_v13, %v7835_v19  ;;  %5480 = vmatpush1.bf16.msra.mxu1 %v5479_v12  ;;  %v2927_v21 = vpop.f32.mrb[92].mxu0 }
 0x26d   : > { %v6307_v39 = vpop.eup %6306  ;;  %6326 = vtanh.f32 %v3017_v37  ;;  %v2928_v31 = vadd.f32 %v2927_v21, %v7839_v58  ;;  %v2929_v2 = vpop.f32.mrb[93].mxu0 }
 0x26e   : > { %v6309_v47 = vpop.eup %6308  ;;  %6328 = vtanh.f32 %v3019_v38  ;;  %v3022_v57 = vpop.f32.mrb[92].mxu1  ;;  %v2930_v48 = vadd.f32 %v2929_v2, %v7839_v58  ;;  %v5475_v15 = vpack.c.bf16 %v6307_v39, %v6299_v23 }
 0x26f   : > { %v6311_v51 = vpop.eup %6310  ;;  %6330 = vtanh.f32 %v2928_v31  ;;  %v3023_v50 = vadd.f32 %v3022_v57, %v7839_v58  ;;  %v3024_v20 = vpop.f32.mrb[93].mxu1  ;;  %v5473_v63 = vpack.c.bf16 %v6309_v47, %v6301_v25 }
 0x270   : > { %v6313_v19 = vpop.eup %6312  ;;  %6332 = vtanh.f32 %v2930_v48  ;;  %v3025_v61 = vadd.f32 %v3024_v20, %v7839_v58  ;;  %v2933_v30 = vpop.f32.mrb[94].mxu0  ;;  %v5483_v24 = vpack.c.bf16 %v6311_v51, %v6303_v34  ;;  %v6478_v20 = vmov 1966171168  }
 0x271   : > { %v6315_v56 = vpop.eup %6314  ;;  %6334 = vtanh.f32 %v3023_v50  ;;  %v2934_v18 = vadd.f32 %v2933_v30, %v7843_v44  ;;  %v2935_v55 = vpop.f32.mrb[95].mxu0  ;;  %5474 = vmatprep.subr.bf16.mxu0 %v5473_v63  ;;  %v5481_v46 = vpack.c.bf16 %v6313_v19, %v6305_v40  ;;  %v4716_v63 = vunpack.c.l.s4 %v6478_v20 }
 0x272   : > { %v6317_v26 = vpop.eup %6316  ;;  %6336 = vtanh.f32 %v3025_v61  ;;  %v3028_v3 = vpop.f32.mrb[94].mxu1  ;;  %v2936_v32 = vadd.f32 %v2935_v55, %v7843_v44  ;;  %5476 = vmatpush1.bf16.msra.mxu0 %v5475_v15  ;;  %v8113_v19 = vstv %s3246_s19 }
 0x273   : > { %v6319_v10 = vpop.eup %6318  ;;  %6338 = vtanh.f32 %v2934_v18  ;;  %v3029_v52 = vadd.f32 %v3028_v3, %v7843_v44  ;;  %v3030_v58 = vpop.f32.mrb[95].mxu1  ;;  %5482 = vmatprep.subr.bf16.mxu1 %v5481_v46  ;;  %4395 = vmatprep.subr.mxu0 %v6317_v26  ;;  %v4717_v61 = vunpack.c.0.s8 %v4716_v63 }
 0x274   : > { %v6321_v60 = vpop.eup %6320  ;;  %6340 = vtanh.f32 %v2936_v32  ;;  %v3031_v45 = vadd.f32 %v3030_v58, %v7843_v44  ;;  %5484 = vmatpush1.bf16.msra.mxu1 %v5483_v24  ;;  %v2939_v16 = vpop.f32.mrb[96].mxu0 }
 0x275   : > { %v6323_v0 = vpop.eup %6322  ;;  %6342 = vtanh.f32 %v3029_v52  ;;  %4466 = vmatprep.subr.mxu1 %v6321_v60  ;;  %v2940_v33 = vadd.f32 %v2939_v16, %v7851_v36  ;;  %v2941_v11 = vpop.f32.mrb[97].mxu0  ;;  %v8117_v18 = vsub.s32 %v4717_v61, %v6645_v9 }
 0x276   : > { %v6325_v41 = vpop.eup %6324  ;;  %6344 = vtanh.f32 %v3031_v45  ;;  %v3034_v22 = vpop.f32.mrb[96].mxu1  ;;  %v2942_v29 = vadd.f32 %v2941_v11, %v7851_v36  ;;  %4396 = vmatpush1.msra.mxu0 %v6315_v56 }
 0x277   : > { %v6327_v43 = vpop.eup %6326  ;;  %6346 = vtanh.f32 %v2940_v33  ;;  %v3035_v53 = vadd.f32 %v3034_v22, %v7851_v36  ;;  %v3036_v35 = vpop.f32.mrb[97].mxu1  ;;  %5172 = vmatmul.mubr.msk.f32.vlgmr.msra.gmra.mrb[116].mxu0 %vm1129_vm0, %v8018_v42 }
 0x278   : > { %v6329_v44 = vpop.eup %6328  ;;  %6348 = vtanh.f32 %v2942_v29  ;;  %v3037_v49 = vadd.f32 %v3036_v35, %v7851_v36  ;;  %4467 = vmatpush1.msra.mxu1 %v6319_v10  ;;  %v2945_v5 = vpop.f32.mrb[98].mxu0  ;;  %4593 = vmatprep.mubr.f32.mxu0 %v6476_v7 }
 0x279   : > { %v6331_v17 = vpop.eup %6330  ;;  %6350 = vtanh.f32 %v3035_v53  ;;  %v2947_v54 = vpop.f32.mrb[99].mxu0  ;;  %5173 = vmatmul.mubr.msk.f32.vlgmr.msra.gmra.mrb[116].mxu1 %vm1129_vm0, %v8018_v42  ;;  %v2946_v36 = vadd.f32 %v2945_v5, %v7857_v59 }
 0x27a   : > { %v6333_v6 = vpop.eup %6332  ;;  %6352 = vtanh.f32 %v3037_v49  ;;  %v3040_v8 = vpop.f32.mrb[98].mxu1  ;;  %v2948_v4 = vadd.f32 %v2947_v54, %v7857_v59  ;;  %v5487_v12 = vpack.c.bf16 %v6331_v17, %v6323_v0  ;;  %4664 = vmatprep.mubr.f32.mxu1 %v6476_v7 }
 0x27b   : > { %v6335_v23 = vpop.eup %6334  ;;  %v3042_v27 = vpop.f32.mrb[99].mxu1  ;;  %v5485_v28 = vpack.c.bf16 %v6333_v6, %v6325_v41  ;;  %v3041_v34 = vadd.f32 %v3040_v8, %v7857_v59 }
 0x27c   : > { %v6337_v62 = vpop.eup %6336  ;;  %6354 = vtanh.f32 %v2948_v4  ;;  %v3043_v25 = vadd.f32 %v3042_v27, %v7857_v59  ;;  %v5495_v14 = vpack.c.bf16 %v6335_v23, %v6327_v43 }
 0x27d   : > { %v6339_v1 = vpop.eup %6338  ;;  %5486 = vmatprep.subr.bf16.mxu0 %v5485_v28  ;;  %v5493_v37 = vpack.c.bf16 %v6337_v62, %v6329_v44 }
 0x27e   : > { %v6341_v13 = vpop.eup %6340  ;;  %6356 = vtanh.f32 %v3043_v25  ;;  %5488 = vmatpush1.bf16.msra.mxu0 %v5487_v12 }
 0x27f   : > { %v6343_v40 = vpop.eup %6342  ;;  %6358 = vtanh.f32 %v2946_v36  ;;  %5494 = vmatprep.subr.bf16.mxu1 %v5493_v37 }
 0x280   : > { %v6345_v7 = vpop.eup %6344  ;;  %5496 = vmatpush1.bf16.msra.mxu1 %v5495_v14  ;;  %6360 = vtanh.f32 %v3041_v34 }
 0x281   : > { %v6347_v38 = vpop.eup %6346 }
 0x282   : > { %v6349_v21 = vpop.eup %6348  ;;  %v5491_v39 = vpack.c.bf16 %v6347_v38, %v6339_v1 }
 0x283   : > { %v6351_v31 = vpop.eup %6350  ;;  %v5489_v2 = vpack.c.bf16 %v6349_v21, %v6341_v13 }
 0x284   : > { %v6353_v47 = vpop.eup %6352  ;;  %v5499_v57 = vpack.c.bf16 %v6351_v31, %v6343_v40 }
 0x285   : > { %5490 = vmatprep.subr.bf16.mxu0 %v5489_v2  ;;  %v5497_v59 = vpack.c.bf16 %v6353_v47, %v6345_v7 }
 0x286   : > { %v6355_v48 = vpop.eup %6354  ;;  %5492 = vmatpush1.bf16.msra.mxu0 %v5491_v39 }
 0x287   : > { %5498 = vmatprep.subr.bf16.mxu1 %v5497_v59  ;;  %4537 = vmatprep.subr.mxu0 %v6355_v48 }
 0x288   : > { %v6357_v15 = vpop.eup %6356  ;;  %5500 = vmatpush1.bf16.msra.mxu1 %v5499_v57 }
 0x289   : > { %v6359_v51 = vpop.eup %6358  ;;  %4608 = vmatprep.subr.mxu1 %v6357_v15 }
 0x28a   : > { %4538 = vmatpush1.msra.mxu0 %v6359_v51  ;;  %v6361_v50 = vpop.eup %6360 }
 0x28b   : > { %5174 = vmatmul.mubr.msk.f32.vlgmr.msra.gmra.mrb[118].mxu0 %vm1129_vm0, %v8018_v42 }
 0x28c   : > { %4609 = vmatpush1.msra.mxu1 %v6361_v50 }
 0x28d   : > { %5175 = vmatmul.mubr.msk.f32.vlgmr.msra.gmra.mrb[118].mxu1 %vm1129_vm0, %v8018_v42 }
 0x2aa   : > { %v3317_v30 = vpop.f32.mrb[100].mxu0 }
 0x2ab   : > { %v3318_v24 = vadd.f32 %v3317_v30, %v8113_v19  ;;  %v3319_v56 = vpop.f32.mrb[101].mxu0 }
 0x2ac   : > { %v3388_v55 = vpop.f32.mrb[100].mxu1  ;;  %v3320_v46 = vadd.f32 %v3319_v56, %v8113_v19 }
 0x2ad   : > { %v3389_v26 = vadd.f32 %v3388_v55, %v8113_v19  ;;  %v3390_v3 = vpop.f32.mrb[101].mxu1 }
 0x2ae   : > { %v4711_v42 = vcombine.low %v3318_v24, %v3320_v46  ;;  %v3391_v32 = vadd.f32 %v3390_v3, %v8113_v19 }
 0x2b0   : > { %v4721_v10 = vrot.slane %v4711_v42, %v8117_v18  ;;  %v4712_v52 = vcombine.low %v3389_v26, %v3391_v32 }
 0x2b2   : > { %v4728_v58 = vrot.slane %v4712_v52, %v8117_v18 }
 0x2b4   : > { %v4743_v60 = vcombine.low %v4721_v10, %v4728_v58 }
 0x2b6   : > { %v4751_v44 = vrot.slane %v4743_v60, %v8117_v18 }
 0x2be   : > { %v3459_v45 = vpop.f32.mrb[102].mxu0 }
 0x2bf   : > { %v3460_v9 = vadd.f32 %v3459_v45, %v8113_v19  ;;  %v3461_v16 = vpop.f32.mrb[103].mxu0 }
 0x2c0   : > { %v3530_v0 = vpop.f32.mrb[102].mxu1  ;;  %v3462_v33 = vadd.f32 %v3461_v16, %v8113_v19 }
 0x2c1   : > { %v3531_v11 = vadd.f32 %v3530_v0, %v8113_v19  ;;  %v3532_v41 = vpop.f32.mrb[103].mxu1 }
 0x2c2   : > { %v4713_v22 = vcombine.low %v3460_v9, %v3462_v33  ;;  %v3533_v29 = vadd.f32 %v3532_v41, %v8113_v19 }
 0x2c4   : > { %v4735_v43 = vrot.slane %v4713_v22, %v8117_v18  ;;  %v4714_v53 = vcombine.low %v3531_v11, %v3533_v29 }
 0x2c6   : > { %v4742_v35 = vrot.slane %v4714_v53, %v8117_v18 }
 0x2c8   : > { %v4744_v49 = vcombine.low %v4735_v43, %v4742_v35 }
 0x2ca   : > { %v4758_v5 = vrot.slane %v4744_v49, %v8117_v18 }
 0x2cc   : > { %v4759_v17 = vcombine.low %v4751_v44, %v4758_v5 }
 0x2ce   : > { %4961 = vst [vmem:[%s8134_s24] sm:$0xff] %v4759_v17 }
 0x2d2   : > { %v3601_v54 = vpop.f32.mrb[104].mxu0 }
 0x2d3   : > { %v3602_v6 = vadd.f32 %v3601_v54, %v8113_v19  ;;  %v3603_v8 = vpop.f32.mrb[105].mxu0 }
 0x2d4   : > { %v3672_v4 = vpop.f32.mrb[104].mxu1  ;;  %v3604_v12 = vadd.f32 %v3603_v8, %v8113_v19 }
 0x2d5   : > { %v3673_v23 = vadd.f32 %v3672_v4, %v8113_v19  ;;  %v3674_v36 = vpop.f32.mrb[105].mxu1 }
 0x2d6   : > { %v4760_v27 = vcombine.low %v3602_v6, %v3604_v12  ;;  %v3675_v28 = vadd.f32 %v3674_v36, %v8113_v19 }
 0x2d8   : > { %v4770_v62 = vrot.slane %v4760_v27, %v8117_v18  ;;  %v4761_v25 = vcombine.low %v3673_v23, %v3675_v28 }
 0x2da   : > { %v4777_v14 = vrot.slane %v4761_v25, %v8117_v18 }
 0x2dc   : > { %v4792_v1 = vcombine.low %v4770_v62, %v4777_v14 }
 0x2de   : > { %v4800_v59 = vrot.slane %v4792_v1, %v8117_v18 }
 0x2e6   : > { %v3743_v34 = vpop.f32.mrb[106].mxu0 }
 0x2e7   : > { %v3744_v37 = vadd.f32 %v3743_v34, %v8113_v19  ;;  %v3745_v13 = vpop.f32.mrb[107].mxu0 }
 0x2e8   : > { %v3814_v40 = vpop.f32.mrb[106].mxu1  ;;  %v3746_v7 = vadd.f32 %v3745_v13, %v8113_v19 }
 0x2e9   : > { %v3815_v38 = vadd.f32 %v3814_v40, %v8113_v19  ;;  %v3816_v21 = vpop.f32.mrb[107].mxu1 }
 0x2ea   : > { %v4762_v39 = vcombine.low %v3744_v37, %v3746_v7  ;;  %v3817_v31 = vadd.f32 %v3816_v21, %v8113_v19 }
 0x2ec   : > { %v4784_v2 = vrot.slane %v4762_v39, %v8117_v18  ;;  %v4763_v47 = vcombine.low %v3815_v38, %v3817_v31 }
 0x2ee   : > { %v4791_v57 = vrot.slane %v4763_v47, %v8117_v18 }
 0x2f0   : > { %v4793_v48 = vcombine.low %v4784_v2, %v4791_v57 }
 0x2f2   : > { %v4807_v15 = vrot.slane %v4793_v48, %v8117_v18 }
 0x2f4   : > { %v4808_v51 = vcombine.low %v4800_v59, %v4807_v15 }
 0x2f6   : > { %4962 = vst [vmem:[%s8134_s24 + $0x8] sm:$0xff] %v4808_v51 }
 0x2fa   : > { %v3885_v50 = vpop.f32.mrb[108].mxu0 }
 0x2fb   : > { %v3886_v20 = vadd.f32 %v3885_v50, %v8113_v19  ;;  %v3887_v63 = vpop.f32.mrb[109].mxu0 }
 0x2fc   : > { %v3956_v61 = vpop.f32.mrb[108].mxu1  ;;  %v3888_v30 = vadd.f32 %v3887_v63, %v8113_v19 }
 0x2fd   : > { %v3957_v24 = vadd.f32 %v3956_v61, %v8113_v19  ;;  %v3958_v56 = vpop.f32.mrb[109].mxu1 }
 0x2fe   : > { %v4809_v55 = vcombine.low %v3886_v20, %v3888_v30  ;;  %v3959_v46 = vadd.f32 %v3958_v56, %v8113_v19 }
 0x300   : > { %v4819_v26 = vrot.slane %v4809_v55, %v8117_v18  ;;  %v4810_v3 = vcombine.low %v3957_v24, %v3959_v46 }
 0x302   : > { %v4826_v42 = vrot.slane %v4810_v3, %v8117_v18 }
 0x304   : > { %v4841_v32 = vcombine.low %v4819_v26, %v4826_v42 }
 0x306   : > { %v4849_v29 = vrot.slane %v4841_v32, %v8117_v18 }
 0x30e   : > { %v4027_v10 = vpop.f32.mrb[110].mxu0 }
 0x30f   : > { %v4028_v52 = vadd.f32 %v4027_v10, %v8113_v19  ;;  %v4029_v58 = vpop.f32.mrb[111].mxu0 }
 0x310   : > { %v4098_v60 = vpop.f32.mrb[110].mxu1  ;;  %v4030_v45 = vadd.f32 %v4029_v58, %v8113_v19 }
 0x311   : > { %v4099_v9 = vadd.f32 %v4098_v60, %v8113_v19  ;;  %v4100_v16 = vpop.f32.mrb[111].mxu1 }
 0x312   : > { %v4811_v0 = vcombine.low %v4028_v52, %v4030_v45  ;;  %v4101_v33 = vadd.f32 %v4100_v16, %v8113_v19 }
 0x314   : > { %v4833_v11 = vrot.slane %v4811_v0, %v8117_v18  ;;  %v4812_v41 = vcombine.low %v4099_v9, %v4101_v33 }
 0x316   : > { %v4840_v22 = vrot.slane %v4812_v41, %v8117_v18 }
 0x318   : > { %v4842_v43 = vcombine.low %v4833_v11, %v4840_v22 }
 0x31a   : > { %v4856_v53 = vrot.slane %v4842_v43, %v8117_v18 }
 0x31c   : > { %v4857_v35 = vcombine.low %v4849_v29, %v4856_v53 }
 0x31e   : > { %4963 = vst [vmem:[%s8134_s24 + $0x10] sm:$0xff] %v4857_v35 }
 0x322   : > { %v4169_v44 = vpop.f32.mrb[112].mxu0 }
 0x323   : > { %v4170_v49 = vadd.f32 %v4169_v44, %v8113_v19  ;;  %v4171_v5 = vpop.f32.mrb[113].mxu0 }
 0x324   : > { %v4240_v17 = vpop.f32.mrb[112].mxu1  ;;  %v4172_v54 = vadd.f32 %v4171_v5, %v8113_v19 }
 0x325   : > { %v4241_v6 = vadd.f32 %v4240_v17, %v8113_v19  ;;  %v4242_v8 = vpop.f32.mrb[113].mxu1 }
 0x326   : > { %v4858_v4 = vcombine.low %v4170_v49, %v4172_v54  ;;  %v4243_v12 = vadd.f32 %v4242_v8, %v8113_v19 }
 0x328   : > { %v4868_v23 = vrot.slane %v4858_v4, %v8117_v18  ;;  %v4859_v36 = vcombine.low %v4241_v6, %v4243_v12 }
 0x32a   : > { %v4875_v27 = vrot.slane %v4859_v36, %v8117_v18 }
 0x32c   : > { %v4890_v28 = vcombine.low %v4868_v23, %v4875_v27 }
 0x32e   : > { %v4898_v31 = vrot.slane %v4890_v28, %v8117_v18 }
 0x336   : > { %v4311_v62 = vpop.f32.mrb[114].mxu0 }
 0x337   : > { %v4312_v25 = vadd.f32 %v4311_v62, %v8113_v19  ;;  %v4313_v14 = vpop.f32.mrb[115].mxu0 }
 0x338   : > { %v4382_v1 = vpop.f32.mrb[114].mxu1  ;;  %v4314_v34 = vadd.f32 %v4313_v14, %v8113_v19 }
 0x339   : > { %v4383_v37 = vadd.f32 %v4382_v1, %v8113_v19  ;;  %v4384_v13 = vpop.f32.mrb[115].mxu1 }
 0x33a   : > { %v4860_v40 = vcombine.low %v4312_v25, %v4314_v34  ;;  %v4385_v7 = vadd.f32 %v4384_v13, %v8113_v19 }
 0x33c   : > { %v4882_v38 = vrot.slane %v4860_v40, %v8117_v18  ;;  %v4861_v21 = vcombine.low %v4383_v37, %v4385_v7 }
 0x33e   : > { %v4889_v39 = vrot.slane %v4861_v21, %v8117_v18 }
 0x340   : > { %v4891_v2 = vcombine.low %v4882_v38, %v4889_v39 }
 0x342   : > { %v4905_v47 = vrot.slane %v4891_v2, %v8117_v18 }
 0x344   : > { %v4906_v57 = vcombine.low %v4898_v31, %v4905_v47 }
 0x346   : > { %4964 = vst [vmem:[%s8134_s24 + $0x18] sm:$0xff] %v4906_v57 }
 0x34a   : > { %v4453_v59 = vpop.f32.mrb[116].mxu0 }
 0x34b   : > { %v4454_v48 = vadd.f32 %v4453_v59, %v8113_v19  ;;  %v4455_v15 = vpop.f32.mrb[117].mxu0 }
 0x34c   : > { %v4524_v51 = vpop.f32.mrb[116].mxu1  ;;  %v4456_v50 = vadd.f32 %v4455_v15, %v8113_v19 }
 0x34d   : > { %v4525_v20 = vadd.f32 %v4524_v51, %v8113_v19  ;;  %v4526_v63 = vpop.f32.mrb[117].mxu1 }
 0x34e   : > { %v4907_v61 = vcombine.low %v4454_v48, %v4456_v50  ;;  %v4527_v30 = vadd.f32 %v4526_v63, %v8113_v19 }
 0x350   : > { %v4917_v24 = vrot.slane %v4907_v61, %v8117_v18  ;;  %v4908_v56 = vcombine.low %v4525_v20, %v4527_v30 }
 0x352   : > { %v4924_v55 = vrot.slane %v4908_v56, %v8117_v18 }
 0x354   : > { %v4939_v46 = vcombine.low %v4917_v24, %v4924_v55 }
 0x356   : > { %v4947_v11 = vrot.slane %v4939_v46, %v8117_v18 }
 0x35e   : > { %v4595_v26 = vpop.f32.mrb[118].mxu0 }
 0x35f   : > { %v4596_v3 = vadd.f32 %v4595_v26, %v8113_v19  ;;  %v4597_v42 = vpop.f32.mrb[119].mxu0 }
 0x360   : > { %v4666_v32 = vpop.f32.mrb[118].mxu1  ;;  %v4598_v10 = vadd.f32 %v4597_v42, %v8113_v19 }
 0x361   : > { %v4667_v52 = vadd.f32 %v4666_v32, %v8113_v19  ;;  %v4668_v58 = vpop.f32.mrb[119].mxu1 }
 0x362   : > { %v4909_v60 = vcombine.low %v4596_v3, %v4598_v10  ;;  %v4669_v45 = vadd.f32 %v4668_v58, %v8113_v19 }
 0x364   : > { %v4931_v9 = vrot.slane %v4909_v60, %v8117_v18  ;;  %v4910_v16 = vcombine.low %v4667_v52, %v4669_v45 }
 0x366   : > { %v4938_v0 = vrot.slane %v4910_v16, %v8117_v18 }
 0x368   : > { %v4940_v33 = vcombine.low %v4931_v9, %v4938_v0 }
 0x36a   : > { %v4954_v41 = vrot.slane %v4940_v33, %v8117_v18 }
 0x36c   : > { %v4955_v22 = vcombine.low %v4947_v11, %v4954_v41 }
 0x36e   : > { %4965 = vst [vmem:[%s8134_s24 + $0x20] sm:$0xff] %v4955_v22 }
 0x36f   : > { %6418 = shalt.err (!%p6415_p4)
}
 0x370   : > { %s6419_s11 = scalar_lea.hbm %s8201_s13, 640  ;;  %s6423_s16 = scalar_lea.hbm %s8251_s5, 1280 }
 0x371   : > { %p6420_p7 = scmp.ne.s32.totalorder %s8201_s13, %s6419_s11  ;;  %p6424_p0 = scmp.lt.u32.totalorder %s8201_s13, %s8251_s5 }
 0x372   : > { %p6425_p1 = scmp.lt.u32.totalorder %s6423_s16, %s6419_s11  ;;  %p6427_p6 = scmp.lt.u32.totalorder %s6419_s11, %s8201_s13 }
 0x373   : > { %p6421_p8 = pnand %p6420_p7, %p8259_p11 }
 0x374   : > { %p6426_p3 = por %p6425_p1, %p6424_p0 }
 0x375   : > { %p6422_p9 = pneg %p6421_p8 }
 0x376   : > { %p6428_p12 = por %p6427_p6, %p6426_p3 }
 0x378   : > { %p6429_p13 = pnand %p6428_p12, %p6422_p9 }
 0x37a   : > { %6432 = shalt.err (!%p6429_p13)
}
 0x37b   : > { %5505 = dma.vmem_to_hbm [thread:$0]  (%p8259_p11), %s8203_s26, 640, %s8201_s13, %s4967_s8  }
 0x37c PF: > { %s4993_s19 = sand.u32 1, %s6459_s20   ;;  %p8260_p5 = scmp.ne.s32.totalorder %s8255_s6, 0 }
 0x37d   : > { %p8261_p10 = scmp.ge.s32.totalorder %s6471_s23, 2  ;;  %s4994_s24 = scalar_lea.sflag [#allocation5], %s4993_s19 }
 0x37f   : > { %p5512_p2 = pnand %p8261_p10, %p8260_p5 }
 0x381   : > { %6454 = dma.done.wait (!%p5512_p2), %s4994_s24, 640  }
 0x382   : > { %6456 = vsyncadd (!%p5512_p2), %s4994_s24, 4294966656  ;;  %p19_p4 = scmp.ge.s32.totalorder %s6538_s25, 4   ;;  %s8262_s20 = smov %s6463_s21 }
 0x383   : > { %s8263_s21 = smov %s6467_s22  ;;  %s8264_s22 = smov %s6550_s28 }
 0x384   : > { %s8265_s23 = smov %s6538_s25  ;;  %21 = sbr.rel (!%p19_p4) target bundleno = 7 (0x7), region = 85 }
 0x38b   :  { %4999 = vsyncpa [#allocation4], 1 }
 0x38c   :  { %5001 = vsyncpa [#allocation4 + $0x1], 1 }
 0x38d   :  { %5002 = vsyncpa [#allocation5], 1 }
 0x38e   :  { %5004 = vsyncpa [#allocation5 + $0x1], 1 }

</bundles_post_ra>
